<compile_context>
chip_gen: v7x
topology: tpu7x:2x2x1
jax: 0.10.0
libtpu: 0.0.40
codegen_flags: <defaults>
</compile_context>

<pallas_src>
import functools

import jax
import jax.numpy as jnp
from jax.experimental import pallas as pl
from jax.experimental.pallas import tpu as pltpu

jax.config.update("jax_default_matmul_precision", "highest")


def _round_up(x, m):
    return (x + m - 1) // m * m


# ----------------------------------------------------------------------------
# Fused kernel: num_convs x (conv3x3 + bias + ReLU) -> maxpool 2x2/2.
# refs layout:
#   inputs : x, (W_i, b_i) * n, masks, pool_select
#   outputs: o
#   scratch: (pad_i, patch_i) * n, pool_buf
# ----------------------------------------------------------------------------
def _vgg_block_kernel(*refs, h, w, off, cps, couts):
    n = len(couts)
    hw = h * w

    x_ref = refs[0]
    wrefs = [refs[1 + 2 * i] for i in range(n)]
    brefs = [refs[2 + 2 * i] for i in range(n)]
    mask_ref = refs[1 + 2 * n]
    sel_ref = refs[2 + 2 * n]
    o_ref = refs[3 + 2 * n]
    pad_refs = [refs[4 + 2 * n + 2 * i] for i in range(n)]
    pat_refs = [refs[5 + 2 * n + 2 * i] for i in range(n)]
    pool_ref = refs[4 + 4 * n]

    # Hoisted (1, hw) column-validity masks for the horizontal taps.
    mask_l = mask_ref[0:1, :]   # valid when x >= 1      (tap dx = -1)
    mask_r = mask_ref[1:2, :]   # valid when x <= w - 2  (tap dx = +1)

    a = x_ref[0]                                   # (cps[0], hw), channel-major
    for li in range(n):
        cp = cps[li]
        pad_ref = pad_refs[li]
        pat_ref = pat_refs[li]

        # Zero-padded flat activation: `a` placed at lane offset `off`
        # (off and hw are multiples of 128 -> the store is tile aligned).
        pad_ref[...] = jnp.zeros_like(pad_ref)
        pad_ref[0:a.shape[0], off:off + hw] = a

        # im2col: 9 shifted windows stacked along sublanes -> (9*cp, hw).
        for k in range(9):
            ky, kx = k // 3, k % 3
            s = (ky - 1) * w + (kx - 1)
            win = pad_ref[:, off + s: off + s + hw]          # (cp, hw)
            if kx == 0:
                win = win * mask_l
            elif kx == 2:
                win = win * mask_r
            pat_ref[k * cp:(k + 1) * cp, :] = win

        # Single MXU matmul per conv: (cout, 9*cp) @ (9*cp, hw) -> (cout, hw).
        y = jnp.dot(wrefs[li][...], pat_ref[...],
                    preferred_element_type=jnp.float32)
        a = jnp.maximum(y + brefs[li][...], 0.0)

    # 2x2 / stride-2 max pool, done on the flat lane-dense layout.
    pool_ref[...] = jnp.zeros_like(pool_ref)
    pool_ref[:, 0:hw] = a
    m = a
    for s in (1, w, w + 1):
        m = jnp.maximum(m, pool_ref[:, s:s + hw])
    # Compact the even-row/even-col lanes with an exact one-hot matmul.
    o_ref[0] = jnp.dot(m, sel_ref[...], preferred_element_type=jnp.float32)


# ----------------------------------------------------------------------------
# Wrapper: builds weight matrices, masks, pool-selection matrix, BlockSpecs.
# ----------------------------------------------------------------------------
def vgg_conv_block_forward(x, weights, biases):
    """x: (B, Cin, H, W) f32; weights[i]: (Cout, Cin_i, 3, 3); biases[i]: (Cout,)."""
    b, cin, h, w = x.shape
    assert h % 2 == 0 and w % 2 == 0
    n = len(weights)
    hw = h * w
    ho, wo = h // 2, w // 2
    hw4 = ho * wo

    couts = tuple(int(wt.shape[0]) for wt in weights)
    cins = (cin,) + couts[:-1]
    cps = tuple(_round_up(c, 8) for c in cins)      # sublane-aligned channel pad
    off = _round_up(w + 1, 128)                     # lane-aligned left padding
    pw = off + hw + off
    pw_pool = hw + _round_up(w + 1, 128)

    # NCHW -> (B, C, H*W) flat channel-major (row-major reshape, no transpose).
    x_flat = x.astype(jnp.float32).reshape(b, cin, hw)
    if cps[0] != cin:
        x_flat = jnp.pad(x_flat, ((0, 0), (0, cps[0] - cin), (0, 0)))

    # Per-layer weight matrices (cout, 9*cp) with tap-major (ky, kx, c) order.
    wmats, bcols = [], []
    for i, (wt, bs) in enumerate(zip(weights, biases)):
        co, ci = int(wt.shape[0]), int(wt.shape[1])
        wk = jnp.transpose(wt, (0, 2, 3, 1)).reshape(co, 9, ci)
        if cps[i] != ci:
            wk = jnp.pad(wk, ((0, 0), (0, 0), (0, cps[i] - ci)))
        wmats.append(wk.reshape(co, 9 * cps[i]).astype(jnp.float32))
        bcols.append(bs.reshape(co, 1).astype(jnp.float32))

    # Column-validity masks for the horizontal conv taps.
    xs = jnp.arange(hw, dtype=jnp.int32) % w
    masks = jnp.stack([(xs >= 1), (xs <= w - 2)]).astype(jnp.float32)  # (2, hw)

    # One-hot lane-selection matrix for pool compaction: (hw, hw/4).
    j = jnp.arange(hw4, dtype=jnp.int32)
    rows = 2 * (j // wo) * w + 2 * (j % wo)
    sel = jnp.zeros((hw, hw4), jnp.float32).at[rows, j].set(1.0)

    in_specs = [pl.BlockSpec((1, cps[0], hw), lambda i: (i, 0, 0))]
    inputs = [x_flat]
    for i in range(n):
        in_specs.append(pl.BlockSpec(wmats[i].shape, lambda i_: (0, 0)))
        in_specs.append(pl.BlockSpec(bcols[i].shape, lambda i_: (0, 0)))
        inputs += [wmats[i], bcols[i]]
    in_specs.append(pl.BlockSpec((2, hw), lambda i_: (0, 0)))
    in_specs.append(pl.BlockSpec((hw, hw4), lambda i_: (0, 0)))
    inputs += [masks, sel]

    scratch = []
    for i in range(n):
        scratch.append(pltpu.VMEM((cps[i], pw), jnp.float32))       # padded act
        scratch.append(pltpu.VMEM((9 * cps[i], hw), jnp.float32))   # im2col
    scratch.append(pltpu.VMEM((couts[-1], pw_pool), jnp.float32))   # pool buffer

    kernel = functools.partial(_vgg_block_kernel, h=h, w=w, off=off,
                               cps=cps, couts=couts)
    out = pl.pallas_call(
        kernel,
        out_shape=jax.ShapeDtypeStruct((b, couts[-1], hw4), jnp.float32),
        grid_spec=pltpu.PrefetchScalarGridSpec(
            num_scalar_prefetch=0,
            grid=(b,),
            in_specs=in_specs,
            out_specs=pl.BlockSpec((1, couts[-1], hw4), lambda i: (i, 0, 0)),
            scratch_shapes=scratch,
        ),
        compiler_params=pltpu.CompilerParams(
            dimension_semantics=("parallel",)),
    )(*inputs)
    return out.reshape(b, couts[-1], ho, wo)


# ----------------------------------------------------------------------------
# Parameter init mirroring torch init_params(conv, gain * sqrt(2)).
# ----------------------------------------------------------------------------
def make_params(key, in_channels, out_channels, num_convs, gain=1.0):
    g = gain * 2.0 ** 0.5
    keys = jax.random.split(key, 2 * num_convs)
    weights, biases = [], []
    cin = in_channels
    for i in range(num_convs):
        fan_in = cin * 9
        bound = g * (3.0 / fan_in) ** 0.5
        weights.append(jax.random.uniform(
            keys[2 * i], (out_channels, cin, 3, 3), jnp.float32, -bound, bound))
        biases.append(jax.random.uniform(
            keys[2 * i + 1], (out_channels,), jnp.float32, -bound, bound))
        cin = out_channels
    return weights, biases


# Pure-JAX reference for numerical verification.
def reference(x, weights, biases):
    y = x
    for wt, bs in zip(weights, biases):
        y = jax.lax.conv_general_dilated(
            y, wt, window_strides=(1, 1), padding=((1, 1), (1, 1)),
            dimension_numbers=("NCHW", "OIHW", "NCHW"))
        y = jnp.maximum(y + bs[None, :, None, None], 0.0)
    b, c, h, w = y.shape
    return y.reshape(b, c, h // 2, 2, w // 2, 2).max(axis=(3, 5))


if __name__ == "__main__":
    key = jax.random.PRNGKey(0)
    pkey, xkey = jax.random.split(key)

    in_channels, out_channels, num_convs = 4, 32, 2
    batch, h, w = 2, 16, 16

    weights, biases = make_params(pkey, in_channels, out_channels, num_convs)
    x = jax.random.uniform(xkey, (batch, in_channels, h, w), jnp.float32,
                           -1.0, 1.0)

    out = jax.block_until_ready(vgg_conv_block_forward(x, weights, biases))
    assert out.shape == (batch, out_channels, h // 2, w // 2), out.shape

    ref = jax.block_until_ready(reference(x, weights, biases))
    if not bool(jnp.allclose(out, ref, rtol=1e-3, atol=1e-2)):
        raise AssertionError(
            f"Pallas output mismatch, max abs err = {jnp.max(jnp.abs(out - ref))}")

    print("KERNEL_OK")
</pallas_src>

<mosaic_0001>
module attributes {stable_mosaic.version = 11 : i64} {
  func.func @_vgg_block_kernel(%arg0: i32, %arg1: memref<1x8x256xf32, #tpu.memory_space<vmem>>, %arg2: memref<32x72xf32, #tpu.memory_space<vmem>>, %arg3: memref<32x1xf32, #tpu.memory_space<vmem>>, %arg4: memref<32x288xf32, #tpu.memory_space<vmem>>, %arg5: memref<32x1xf32, #tpu.memory_space<vmem>>, %arg6: memref<2x256xf32, #tpu.memory_space<vmem>>, %arg7: memref<256x64xf32, #tpu.memory_space<vmem>>, %arg8: memref<1x32x64xf32, #tpu.memory_space<vmem>>, %arg9: memref<8x512xf32, #tpu.memory_space<vmem>>, %arg10: memref<72x256xf32, #tpu.memory_space<vmem>>, %arg11: memref<32x512xf32, #tpu.memory_space<vmem>>, %arg12: memref<288x256xf32, #tpu.memory_space<vmem>>, %arg13: memref<32x384xf32, #tpu.memory_space<vmem>>) attributes {dimension_semantics = [#tpu.dimension_semantics<parallel>], iteration_bounds = array<i64: 2>, scalar_prefetch = 0 : i64, scratch_operands = 5 : i64, tpu.core_type = #tpu.core_type<tc>, window_params = [{transform_indices = @transform_0, window_bounds = array<i64: 1, 8, 256>}, {pipeline_mode = #tpu.pipeline_mode<synchronous>, transform_indices = @transform_1, window_bounds = array<i64: 32, 72>}, {pipeline_mode = #tpu.pipeline_mode<synchronous>, transform_indices = @transform_2, window_bounds = array<i64: 32, 1>}, {pipeline_mode = #tpu.pipeline_mode<synchronous>, transform_indices = @transform_3, window_bounds = array<i64: 32, 288>}, {pipeline_mode = #tpu.pipeline_mode<synchronous>, transform_indices = @transform_4, window_bounds = array<i64: 32, 1>}, {pipeline_mode = #tpu.pipeline_mode<synchronous>, transform_indices = @transform_5, window_bounds = array<i64: 2, 256>}, {pipeline_mode = #tpu.pipeline_mode<synchronous>, transform_indices = @transform_6, window_bounds = array<i64: 256, 64>}, {transform_indices = @transform_7, window_bounds = array<i64: 1, 32, 64>}]} {
    %c0 = arith.constant 0 : index
    %c0_0 = arith.constant 0 : index
    %0 = vector.load %arg6[%c0, %c0_0] : memref<2x256xf32, #tpu.memory_space<vmem>>, vector<1x256xf32>
    %c1 = arith.constant 1 : index
    %c0_1 = arith.constant 0 : index
    %1 = vector.load %arg6[%c1, %c0_1] : memref<2x256xf32, #tpu.memory_space<vmem>>, vector<1x256xf32>
    %c0_2 = arith.constant 0 : index
    %c0_3 = arith.constant 0 : index
    %c0_4 = arith.constant 0 : index
    %2 = vector.load %arg1[%c0_2, %c0_3, %c0_4] : memref<1x8x256xf32, #tpu.memory_space<vmem>>, vector<1x8x256xf32>
    %3 = vector.shape_cast %2 : vector<1x8x256xf32> to vector<8x256xf32>
    %cst = arith.constant 0.000000e+00 : f32
    %4 = vector.broadcast %cst : f32 to vector<8x512xf32>
    %c0_5 = arith.constant 0 : index
    %c0_6 = arith.constant 0 : index
    %5 = vector.load %arg9[%c0_5, %c0_6] : memref<8x512xf32, #tpu.memory_space<vmem>>, vector<8x512xf32>
    tpu.vector_store %arg9[%c0_5, %c0_6], %4 {strides = array<i32>} : memref<8x512xf32, #tpu.memory_space<vmem>>, vector<8x512xf32>,
    %c0_7 = arith.constant 0 : index
    %c128 = arith.constant 128 : index
    %6 = vector.load %arg9[%c0_7, %c128] : memref<8x512xf32, #tpu.memory_space<vmem>>, vector<8x256xf32>
    tpu.vector_store %arg9[%c0_7, %c128], %3 {strides = array<i32>} : memref<8x512xf32, #tpu.memory_space<vmem>>, vector<8x256xf32>,
    %c0_8 = arith.constant 0 : index
    %c111 = arith.constant 111 : index
    %7 = vector.load %arg9[%c0_8, %c111] : memref<8x512xf32, #tpu.memory_space<vmem>>, vector<8x256xf32>
    %8 = vector.broadcast %0 : vector<1x256xf32> to vector<8x256xf32>
    %9 = arith.mulf %7, %8 : vector<8x256xf32>
    %c0_9 = arith.constant 0 : index
    %c0_10 = arith.constant 0 : index
    %10 = vector.load %arg10[%c0_9, %c0_10] : memref<72x256xf32, #tpu.memory_space<vmem>>, vector<8x256xf32>
    tpu.vector_store %arg10[%c0_9, %c0_10], %9 {strides = array<i32>} : memref<72x256xf32, #tpu.memory_space<vmem>>, vector<8x256xf32>,
    %c0_11 = arith.constant 0 : index
    %c112 = arith.constant 112 : index
    %11 = vector.load %arg9[%c0_11, %c112] : memref<8x512xf32, #tpu.memory_space<vmem>>, vector<8x256xf32>
    %c8 = arith.constant 8 : index
    %c0_12 = arith.constant 0 : index
    %12 = vector.load %arg10[%c8, %c0_12] : memref<72x256xf32, #tpu.memory_space<vmem>>, vector<8x256xf32>
    tpu.vector_store %arg10[%c8, %c0_12], %11 {strides = array<i32>} : memref<72x256xf32, #tpu.memory_space<vmem>>, vector<8x256xf32>,
    %c0_13 = arith.constant 0 : index
    %c113 = arith.constant 113 : index
    %13 = vector.load %arg9[%c0_13, %c113] : memref<8x512xf32, #tpu.memory_space<vmem>>, vector<8x256xf32>
    %14 = vector.broadcast %1 : vector<1x256xf32> to vector<8x256xf32>
    %15 = arith.mulf %13, %14 : vector<8x256xf32>
    %c16 = arith.constant 16 : index
    %c0_14 = arith.constant 0 : index
    %16 = vector.load %arg10[%c16, %c0_14] : memref<72x256xf32, #tpu.memory_space<vmem>>, vector<8x256xf32>
    tpu.vector_store %arg10[%c16, %c0_14], %15 {strides = array<i32>} : memref<72x256xf32, #tpu.memory_space<vmem>>, vector<8x256xf32>,
    %c0_15 = arith.constant 0 : index
    %c127 = arith.constant 127 : index
    %17 = vector.load %arg9[%c0_15, %c127] : memref<8x512xf32, #tpu.memory_space<vmem>>, vector<8x256xf32>
    %18 = vector.broadcast %0 : vector<1x256xf32> to vector<8x256xf32>
    %19 = arith.mulf %17, %18 : vector<8x256xf32>
    %c24 = arith.constant 24 : index
    %c0_16 = arith.constant 0 : index
    %20 = vector.load %arg10[%c24, %c0_16] : memref<72x256xf32, #tpu.memory_space<vmem>>, vector<8x256xf32>
    tpu.vector_store %arg10[%c24, %c0_16], %19 {strides = array<i32>} : memref<72x256xf32, #tpu.memory_space<vmem>>, vector<8x256xf32>,
    %c0_17 = arith.constant 0 : index
    %c128_18 = arith.constant 128 : index
    %21 = vector.load %arg9[%c0_17, %c128_18] : memref<8x512xf32, #tpu.memory_space<vmem>>, vector<8x256xf32>
    %c32 = arith.constant 32 : index
    %c0_19 = arith.constant 0 : index
    %22 = vector.load %arg10[%c32, %c0_19] : memref<72x256xf32, #tpu.memory_space<vmem>>, vector<8x256xf32>
    tpu.vector_store %arg10[%c32, %c0_19], %21 {strides = array<i32>} : memref<72x256xf32, #tpu.memory_space<vmem>>, vector<8x256xf32>,
    %c0_20 = arith.constant 0 : index
    %c129 = arith.constant 129 : index
    %23 = vector.load %arg9[%c0_20, %c129] : memref<8x512xf32, #tpu.memory_space<vmem>>, vector<8x256xf32>
    %24 = vector.broadcast %1 : vector<1x256xf32> to vector<8x256xf32>
    %25 = arith.mulf %23, %24 : vector<8x256xf32>
    %c40 = arith.constant 40 : index
    %c0_21 = arith.constant 0 : index
    %26 = vector.load %arg10[%c40, %c0_21] : memref<72x256xf32, #tpu.memory_space<vmem>>, vector<8x256xf32>
    tpu.vector_store %arg10[%c40, %c0_21], %25 {strides = array<i32>} : memref<72x256xf32, #tpu.memory_space<vmem>>, vector<8x256xf32>,
    %c0_22 = arith.constant 0 : index
    %c143 = arith.constant 143 : index
    %27 = vector.load %arg9[%c0_22, %c143] : memref<8x512xf32, #tpu.memory_space<vmem>>, vector<8x256xf32>
    %28 = vector.broadcast %0 : vector<1x256xf32> to vector<8x256xf32>
    %29 = arith.mulf %27, %28 : vector<8x256xf32>
    %c48 = arith.constant 48 : index
    %c0_23 = arith.constant 0 : index
    %30 = vector.load %arg10[%c48, %c0_23] : memref<72x256xf32, #tpu.memory_space<vmem>>, vector<8x256xf32>
    tpu.vector_store %arg10[%c48, %c0_23], %29 {strides = array<i32>} : memref<72x256xf32, #tpu.memory_space<vmem>>, vector<8x256xf32>,
    %c0_24 = arith.constant 0 : index
    %c144 = arith.constant 144 : index
    %31 = vector.load %arg9[%c0_24, %c144] : memref<8x512xf32, #tpu.memory_space<vmem>>, vector<8x256xf32>
    %c56 = arith.constant 56 : index
    %c0_25 = arith.constant 0 : index
    %32 = vector.load %arg10[%c56, %c0_25] : memref<72x256xf32, #tpu.memory_space<vmem>>, vector<8x256xf32>
    tpu.vector_store %arg10[%c56, %c0_25], %31 {strides = array<i32>} : memref<72x256xf32, #tpu.memory_space<vmem>>, vector<8x256xf32>,
    %c0_26 = arith.constant 0 : index
    %c145 = arith.constant 145 : index
    %33 = vector.load %arg9[%c0_26, %c145] : memref<8x512xf32, #tpu.memory_space<vmem>>, vector<8x256xf32>
    %34 = vector.broadcast %1 : vector<1x256xf32> to vector<8x256xf32>
    %35 = arith.mulf %33, %34 : vector<8x256xf32>
    %c64 = arith.constant 64 : index
    %c0_27 = arith.constant 0 : index
    %36 = vector.load %arg10[%c64, %c0_27] : memref<72x256xf32, #tpu.memory_space<vmem>>, vector<8x256xf32>
    tpu.vector_store %arg10[%c64, %c0_27], %35 {strides = array<i32>} : memref<72x256xf32, #tpu.memory_space<vmem>>, vector<8x256xf32>,
    %c0_28 = arith.constant 0 : index
    %c0_29 = arith.constant 0 : index
    %37 = vector.load %arg2[%c0_28, %c0_29] : memref<32x72xf32, #tpu.memory_space<vmem>>, vector<32x72xf32>
    %c0_30 = arith.constant 0 : index
    %c0_31 = arith.constant 0 : index
    %38 = vector.load %arg10[%c0_30, %c0_31] : memref<72x256xf32, #tpu.memory_space<vmem>>, vector<72x256xf32>
    %cst_32 = arith.constant dense<0.000000e+00> : vector<32x256xf32>
    %39 = tpu.matmul %37, %38, %cst_32 {dimension_numbers = #tpu.dot_dimension_numbers<[1], [0], [0], [1], [0, 0, 1, 1], [], []>, precision = #tpu.contract_precision<fp32>} : vector<32x72xf32>, vector<72x256xf32>, vector<32x256xf32> -> vector<32x256xf32>
    %c0_33 = arith.constant 0 : index
    %c0_34 = arith.constant 0 : index
    %40 = vector.load %arg3[%c0_33, %c0_34] : memref<32x1xf32, #tpu.memory_space<vmem>>, vector<32x1xf32>
    %41 = vector.broadcast %40 : vector<32x1xf32> to vector<32x256xf32>
    %42 = arith.addf %39, %41 : vector<32x256xf32>
    %cst_35 = arith.constant 0.000000e+00 : f32
    %43 = vector.broadcast %cst_35 : f32 to vector<32x256xf32>
    %44 = arith.maximumf %42, %43 : vector<32x256xf32>
    %cst_36 = arith.constant 0.000000e+00 : f32
    %45 = vector.broadcast %cst_36 : f32 to vector<32x512xf32>
    %c0_37 = arith.constant 0 : index
    %c0_38 = arith.constant 0 : index
    %46 = vector.load %arg11[%c0_37, %c0_38] : memref<32x512xf32, #tpu.memory_space<vmem>>, vector<32x512xf32>
    tpu.vector_store %arg11[%c0_37, %c0_38], %45 {strides = array<i32>} : memref<32x512xf32, #tpu.memory_space<vmem>>, vector<32x512xf32>,
    %c0_39 = arith.constant 0 : index
    %c128_40 = arith.constant 128 : index
    %47 = vector.load %arg11[%c0_39, %c128_40] : memref<32x512xf32, #tpu.memory_space<vmem>>, vector<32x256xf32>
    tpu.vector_store %arg11[%c0_39, %c128_40], %44 {strides = array<i32>} : memref<32x512xf32, #tpu.memory_space<vmem>>, vector<32x256xf32>,
    %c0_41 = arith.constant 0 : index
    %c111_42 = arith.constant 111 : index
    %48 = vector.load %arg11[%c0_41, %c111_42] : memref<32x512xf32, #tpu.memory_space<vmem>>, vector<32x256xf32>
    %49 = vector.broadcast %0 : vector<1x256xf32> to vector<32x256xf32>
    %50 = arith.mulf %48, %49 : vector<32x256xf32>
    %c0_43 = arith.constant 0 : index
    %c0_44 = arith.constant 0 : index
    %51 = vector.load %arg12[%c0_43, %c0_44] : memref<288x256xf32, #tpu.memory_space<vmem>>, vector<32x256xf32>
    tpu.vector_store %arg12[%c0_43, %c0_44], %50 {strides = array<i32>} : memref<288x256xf32, #tpu.memory_space<vmem>>, vector<32x256xf32>,
    %c0_45 = arith.constant 0 : index
    %c112_46 = arith.constant 112 : index
    %52 = vector.load %arg11[%c0_45, %c112_46] : memref<32x512xf32, #tpu.memory_space<vmem>>, vector<32x256xf32>
    %c32_47 = arith.constant 32 : index
    %c0_48 = arith.constant 0 : index
    %53 = vector.load %arg12[%c32_47, %c0_48] : memref<288x256xf32, #tpu.memory_space<vmem>>, vector<32x256xf32>
    tpu.vector_store %arg12[%c32_47, %c0_48], %52 {strides = array<i32>} : memref<288x256xf32, #tpu.memory_space<vmem>>, vector<32x256xf32>,
    %c0_49 = arith.constant 0 : index
    %c113_50 = arith.constant 113 : index
    %54 = vector.load %arg11[%c0_49, %c113_50] : memref<32x512xf32, #tpu.memory_space<vmem>>, vector<32x256xf32>
    %55 = vector.broadcast %1 : vector<1x256xf32> to vector<32x256xf32>
    %56 = arith.mulf %54, %55 : vector<32x256xf32>
    %c64_51 = arith.constant 64 : index
    %c0_52 = arith.constant 0 : index
    %57 = vector.load %arg12[%c64_51, %c0_52] : memref<288x256xf32, #tpu.memory_space<vmem>>, vector<32x256xf32>
    tpu.vector_store %arg12[%c64_51, %c0_52], %56 {strides = array<i32>} : memref<288x256xf32, #tpu.memory_space<vmem>>, vector<32x256xf32>,
    %c0_53 = arith.constant 0 : index
    %c127_54 = arith.constant 127 : index
    %58 = vector.load %arg11[%c0_53, %c127_54] : memref<32x512xf32, #tpu.memory_space<vmem>>, vector<32x256xf32>
    %59 = vector.broadcast %0 : vector<1x256xf32> to vector<32x256xf32>
    %60 = arith.mulf %58, %59 : vector<32x256xf32>
    %c96 = arith.constant 96 : index
    %c0_55 = arith.constant 0 : index
    %61 = vector.load %arg12[%c96, %c0_55] : memref<288x256xf32, #tpu.memory_space<vmem>>, vector<32x256xf32>
    tpu.vector_store %arg12[%c96, %c0_55], %60 {strides = array<i32>} : memref<288x256xf32, #tpu.memory_space<vmem>>, vector<32x256xf32>,
    %c0_56 = arith.constant 0 : index
    %c128_57 = arith.constant 128 : index
    %62 = vector.load %arg11[%c0_56, %c128_57] : memref<32x512xf32, #tpu.memory_space<vmem>>, vector<32x256xf32>
    %c128_58 = arith.constant 128 : index
    %c0_59 = arith.constant 0 : index
    %63 = vector.load %arg12[%c128_58, %c0_59] : memref<288x256xf32, #tpu.memory_space<vmem>>, vector<32x256xf32>
    tpu.vector_store %arg12[%c128_58, %c0_59], %62 {strides = array<i32>} : memref<288x256xf32, #tpu.memory_space<vmem>>, vector<32x256xf32>,
    %c0_60 = arith.constant 0 : index
    %c129_61 = arith.constant 129 : index
    %64 = vector.load %arg11[%c0_60, %c129_61] : memref<32x512xf32, #tpu.memory_space<vmem>>, vector<32x256xf32>
    %65 = vector.broadcast %1 : vector<1x256xf32> to vector<32x256xf32>
    %66 = arith.mulf %64, %65 : vector<32x256xf32>
    %c160 = arith.constant 160 : index
    %c0_62 = arith.constant 0 : index
    %67 = vector.load %arg12[%c160, %c0_62] : memref<288x256xf32, #tpu.memory_space<vmem>>, vector<32x256xf32>
    tpu.vector_store %arg12[%c160, %c0_62], %66 {strides = array<i32>} : memref<288x256xf32, #tpu.memory_space<vmem>>, vector<32x256xf32>,
    %c0_63 = arith.constant 0 : index
    %c143_64 = arith.constant 143 : index
    %68 = vector.load %arg11[%c0_63, %c143_64] : memref<32x512xf32, #tpu.memory_space<vmem>>, vector<32x256xf32>
    %69 = vector.broadcast %0 : vector<1x256xf32> to vector<32x256xf32>
    %70 = arith.mulf %68, %69 : vector<32x256xf32>
    %c192 = arith.constant 192 : index
    %c0_65 = arith.constant 0 : index
    %71 = vector.load %arg12[%c192, %c0_65] : memref<288x256xf32, #tpu.memory_space<vmem>>, vector<32x256xf32>
    tpu.vector_store %arg12[%c192, %c0_65], %70 {strides = array<i32>} : memref<288x256xf32, #tpu.memory_space<vmem>>, vector<32x256xf32>,
    %c0_66 = arith.constant 0 : index
    %c144_67 = arith.constant 144 : index
    %72 = vector.load %arg11[%c0_66, %c144_67] : memref<32x512xf32, #tpu.memory_space<vmem>>, vector<32x256xf32>
    %c224 = arith.constant 224 : index
    %c0_68 = arith.constant 0 : index
    %73 = vector.load %arg12[%c224, %c0_68] : memref<288x256xf32, #tpu.memory_space<vmem>>, vector<32x256xf32>
    tpu.vector_store %arg12[%c224, %c0_68], %72 {strides = array<i32>} : memref<288x256xf32, #tpu.memory_space<vmem>>, vector<32x256xf32>,
    %c0_69 = arith.constant 0 : index
    %c145_70 = arith.constant 145 : index
    %74 = vector.load %arg11[%c0_69, %c145_70] : memref<32x512xf32, #tpu.memory_space<vmem>>, vector<32x256xf32>
    %75 = vector.broadcast %1 : vector<1x256xf32> to vector<32x256xf32>
    %76 = arith.mulf %74, %75 : vector<32x256xf32>
    %c256 = arith.constant 256 : index
    %c0_71 = arith.constant 0 : index
    %77 = vector.load %arg12[%c256, %c0_71] : memref<288x256xf32, #tpu.memory_space<vmem>>, vector<32x256xf32>
    tpu.vector_store %arg12[%c256, %c0_71], %76 {strides = array<i32>} : memref<288x256xf32, #tpu.memory_space<vmem>>, vector<32x256xf32>,
    %c0_72 = arith.constant 0 : index
    %c0_73 = arith.constant 0 : index
    %78 = vector.load %arg4[%c0_72, %c0_73] : memref<32x288xf32, #tpu.memory_space<vmem>>, vector<32x288xf32>
    %c0_74 = arith.constant 0 : index
    %c0_75 = arith.constant 0 : index
    %79 = vector.load %arg12[%c0_74, %c0_75] : memref<288x256xf32, #tpu.memory_space<vmem>>, vector<288x256xf32>
    %cst_76 = arith.constant dense<0.000000e+00> : vector<32x256xf32>
    %80 = tpu.matmul %78, %79, %cst_76 {dimension_numbers = #tpu.dot_dimension_numbers<[1], [0], [0], [1], [0, 0, 1, 1], [], []>, precision = #tpu.contract_precision<fp32>} : vector<32x288xf32>, vector<288x256xf32>, vector<32x256xf32> -> vector<32x256xf32>
    %c0_77 = arith.constant 0 : index
    %c0_78 = arith.constant 0 : index
    %81 = vector.load %arg5[%c0_77, %c0_78] : memref<32x1xf32, #tpu.memory_space<vmem>>, vector<32x1xf32>
    %82 = vector.broadcast %81 : vector<32x1xf32> to vector<32x256xf32>
    %83 = arith.addf %80, %82 : vector<32x256xf32>
    %cst_79 = arith.constant 0.000000e+00 : f32
    %84 = vector.broadcast %cst_79 : f32 to vector<32x256xf32>
    %85 = arith.maximumf %83, %84 : vector<32x256xf32>
    %cst_80 = arith.constant 0.000000e+00 : f32
    %86 = vector.broadcast %cst_80 : f32 to vector<32x384xf32>
    %c0_81 = arith.constant 0 : index
    %c0_82 = arith.constant 0 : index
    %87 = vector.load %arg13[%c0_81, %c0_82] : memref<32x384xf32, #tpu.memory_space<vmem>>, vector<32x384xf32>
    tpu.vector_store %arg13[%c0_81, %c0_82], %86 {strides = array<i32>} : memref<32x384xf32, #tpu.memory_space<vmem>>, vector<32x384xf32>,
    %c0_83 = arith.constant 0 : index
    %c0_84 = arith.constant 0 : index
    %88 = vector.load %arg13[%c0_83, %c0_84] : memref<32x384xf32, #tpu.memory_space<vmem>>, vector<32x256xf32>
    tpu.vector_store %arg13[%c0_83, %c0_84], %85 {strides = array<i32>} : memref<32x384xf32, #tpu.memory_space<vmem>>, vector<32x256xf32>,
    %c0_85 = arith.constant 0 : index
    %c1_86 = arith.constant 1 : index
    %89 = vector.load %arg13[%c0_85, %c1_86] : memref<32x384xf32, #tpu.memory_space<vmem>>, vector<32x256xf32>
    %90 = arith.maximumf %85, %89 : vector<32x256xf32>
    %c0_87 = arith.constant 0 : index
    %c16_88 = arith.constant 16 : index
    %91 = vector.load %arg13[%c0_87, %c16_88] : memref<32x384xf32, #tpu.memory_space<vmem>>, vector<32x256xf32>
    %92 = arith.maximumf %90, %91 : vector<32x256xf32>
    %c0_89 = arith.constant 0 : index
    %c17 = arith.constant 17 : index
    %93 = vector.load %arg13[%c0_89, %c17] : memref<32x384xf32, #tpu.memory_space<vmem>>, vector<32x256xf32>
    %94 = arith.maximumf %92, %93 : vector<32x256xf32>
    %c0_90 = arith.constant 0 : index
    %c0_91 = arith.constant 0 : index
    %95 = vector.load %arg7[%c0_90, %c0_91] : memref<256x64xf32, #tpu.memory_space<vmem>>, vector<256x64xf32>
    %cst_92 = arith.constant dense<0.000000e+00> : vector<32x64xf32>
    %96 = tpu.matmul %94, %95, %cst_92 {dimension_numbers = #tpu.dot_dimension_numbers<[1], [0], [0], [1], [0, 0, 1, 1], [], []>, precision = #tpu.contract_precision<fp32>} : vector<32x256xf32>, vector<256x64xf32>, vector<32x64xf32> -> vector<32x64xf32>
    %c0_93 = arith.constant 0 : index
    %c0_94 = arith.constant 0 : index
    %c0_95 = arith.constant 0 : index
    %97 = vector.load %arg8[%c0_93, %c0_94, %c0_95] : memref<1x32x64xf32, #tpu.memory_space<vmem>>, vector<1x32x64xf32>
    %98 = vector.shape_cast %97 : vector<1x32x64xf32> to vector<32x64xf32>
    %99 = vector.shape_cast %96 : vector<32x64xf32> to vector<1x32x64xf32>
    tpu.vector_store %arg8[%c0_93, %c0_94, %c0_95], %99 {strides = array<i32>} : memref<1x32x64xf32, #tpu.memory_space<vmem>>, vector<1x32x64xf32>,
    return
  }
  func.func @transform_0(%arg0: i32) -> (i32, i32, i32) {
    %c0_i32 = arith.constant 0 : i32
    %c0_i32_0 = arith.constant 0 : i32
    %c0_i32_1 = arith.constant 0 : i32
    return %arg0, %c0_i32, %c0_i32_0 : i32, i32, i32
  }
  func.func @transform_1(%arg0: i32) -> (i32, i32) {
    %c0_i32 = arith.constant 0 : i32
    %c0_i32_0 = arith.constant 0 : i32
    %c0_i32_1 = arith.constant 0 : i32
    return %c0_i32, %c0_i32_0 : i32, i32
  }
  func.func @transform_2(%arg0: i32) -> (i32, i32) {
    %c0_i32 = arith.constant 0 : i32
    %c0_i32_0 = arith.constant 0 : i32
    %c0_i32_1 = arith.constant 0 : i32
    return %c0_i32, %c0_i32_0 : i32, i32
  }
  func.func @transform_3(%arg0: i32) -> (i32, i32) {
    %c0_i32 = arith.constant 0 : i32
    %c0_i32_0 = arith.constant 0 : i32
    %c0_i32_1 = arith.constant 0 : i32
    return %c0_i32, %c0_i32_0 : i32, i32
  }
  func.func @transform_4(%arg0: i32) -> (i32, i32) {
    %c0_i32 = arith.constant 0 : i32
    %c0_i32_0 = arith.constant 0 : i32
    %c0_i32_1 = arith.constant 0 : i32
    return %c0_i32, %c0_i32_0 : i32, i32
  }
  func.func @transform_5(%arg0: i32) -> (i32, i32) {
    %c0_i32 = arith.constant 0 : i32
    %c0_i32_0 = arith.constant 0 : i32
    %c0_i32_1 = arith.constant 0 : i32
    return %c0_i32, %c0_i32_0 : i32, i32
  }
  func.func @transform_6(%arg0: i32) -> (i32, i32) {
    %c0_i32 = arith.constant 0 : i32
    %c0_i32_0 = arith.constant 0 : i32
    %c0_i32_1 = arith.constant 0 : i32
    return %c0_i32, %c0_i32_0 : i32, i32
  }
  func.func @transform_7(%arg0: i32) -> (i32, i32, i32) {
    %c0_i32 = arith.constant 0 : i32
    %c0_i32_0 = arith.constant 0 : i32
    %c0_i32_1 = arith.constant 0 : i32
    return %arg0, %c0_i32, %c0_i32_0 : i32, i32, i32
  }
}

</mosaic_0001>

<bundles_post_ra>
// kernel: tpu_custom_call.1
= control target key start
LH: loop header
LB: loop body
LE: loop exit
PB: predicated region body
PF: predicated region fallthrough
CT: control target
= control target key end

     0   :  { %12 = vsyncpa [#allocation8], 0  ;;  %s10717_s0 = inlined_call_operand.vmem [shape: f32[2,8,256], index: 0, kind: input, shape index: {}]   ;;  %s10718_s1 = inlined_call_operand.vmem [shape: f32[32,72], index: 1, kind: input, shape index: {}]   ;;  %s10719_s2 = inlined_call_operand.vmem [shape: f32[32,1], index: 2, kind: input, shape index: {}]   ;;  %s10720_s3 = inlined_call_operand.vmem [shape: f32[32,288], index: 3, kind: input, shape index: {}]   ;;  %s10721_s4 = inlined_call_operand.vmem [shape: f32[32,1], index: 4, kind: input, shape index: {}]   ;;  %s10722_s5 = inlined_call_operand.vmem [shape: f32[2,256], index: 5, kind: input, shape index: {}]   ;;  %s10723_s6 = inlined_call_operand.vmem [shape: f32[256,64], index: 6, kind: input, shape index: {}]   ;;  %s10724_s7 = inlined_call_operand.hbm [shape: f32[2,32,64], index: 7, kind: output, shape index: {}]  }
   0x1   :  { %14 = vsyncpa [#allocation8 + $0x1], 0  ;;  %s7085_s24 = smov 0   ;;  %s7087_s25 = smov 0  }
   0x2   :  { %s7089_s26 = smov 0   ;;  %s7091_s27 = smov 0  }
   0x3 LB: > { %s7106_s28 = sadd.s32 4294967295, %s7030_s27   ;;  %s5723_s29 = sadd.s32 4294967294, %s7030_s27   ;;  %s7030_s27 = sphi %s7091_s27, %s11770_s27   ;;  %s7026_s26 = sphi %s7089_s26, %s11769_s26   ;;  %s7022_s25 = sphi %s7087_s25, %s11768_s25   ;;  %s7018_s24 = sphi %s7085_s24, %s11767_s24  }
   0x4   : > { %s7110_s30 = sadd.s32 1, %s7030_s27   ;;  %s179_s8 = sadd.s32 1, %s7026_s26 }
   0x5   : > { %s176_s9 = ssub.s32 %s7030_s27, %s7110_s30  ;;  %p189_p0 = scmp.ne.s32.totalorder %s7026_s26, %s7022_s25 }
   0x6   : > { %p177_p1 = scmp.eq.s32.totalorder %s176_s9, 0  ;;  %p190_p2 = scmp.eq.s32.totalorder %s7106_s28, 1 }
   0x7   : > { %p195_p3 = scmp.ne.s32.totalorder %s7022_s25, %s7018_s24  ;;  %p196_p4 = scmp.eq.s32.totalorder %s5723_s29, 1 }
   0x8   : > { %s7121_s10 = scalar_select %p177_p1, %s7026_s26, %s179_s8  }
   0x9   : > { %p7123_p5 = por %p190_p2, %p189_p0  ;;  %p7127_p6 = por %p196_p4, %p195_p3 }
   0xa   : > { %p5726_p7 = scmp.ge.s32.totalorder %s7030_s27, 1  ;;  %p240_p8 = scmp.lt.s32.totalorder %s7030_s27, 3 }
   0xc   : > { %p241_p9 = pnand %p5726_p7, %p240_p8 }
   0xe   : > { %244 = sbr.rel (%p241_p9) target bundleno = 1989 (0x7c5), region = 48 }
  0x15   : > { %v292_v0 = vlaneseq  ;;  %v10729_v1 = vmov 0.0   ;;  %v5730_v3 = vld [vmem:[%s10722_s5 + $0x1] ss:$2 sm:$0x3]  ;;  %s7033_s17 = smov 113   ;;  %s7034_s18 = smov 111  }
  0x16   : > { %669 = vmatprep.mubr.f32.mxu0 %v10729_v1  ;;  %v277_v4 = vld [vmem:[%s10722_s5] ss:$2 sm:$0x3]  ;;  %p272_p10 = scmp.lt.s32.totalorder %s7106_s28, 1  ;;  %s7035_s19 = smov 127   ;;  %v7040_v13 = vmov 0  }
  0x17   : > { %v293_v2 = vshrl.u32 %v292_v0, 7  ;;  %s7036_s21 = smov 1   ;;  %s7037_s23 = smov 15   ;;  %6922 = vset.pattern.permute.xlu1 %v7040_v13  ;;  %6921 = vset.pattern.permute.xlu0 %v7040_v13  ;;  %vm304_vm0 = vcmask 908288   ;;  %vm363_vm1 = vcmask 924672   ;;  %vm394_vm2 = vcmask 1039360  }
  0x18   : > { %s273_s20 = scalar_select %p272_p10, %s7106_s28, 1  ;;  %vm380_vm3 = vcmask 121856   ;;  %vm321_vm4 = vcmask 138240   ;;  %vm411_vm5 = vcmask 7168   ;;  %v551_v49 = vld [vmem:[%s10719_s2 + $0x8] sm:$0xff]  ;;  %v552_v50 = vld [vmem:[%s10719_s2 + $0x10] sm:$0xff] }
  0x19   : > { %v294_v5 = vsub.s32 0, %v293_v2  ;;  %v298_v6 = vsub.s32 1, %v293_v2  ;;  %s7038_s13 = smov 17   ;;  %s7039_s14 = smov 16   ;;  %v550_v52 = vld [vmem:[%s10719_s2] sm:$0xff]  ;;  %v553_v53 = vld [vmem:[%s10719_s2 + $0x18] sm:$0xff] }
  0x1a   : > { %s5736_s22 = sshll.u32 %s273_s20, 4  ;;  %s7041_s15 = smov 112   ;;  %vm340_vm6 = vcmask 130048   ;;  %vm574_vm7 = vcmask 588800   ;;  %vm492_vm8 = vcmask 916480   ;;  %vm2211_vm9 = vcmask 261120  }
  0x1b   : > { %v354_v7 = vrot.slane %v5730_v3, %v294_v5  ;;  %v295_v8 = vrot.slane %v277_v4, %v294_v5  ;;  %v358_v9 = vrot.slane %v5730_v3, %v298_v6  ;;  %v299_v10 = vrot.slane %v277_v4, %v298_v6  ;;  %s276_s9 = scalar_lea.vmem %s10717_s0, %s5736_s22  ;;  %s5737_s22 = sshll.u32 %s7106_s28, 9 }
  0x1c   : > { %v7157_v11 = vld [vmem:[%s276_s9 + $0x8] sm:$0xff]  ;;  %v7159_v12 = vld [vmem:[%s276_s9] sm:$0xff]  ;;  %vm5642_vm10 = vcmask 523264  }
  0x1d   : > { %359 = vrot.lane.b32.xlu1 %v354_v7, %s7033_s17  ;;  %300 = vrot.lane.b32.xlu0 %v295_v8, %s7034_s18  ;;  %v603_v6 = vand.u32 4294901760, %v7157_v11 }
  0x21   : > { %361 = vrot.lane.b32.xlu1 %v358_v9, %s7033_s17  ;;  %302 = vrot.lane.b32.xlu0 %v299_v10, %s7034_s18 }
  0x25   : > { %392 = vrot.lane.b32.xlu1 %v299_v10, %s7035_s19  ;;  %390 = vrot.lane.b32.xlu0 %v295_v8, %s7035_s19 }
  0x29   : > { %427 = vrot.lane.b32.xlu1 %v358_v9, %s7036_s21  ;;  %425 = vrot.lane.b32.xlu0 %v354_v7, %s7036_s21 }
  0x2d   : > { %456 = vrot.lane.b32.xlu1 %v299_v10, %s7037_s23  ;;  %454 = vrot.lane.b32.xlu0 %v295_v8, %s7037_s23 }
  0x31   : > { %504 = vrot.lane.b32.xlu1 %v358_v9, %s7038_s13  ;;  %502 = vrot.lane.b32.xlu0 %v354_v7, %s7038_s13  ;;  %v528_v7 = vld [vmem:[%s10718_s1] sm:$0xff]  ;;  %v10731_v9 = vand.u32 4294901760, %v7159_v12 }
  0x32   : > { %v576_v13 = vsel %vm574_vm7, %v528_v7, 0 }
  0x35   : > { %338 = vrot.lane.b32.xlu1 %v7157_v11, %s7039_s14  ;;  %336 = vrot.lane.b32.xlu0 %v7159_v12, %s7039_s14 }
  0x39   : > { %334 = vrot.lane.b32.xlu1 %v10729_v1, %s7039_s14 }
  0x3d   : > { %488 = vrot.lane.b32.xlu1 %v7157_v11, %s7041_s15 }
  0x8f   : > { %v360_v14 = vpop.permute.xlu1 %359  ;;  %v301_v15 = vpop.permute.xlu0 %300 }
  0x90   : > { %v7169_v16 = vmul.f32 0.0, %v301_v15  ;;  %v7177_v19 = vmul.f32 0.0, %v360_v14 }
  0x92   : > { %315 = vrot.lane.b32.xlu0 %v7169_v16, %s7038_s13 }
  0x93   : > { %v7173_v17 = vpop.permute.xlu1 %361  ;;  %v7175_v18 = vpop.permute.xlu0 %302 }
  0x94   : > { %11057 = vst [vmem:[#allocation10_spill] sm:$0xff] %v7173_v17  ;;  %v311_v20 = vmul.f32 %v7175_v18, %v7157_v11  ;;  %v370_v23 = vmul.f32 %v7173_v17, %v7157_v11  ;;  %v7201_v31 = vsel %vm304_vm0, %v301_v15, %v7175_v18  ;;  %v7214_v35 = vsel %vm363_vm1, %v360_v14, %v7173_v17 }
  0x95   : > { %v310_v34 = vmul.f32 %v7201_v31, %v7159_v12  ;;  %v369_v37 = vmul.f32 %v7214_v35, %v7159_v12 }
  0x96   : > { %319 = vrot.lane.b32.xlu1 %v311_v20, %s7038_s13  ;;  %374 = vrot.lane.b32.xlu0 %v7177_v19, %s7037_s23 }
  0x97   : > { %v7184_v21 = vpop.permute.xlu1 %392  ;;  %v391_v22 = vpop.permute.xlu0 %390 }
  0x98   : > { %11058 = vst [vmem:[#allocation11_spill] sm:$0xff] %v7184_v21  ;;  %v401_v26 = vmul.f32 %v7184_v21, %v7157_v11  ;;  %v399_v29 = vmul.f32 0.0, %v391_v22  ;;  %v7227_v40 = vsel %vm394_vm2, %v391_v22, %v7184_v21 }
  0x99   : > { %11064 = vst [vmem:[#allocation17_spill] sm:$0xff] %v7227_v40  ;;  %v400_v44 = vmul.f32 %v7227_v40, %v7159_v12 }
  0x9a   : > { %378 = vrot.lane.b32.xlu1 %v370_v23, %s7037_s23  ;;  %v529_v23 = vld [vmem:[%s10718_s1 + $0x8] sm:$0xff] }
  0x9b   : > { %v428_v24 = vpop.permute.xlu1 %427  ;;  %v7189_v25 = vpop.permute.xlu0 %425 }
  0x9c   : > { %11059 = vst [vmem:[#allocation12_spill] sm:$0xff] %v7189_v25  ;;  %v433_v27 = vmul.f32 %v7189_v25, %v7159_v12  ;;  %v7206_v32 = vmul.f32 0.0, %v428_v24  ;;  %v7245_v45 = vsel %vm411_vm5, %v7189_v25, %v428_v24 }
  0x9d   : > { %11067 = vst [vmem:[#allocation20_spill] sm:$0xff] %v7245_v45  ;;  %v434_v47 = vmul.f32 %v7245_v45, %v7157_v11 }
  0x9e   : > { %409 = vrot.lane.b32.xlu1 %v401_v26, %s7036_s21  ;;  %439 = vrot.lane.b32.xlu0 %v433_v27, %s7035_s19  ;;  %11061 = vst [vmem:[#allocation14_spill] sm:$0xff] %v7206_v32  ;;  %v7336_v27 = vsub.f32 %v7159_v12, %v10731_v9 }
  0x9f   : > { %v457_v28 = vpop.permute.xlu1 %456  ;;  %v7208_v33 = vpop.permute.xlu0 %454 }
  0xa0   : > { %v7197_v30 = vmul.f32 0.0, %v457_v28  ;;  %11062 = vst [vmem:[#allocation15_spill] sm:$0xff] %v7208_v33  ;;  %v462_v36 = vmul.f32 %v7208_v33, %v7159_v12  ;;  %v7231_v41 = vsel %vm380_vm3, %v7208_v33, %v457_v28  ;;  %v7338_v28 = vand.u32 4294901760, %v576_v13 }
  0xa1   : > { %11065 = vst [vmem:[#allocation18_spill] sm:$0xff] %v7231_v41  ;;  %v463_v43 = vmul.f32 %v7231_v41, %v7157_v11 }
  0xa2   : > { %11060 = vst [vmem:[#allocation13_spill] sm:$0xff] %v7197_v30  ;;  %405 = vrot.lane.b32.xlu1 %v399_v29, %s7036_s21  ;;  %472 = vrot.lane.b32.xlu0 %v7197_v30, %s7033_s17 }
  0xa3   : > { %v505_v38 = vpop.permute.xlu1 %504  ;;  %v7223_v39 = vpop.permute.xlu0 %502 }
  0xa4   : > { %11063 = vst [vmem:[#allocation16_spill] sm:$0xff] %v7223_v39  ;;  %v7237_v42 = vsel %vm321_vm4, %v7223_v39, %v505_v38  ;;  %v510_v48 = vmul.f32 %v7223_v39, %v7159_v12  ;;  %v7268_v51 = vmul.f32 0.0, %v505_v38 }
  0xa5   : > { %11066 = vst [vmem:[#allocation19_spill] sm:$0xff] %v7237_v42  ;;  %v511_v46 = vmul.f32 %v7237_v42, %v7157_v11 }
  0xa6   : > { %443 = vrot.lane.b32.xlu1 %v7206_v32, %s7035_s19  ;;  %317 = vrot.lane.b32.xlu0 %v310_v34, %s7038_s13  ;;  %11068 = vst [vmem:[#allocation21_spill] sm:$0xff] %v7268_v51 }
  0xa7   : > { %v339_v54 = vpop.permute.xlu1 %338  ;;  %v337_v56 = vpop.permute.xlu0 %336 }
  0xa8   : > { %v342_v62 = vsel %vm340_vm6, %v337_v56, %v339_v54 }
  0xa9   : > { %v591_v2 = vand.u32 4294901760, %v342_v62 }
  0xaa   : > { %468 = vrot.lane.b32.xlu1 %v462_v36, %s7033_s17  ;;  %376 = vrot.lane.b32.xlu0 %v369_v37, %s7037_s23 }
  0xab   : > { %v335_v55 = vpop.permute.xlu1 %334  ;;  %v7318_v8 = vsub.f32 %v342_v62, %v591_v2 }
  0xac   : > { %v341_v3 = vsel %vm340_vm6, %v335_v55, %v337_v56 }
  0xad   : > { %v593_v10 = vand.u32 4294901760, %v341_v3  ;;  %v10727_v22 = vand.u32 4294901760, %v7318_v8 }
  0xae   : > { %470 = vrot.lane.b32.xlu1 %v463_v43, %s7033_s17  ;;  %407 = vrot.lane.b32.xlu0 %v400_v44, %s7036_s21  ;;  %v579_v44 = vsel %vm574_vm7, %v529_v23, 0 }
  0xaf   : > { %v7308_v57 = vpop.permute.xlu1 %488 }
  0xb2   : > { %518 = vrot.lane.b32.xlu1 %v511_v46, %s7034_s18  ;;  %441 = vrot.lane.b32.xlu0 %v434_v47, %s7035_s19  ;;  %v7353_v46 = vsub.f32 %v7318_v8, %v10727_v22  ;;  %v7357_v47 = vsub.f32 %v576_v13, %v7338_v28 }
  0xb4   : > { %v10732_v7 = vand.u32 4294901760, %v7357_v47 }
  0xb6   : > { %516 = vrot.lane.b32.xlu1 %v510_v48, %s7034_s18  ;;  %490 = vrot.lane.b32.xlu0 %v10729_v1, %s7041_s15  ;;  %v10725_v48 = vand.u32 4294901760, %v7336_v27 }
  0xba   : > { %561 = vperm.xlu1 %6922, %v551_v49   ;;  %486 = vrot.lane.b32.xlu0 %v7159_v12, %s7041_s15 }
  0xbe   : > { %566 = vperm.xlu1 %6922, %v552_v50   ;;  %520 = vrot.lane.b32.xlu0 %v7268_v51, %s7034_s18  ;;  %v7362_v50 = vand.u32 4294901760, %v579_v44 }
  0xc0   : > { %v7390_v13 = vsub.f32 %v579_v44, %v7362_v50  ;;  %v531_v44 = vld [vmem:[%s10718_s1 + $0x18] sm:$0xff] }
  0xc2   : > { %1475 = vrot.lane.b32.xlu1 %v7169_v16, %s7038_s13  ;;  %556 = vperm.xlu0 %6921, %v550_v52   ;;  %v530_v52 = vld [vmem:[%s10718_s1 + $0x10] sm:$0xff] }
  0xc6   : > { %1487 = vrot.lane.b32.xlu1 %v7169_v16, %s7038_s13  ;;  %571 = vperm.xlu0 %6921, %v553_v53  }
  0xca   : > { %6924 = vrot.lane.b32.xlu1 %v10729_v1, %s7039_s14  ;;  %1481 = vrot.lane.b32.xlu0 %v7169_v16, %s7038_s13 }
  0xce   : > { %1631 = vrot.lane.b32.xlu1 %v7177_v19, %s7037_s23  ;;  %1493 = vrot.lane.b32.xlu0 %v7169_v16, %s7038_s13  ;;  %v7325_v16 = vsub.f32 %v7157_v11, %v603_v6 }
  0xd0   : > { %v10726_v43 = vand.u32 4294901760, %v7325_v16 }
  0xd2   : > { %1643 = vrot.lane.b32.xlu1 %v7177_v19, %s7037_s23  ;;  %6929 = vrot.lane.b32.xlu0 %v10729_v1, %s7039_s14  ;;  %v7371_v55 = vsub.f32 %v7325_v16, %v10726_v43 }
  0xd6   : > { %1715 = vrot.lane.b32.xlu1 %v399_v29, %s7036_s21  ;;  %1637 = vrot.lane.b32.xlu0 %v7177_v19, %s7037_s23 }
  0xda   : > { %1727 = vrot.lane.b32.xlu1 %v399_v29, %s7036_s21  ;;  %1649 = vrot.lane.b32.xlu0 %v7177_v19, %s7037_s23 }
  0xde   : > { %1721 = vrot.lane.b32.xlu0 %v399_v29, %s7036_s21 }
  0xe2   : > { %1733 = vrot.lane.b32.xlu0 %v399_v29, %s7036_s21  ;;  %v7340_v29 = vsub.f32 %v341_v3, %v593_v10 }
  0xe4   : > { %v10728_v49 = vand.u32 4294901760, %v7340_v29 }
  0xe6   : > { %1819 = vrot.lane.b32.xlu0 %v7206_v32, %s7035_s19 }
  0xea   : > { %1825 = vrot.lane.b32.xlu0 %v7206_v32, %s7035_s19 }
  0xee   : > { %1831 = vrot.lane.b32.xlu0 %v7206_v32, %s7035_s19 }
 0x104   : > { %v316_v58 = vpop.permute.xlu0 %315 }
 0x108   : > { %v320_v59 = vpop.permute.xlu1 %319  ;;  %v375_v60 = vpop.permute.xlu0 %374 }
 0x10c   : > { %v379_v61 = vpop.permute.xlu1 %378 }
 0x110   : > { %v410_v63 = vpop.permute.xlu1 %409  ;;  %v440_v0 = vpop.permute.xlu0 %439 }
 0x114   : > { %v406_v4 = vpop.permute.xlu1 %405  ;;  %v7312_v5 = vpop.permute.xlu0 %472 }
 0x118   : > { %v444_v14 = vpop.permute.xlu1 %443  ;;  %v318_v15 = vpop.permute.xlu0 %317 }
 0x119   : > { %v322_v19 = vsel %vm321_vm4, %v316_v58, %v318_v15  ;;  %v323_v20 = vsel %vm321_vm4, %v318_v15, %v320_v59 }
 0x11a   : > { %v587_v24 = vand.u32 4294901760, %v323_v20  ;;  %v589_v26 = vand.u32 4294901760, %v322_v19 }
 0x11c   : > { %v7342_v34 = vpop.permute.xlu1 %468  ;;  %v377_v36 = vpop.permute.xlu0 %376  ;;  %v7344_v37 = vpack.c.bf16 %v591_v2, %v587_v24  ;;  %v7346_v38 = vpack.c.bf16 %v593_v10, %v589_v26  ;;  %v582_v10 = vsel %vm574_vm7, %v530_v52, 0  ;;  %v7392_v15 = vsub.f32 %v323_v20, %v587_v24 }
 0x11d   : > { %v382_v53 = vsel %vm380_vm3, %v377_v36, %v379_v61  ;;  %v381_v56 = vsel %vm380_vm3, %v375_v60, %v377_v36  ;;  %v7381_v61 = vsub.f32 %v7336_v27, %v10725_v48  ;;  %v7387_v60 = vsub.f32 %v7340_v29, %v10728_v49 }
 0x11e   : > { %6003 = vmatprep.subr.bf16.mxu0 %v7344_v37  ;;  %v7394_v23 = vsub.f32 %v322_v19, %v589_v26  ;;  %v597_v36 = vand.u32 4294901760, %v381_v56  ;;  %v7401_v49 = vand.u32 4294901760, %v582_v10  ;;  %v7411_v26 = vsub.f32 %v7357_v47, %v10732_v7 }
 0x11f   : > { %6005 = vmatpush1.bf16.msra.mxu0 %v7346_v38  ;;  %v11069_v48 = vand.u32 4294901760, %v7159_v12  ;;  %v11081_v40 = vand.u32 4294901760, %v7387_v60 }
 0x120   : > { %v408_v54 = vpop.permute.xlu0 %407  ;;  %v471_v2 = vpop.permute.xlu1 %470  ;;  %v7437_v39 = vsub.f32 %v582_v10, %v7401_v49 }
 0x121   : > { %v412_v58 = vsel %vm411_vm5, %v406_v4, %v408_v54  ;;  %v413_v59 = vsel %vm411_vm5, %v408_v54, %v410_v63  ;;  %v595_v4 = vand.u32 4294901760, %v382_v53 }
 0x122   : > { %v599_v3 = vand.u32 4294901760, %v413_v59  ;;  %v601_v63 = vand.u32 4294901760, %v412_v58 }
 0x124   : > { %v442_v54 = vpop.permute.xlu0 %441  ;;  %v7399_v22 = vpack.c.bf16 %v599_v3, %v595_v4  ;;  %v7406_v19 = vpack.c.bf16 %v601_v63, %v597_v36  ;;  %v519_v62 = vpop.permute.xlu1 %518  ;;  %v7439_v11 = vsub.f32 %v412_v58, %v601_v63  ;;  %v7453_v58 = vsub.f32 %v381_v56, %v597_v36 }
 0x125   : > { %v445_v52 = vsel %vm394_vm2, %v440_v0, %v442_v54  ;;  %v446_v43 = vsel %vm394_vm2, %v442_v54, %v444_v14  ;;  %v475_v0 = vsel %vm363_vm1, %v471_v2, %v7312_v5  ;;  %v7415_v14 = vsub.f32 %v413_v59, %v599_v3 }
 0x126   : > { %v607_v20 = vand.u32 4294901760, %v446_v43  ;;  %v609_v24 = vand.u32 4294901760, %v445_v52  ;;  %6007 = vmatprep.subr.bf16.mxu0 %v7399_v22  ;;  %v585_v59 = vsel %vm574_vm7, %v531_v44, 0  ;;  %v7428_v3 = vsub.f32 %v382_v53, %v595_v4 }
 0x127   : > { %6009 = vmatpush1.bf16.msra.mxu0 %v7406_v19  ;;  %v611_v42 = vand.u32 4294901760, %v475_v0  ;;  %v674_v44 = vand.u32 4294901760, %v7411_v26  ;;  %v474_v53 = vsel %vm363_vm1, %v7342_v34, %v471_v2  ;;  %v11071_v26 = vand.u32 4294901760, %v7392_v15 }
 0x128   : > { %v491_v9 = vpop.permute.xlu0 %490  ;;  %v7424_v7 = vpack.c.bf16 %v607_v20, %v603_v6  ;;  %v7434_v1 = vpack.c.bf16 %v609_v24, %v11069_v48  ;;  %v7445_v4 = vsub.f32 %v446_v43, %v607_v20  ;;  %v11070_v48 = vand.u32 4294901760, %v7394_v23  ;;  %v517_v33 = vpop.permute.xlu1 %516 }
 0x129   : > { %v494_v54 = vsel %vm492_vm8, %v7308_v57, %v491_v9  ;;  %v7448_v9 = vand.u32 4294901760, %v585_v59  ;;  %v717_v34 = vsub.f32 %v7392_v15, %v11071_v26  ;;  %v11072_v20 = vand.u32 4294901760, %v7390_v13 }
 0x12a   : > { %v615_v6 = vand.u32 4294901760, %v494_v54  ;;  %6011 = vmatprep.subr.bf16.mxu0 %v7424_v7  ;;  %v723_v10 = vsub.f32 %v7394_v23, %v11070_v48  ;;  %v613_v36 = vand.u32 4294901760, %v474_v53  ;;  %v7471_v51 = vsub.f32 %v445_v52, %v609_v24 }
 0x12b   : > { %6013 = vmatpush1.bf16.msra.mxu0 %v7434_v1  ;;  %v7467_v48 = vsub.f32 %v7390_v13, %v11072_v20  ;;  %v7481_v2 = vsub.f32 %v585_v59, %v7448_v9  ;;  %v718_v24 = vand.u32 4294901760, %v717_v34  ;;  %v7486_v32 = vsub.f32 %v475_v0, %v611_v42 }
 0x12c   : > { %v487_v63 = vpop.permute.xlu0 %486  ;;  %v7456_v5 = vpack.c.bf16 %v615_v6, %v611_v42  ;;  %v7474_v26 = vsub.f32 %v494_v54, %v615_v6  ;;  %v724_v30 = vand.u32 4294901760, %v723_v10  ;;  %v522_v54 = vsel %vm304_vm0, %v517_v33, %v519_v62 }
 0x12d   : > { %v493_v43 = vsel %vm492_vm8, %v487_v63, %v7308_v57  ;;  %v11073_v57 = vand.u32 4294901760, %v7415_v14  ;;  %v11075_v59 = vand.u32 4294901760, %v7439_v11  ;;  %v11077_v10 = vand.u32 4294901760, %v7453_v58 }
 0x12e   : > { %v617_v41 = vand.u32 4294901760, %v493_v43  ;;  %6015 = vmatprep.subr.bf16.mxu0 %v7456_v5  ;;  %v11079_v33 = vand.u32 4294901760, %v7353_v46  ;;  %v6020_v17 = vpack.c.bf16 %v11081_v40, %v724_v30  ;;  %v772_v30 = vand.u32 4294901760, %v7381_v61 }
 0x12f   : > { %v753_v63 = vsub.f32 %v7415_v14, %v11073_v57  ;;  %v11074_v57 = vand.u32 4294901760, %v7428_v3  ;;  %v759_v45 = vsub.f32 %v7439_v11, %v11075_v59  ;;  %v7510_v59 = vsub.f32 %v474_v53, %v613_v36 }
 0x130   : > { %v521_v12 = vpop.permute.xlu0 %520  ;;  %v7484_v52 = vpack.c.bf16 %v617_v41, %v613_v36  ;;  %v7497_v25 = vsub.f32 %v493_v43, %v617_v41  ;;  %v7512_v41 = vand.u32 4294901760, %v522_v54  ;;  %v11078_v43 = vand.u32 4294901760, %v7437_v39 }
 0x131   : > { %v523_v6 = vsel %vm304_vm0, %v519_v62, %v521_v12  ;;  %v741_v20 = vsub.f32 %v7428_v3, %v11074_v57  ;;  %v754_v42 = vand.u32 4294901760, %v753_v63  ;;  %v11076_v62 = vand.u32 4294901760, %v7445_v4 }
 0x132   : > { %v7499_v34 = vand.u32 4294901760, %v523_v6  ;;  %6017 = vmatpush1.bf16.msra.mxu0 %v7484_v52  ;;  %v685_v12 = vand.u32 4294901760, %v7467_v48  ;;  %v747_v57 = vsub.f32 %v7453_v58, %v11077_v10  ;;  %v695_v63 = vsub.f32 %v7437_v39, %v11078_v43 }
 0x133   : > { %v777_v0 = vsub.f32 %v7445_v4, %v11076_v62  ;;  %v6018_v56 = vpack.c.bf16 %v11079_v33, %v718_v24  ;;  %v742_v62 = vand.u32 4294901760, %v741_v20  ;;  %v11080_v10 = vand.u32 4294901760, %v7471_v51 }
 0x134   : > { %620 = vmatprep.subr.mxu0 %v7499_v34  ;;  %v760_v43 = vand.u32 4294901760, %v759_v45  ;;  %v7530_v46 = vsub.f32 %v523_v6, %v7499_v34  ;;  %v11082_v33 = vand.u32 4294901760, %v7474_v26  ;;  %v748_v36 = vand.u32 4294901760, %v747_v57 }
 0x135   : > { %v783_v53 = vsub.f32 %v7471_v51, %v11080_v10  ;;  %v6022_v20 = vpack.c.bf16 %v754_v42, %v742_v62  ;;  %v778_v24 = vand.u32 4294901760, %v777_v0  ;;  %v794_v10 = vand.u32 4294901760, %v7510_v59 }
 0x136   : > { %622 = vmatpush1.msra.mxu0 %v7512_v41  ;;  %v801_v21 = vsub.f32 %v7474_v26, %v11082_v33  ;;  %v11083_v48 = vmov 0.0   ;;  %v11084_v40 = vand.u32 4294901760, %v7486_v32  ;;  %v696_v60 = vand.u32 4294901760, %v695_v63 }
 0x137   : > { %6019 = vmatprep.subr.bf16.mxu0 %v6018_v56  ;;  %675 = vmatmul.mubr.f32.vlgmr.msra.gmra.mrb[0].mxu0 %v674_v44  ;;  %v7542_v44 = vsub.f32 %v522_v54, %v7512_v41  ;;  %v11085_v56 = vand.u32 4294901760, %v7497_v25  ;;  %v6024_v42 = vpack.c.bf16 %v760_v43, %v748_v36  ;;  %v11086_v0 = vand.u32 4294901760, %v7371_v55 }
 0x138   : > { %6021 = vmatpush1.bf16.msra.mxu0 %v6020_v17  ;;  %680 = vmatprep.mubr.f32.mxu0 %v11083_v48  ;;  %v789_v45 = vsub.f32 %v7486_v32, %v11084_v40  ;;  %v784_v17 = vand.u32 4294901760, %v783_v53  ;;  %v802_v62 = vand.u32 4294901760, %v801_v21  ;;  %v812_v61 = vand.u32 4294901760, %v7530_v46 }
 0x139   : > { %6023 = vmatprep.subr.bf16.mxu0 %v6022_v20  ;;  %v807_v6 = vsub.f32 %v7497_v25, %v11085_v56  ;;  %v6026_v57 = vpack.c.bf16 %v778_v24, %v11086_v0  ;;  %v11087_v20 = vand.u32 4294901760, %v7481_v2  ;;  %v795_v54 = vsub.f32 %v7510_v59, %v794_v10 }
 0x13a   : > { %v790_v53 = vand.u32 4294901760, %v789_v45  ;;  %v818_v55 = vand.u32 4294901760, %v7542_v44  ;;  %v813_v43 = vsub.f32 %v7530_v46, %v812_v61  ;;  %v6042_v0 = vpack.c.bf16 %v7445_v4, %v7325_v16 }
 0x13b   : > { %686 = vmatmul.mubr.f32.gmra.mrb[2].mxu0 %v685_v12  ;;  %v706_v63 = vsub.f32 %v7481_v2, %v11087_v20  ;;  %v808_v36 = vand.u32 4294901760, %v807_v6  ;;  %v6028_v12 = vpack.c.bf16 %v784_v17, %v772_v30  ;;  %v796_v33 = vand.u32 4294901760, %v795_v54 }
 0x13c   : > { %6025 = vmatpush1.bf16.msra.mxu0 %v6024_v42  ;;  %691 = vmatprep.mubr.f32.mxu0 %v11083_v48  ;;  %v6030_v21 = vpack.c.bf16 %v802_v62, %v790_v53  ;;  %v819_v40 = vsub.f32 %v7542_v44, %v818_v55  ;;  %v814_v56 = vand.u32 4294901760, %v813_v43  ;;  %v6036_v6 = vpack.c.bf16 %v7340_v29, %v7394_v23 }
 0x13d   : > { %6027 = vmatprep.subr.bf16.mxu0 %v6026_v57  ;;  %v707_v24 = vand.u32 4294901760, %v706_v63  ;;  %v6032_v45 = vpack.c.bf16 %v808_v36, %v796_v33  ;;  %v6038_v42 = vpack.c.bf16 %v7415_v14, %v7428_v3  ;;  %v6040_v17 = vpack.c.bf16 %v7439_v11, %v7453_v58 }
 0x13e   : > { %v820_v30 = vand.u32 4294901760, %v819_v40  ;;  %v6044_v57 = vpack.c.bf16 %v7471_v51, %v7336_v27  ;;  %v6046_v62 = vpack.c.bf16 %v7474_v26, %v7486_v32  ;;  %v6048_v20 = vpack.c.bf16 %v7497_v25, %v7510_v59 }
 0x13f   : > { %697 = vmatmul.mubr.f32.gmra.mrb[4].mxu0 %v696_v60  ;;  %v6034_v60 = vpack.c.bf16 %v7318_v8, %v7392_v15  ;;  %v11088_v63 = vand.u32 4294901760, %v7392_v15  ;;  %v11089_v54 = vand.u32 4294901760, %v7318_v8  ;;  %v11090_v36 = vand.u32 4294901760, %v7394_v23 }
 0x140   : > { %6029 = vmatpush1.bf16.msra.mxu0 %v6028_v12  ;;  %702 = vmatprep.mubr.f32.mxu0 %v11083_v48  ;;  %v11091_v12 = vand.u32 4294901760, %v7340_v29  ;;  %v11092_v43 = vand.u32 4294901760, %v7357_v47  ;;  %v11094_v33 = vand.u32 4294901760, %v7415_v14  ;;  %v11095_v8 = vand.u32 4294901760, %v7453_v58 }
 0x141   : > { %6031 = vmatprep.subr.bf16.mxu0 %v6030_v21  ;;  %v6066_v53 = vpack.c.bf16 %v11089_v54, %v11088_v63  ;;  %v11096_v15 = vand.u32 4294901760, %v7439_v11  ;;  %v11097_v29 = vand.u32 4294901760, %v7325_v16  ;;  %v11100_v14 = vand.u32 4294901760, %v7336_v27 }
 0x142   : > { %v6068_v21 = vpack.c.bf16 %v11091_v12, %v11090_v36  ;;  %v11102_v11 = vand.u32 4294901760, %v7486_v32  ;;  %v11110_v12 = vld [vmem:[#allocation12_spill] sm:$0xff] }
 0x143   : > { %708 = vmatmul.mubr.f32.gmra.mrb[6].mxu0 %v707_v24  ;;  %v11093_v24 = vand.u32 4294901760, %v7428_v3  ;;  %v6072_v23 = vpack.c.bf16 %v11096_v15, %v11095_v8  ;;  %v11101_v3 = vand.u32 4294901760, %v7471_v51  ;;  %v11106_v51 = vand.u32 4294901760, %v7481_v2  ;;  %v11111_v15 = vld [vmem:[#allocation20_spill] sm:$0xff] }
 0x144   : > { %6033 = vmatpush1.bf16.msra.mxu0 %v6032_v45  ;;  %868 = vmatprep.mubr.f32.mxu0 %v11083_v48  ;;  %v11098_v45 = vand.u32 4294901760, %v7445_v4  ;;  %v11104_v4 = vand.u32 4294901760, %v7437_v39 }
 0x145   : > { %815 = vmatprep.subr.mxu0 %v814_v56  ;;  %v6070_v40 = vpack.c.bf16 %v11094_v33, %v11093_v24  ;;  %v11099_v56 = vand.u32 4294901760, %v7390_v13  ;;  %v6076_v58 = vpack.c.bf16 %v11101_v3, %v11100_v14 }
 0x148   : > { %821 = vmatpush1.msra.mxu0 %v820_v30  ;;  %v11103_v30 = vand.u32 4294901760, %v7474_v26 }
 0x149   : > { %6035 = vmatprep.subr.bf16.mxu0 %v6034_v60  ;;  %870 = vmatmul.mubr.f32.vlgmr.msra.gmra.mrb[0].mxu0 %v7338_v28 }
 0x14a   : > { %6037 = vmatpush1.bf16.msra.mxu0 %v6036_v6  ;;  %875 = vmatprep.mubr.f32.mxu0 %v11083_v48  ;;  %v6078_v16 = vpack.c.bf16 %v11103_v30, %v11102_v11 }
 0x14b   : > { %6039 = vmatprep.subr.bf16.mxu0 %v6038_v42  ;;  %v11108_v42 = vld [vmem:[#allocation17_spill] sm:$0xff] }
 0x14d   : > { %877 = vmatmul.mubr.f32.gmra.mrb[2].mxu0 %v7362_v50 }
 0x14e   : > { %6041 = vmatpush1.bf16.msra.mxu0 %v6040_v17  ;;  %882 = vmatprep.mubr.f32.mxu0 %v11083_v48 }
 0x14f   : > { %6043 = vmatprep.subr.bf16.mxu0 %v6042_v0 }
 0x151   : > { %884 = vmatmul.mubr.f32.gmra.mrb[4].mxu0 %v7401_v49 }
 0x152   : > { %6045 = vmatpush1.bf16.msra.mxu0 %v6044_v57  ;;  %889 = vmatprep.mubr.f32.mxu0 %v11083_v48  ;;  %v11109_v57 = vld [vmem:[#allocation11_spill] sm:$0xff] }
 0x153   : > { %6047 = vmatprep.subr.bf16.mxu0 %v6046_v62 }
 0x155   : > { %891 = vmatmul.mubr.f32.gmra.mrb[6].mxu0 %v7448_v9 }
 0x156   : > { %6049 = vmatpush1.bf16.msra.mxu0 %v6048_v20  ;;  %997 = vmatprep.mubr.f32.mxu0 %v11083_v48 }
 0x157   : > { %947 = vmatprep.subr.mxu0 %v7530_v46 }
 0x15a   : > { %950 = vmatpush1.msra.mxu0 %v7542_v44 }
 0x15b   : > { %6051 = vmatprep.subr.bf16.mxu0 %v7344_v37  ;;  %1000 = vmatmul.mubr.f32.vlgmr.msra.gmra.mrb[0].mxu0 %v7357_v47  ;;  %v6074_v47 = vpack.c.bf16 %v11098_v45, %v11097_v29 }
 0x15c   : > { %6053 = vmatpush1.bf16.msra.mxu0 %v7346_v38  ;;  %1005 = vmatprep.mubr.f32.mxu0 %v11083_v48 }
 0x15d   : > { %6055 = vmatprep.subr.bf16.mxu0 %v7399_v22 }
 0x15f   : > { %1008 = vmatmul.mubr.f32.gmra.mrb[2].mxu0 %v7390_v13  ;;  %v11105_v13 = vand.u32 4294901760, %v7497_v25 }
 0x160   : > { %6057 = vmatpush1.bf16.msra.mxu0 %v7406_v19  ;;  %1013 = vmatprep.mubr.f32.mxu0 %v11083_v48 }
 0x161   : > { %6059 = vmatprep.subr.bf16.mxu0 %v7424_v7  ;;  %v6080_v27 = vpack.c.bf16 %v11105_v13, %v794_v10 }
 0x163   : > { %1016 = vmatmul.mubr.f32.gmra.mrb[4].mxu0 %v7437_v39 }
 0x164   : > { %6061 = vmatpush1.bf16.msra.mxu0 %v7434_v1  ;;  %1021 = vmatprep.mubr.f32.mxu0 %v11083_v48 }
 0x165   : > { %6063 = vmatprep.subr.bf16.mxu0 %v7456_v5 }
 0x167   : > { %1024 = vmatmul.mubr.f32.gmra.mrb[6].mxu0 %v7481_v2 }
 0x168   : > { %6065 = vmatpush1.bf16.msra.mxu0 %v7484_v52  ;;  %1112 = vmatprep.mubr.f32.mxu0 %v11083_v48 }
 0x169   : > { %1063 = vmatprep.subr.mxu0 %v7499_v34 }
 0x16c   : > { %1065 = vmatpush1.msra.mxu0 %v7512_v41 }
 0x16d   : > { %6067 = vmatprep.subr.bf16.mxu0 %v6066_v53  ;;  %1116 = vmatmul.mubr.f32.vlgmr.msra.gmra.mrb[0].mxu0 %v11092_v43 }
 0x16e   : > { %6069 = vmatpush1.bf16.msra.mxu0 %v6068_v21  ;;  %1121 = vmatprep.mubr.f32.mxu0 %v11083_v48 }
 0x16f   : > { %6071 = vmatprep.subr.bf16.mxu0 %v6070_v40 }
 0x171   : > { %1125 = vmatmul.mubr.f32.gmra.mrb[2].mxu0 %v11099_v56 }
 0x172   : > { %6073 = vmatpush1.bf16.msra.mxu0 %v6072_v23  ;;  %1130 = vmatprep.mubr.f32.mxu0 %v11083_v48 }
 0x173   : > { %6075 = vmatprep.subr.bf16.mxu0 %v6074_v47 }
 0x175   : > { %1134 = vmatmul.mubr.f32.gmra.mrb[4].mxu0 %v11104_v4 }
 0x176   : > { %6077 = vmatpush1.bf16.msra.mxu0 %v6076_v58  ;;  %1139 = vmatprep.mubr.f32.mxu0 %v11083_v48 }
 0x177   : > { %6079 = vmatprep.subr.bf16.mxu0 %v6078_v16 }
 0x179   : > { %1143 = vmatmul.mubr.f32.gmra.mrb[6].mxu0 %v11106_v51 }
 0x17a   : > { %6081 = vmatpush1.bf16.msra.mxu0 %v6080_v27  ;;  %1267 = vmatprep.mubr.f32.mxu0 %v11083_v48 }
 0x17b   : > { %1216 = vmatprep.subr.mxu0 %v812_v61 }
 0x17e   : > { %1220 = vmatpush1.msra.mxu0 %v818_v55 }
 0x17f   : > { %6083 = vmatprep.subr.bf16.mxu0 %v7344_v37  ;;  %1269 = vmatmul.mubr.f32.vlgmr.msra.gmra.mrb[0].mxu0 %v7338_v28 }
 0x180   : > { %6085 = vmatpush1.bf16.msra.mxu0 %v7346_v38  ;;  %1274 = vmatprep.mubr.f32.mxu0 %v11083_v48 }
 0x181   : > { %6087 = vmatprep.subr.bf16.mxu0 %v7399_v22 }
 0x183   : > { %1276 = vmatmul.mubr.f32.gmra.mrb[2].mxu0 %v7362_v50 }
 0x184   : > { %6089 = vmatpush1.bf16.msra.mxu0 %v7406_v19  ;;  %1281 = vmatprep.mubr.f32.mxu0 %v11083_v48 }
 0x185   : > { %6091 = vmatprep.subr.bf16.mxu0 %v7424_v7 }
 0x187   : > { %1283 = vmatmul.mubr.f32.gmra.mrb[4].mxu0 %v7401_v49 }
 0x188   : > { %6093 = vmatpush1.bf16.msra.mxu0 %v7434_v1  ;;  %1288 = vmatprep.mubr.f32.mxu0 %v11083_v48  ;;  %v557_v1 = vpop.permute.xlu0 %556 }
 0x189   : > { %6095 = vmatprep.subr.bf16.mxu0 %v7456_v5 }
 0x18b   : > { %1290 = vmatmul.mubr.f32.gmra.mrb[6].mxu0 %v7448_v9 }
 0x18c   : > { %6097 = vmatpush1.bf16.msra.mxu0 %v7484_v52  ;;  %1378 = vmatprep.mubr.f32.mxu0 %v11083_v48 }
 0x18d   : > { %1329 = vmatprep.subr.mxu0 %v7499_v34  ;;  %v11107_v34 = vld [vmem:[#allocation10_spill] sm:$0xff] }
 0x190   : > { %1331 = vmatpush1.msra.mxu0 %v7512_v41  ;;  %v572_v41 = vpop.permute.xlu0 %571 }
 0x191   : > { %1380 = vmatmul.mubr.f32.vlgmr.msra.gmra.mrb[0].mxu0 %v7338_v28 }
 0x192   : > { %1385 = vmatprep.mubr.f32.mxu0 %v11083_v48 }
 0x195   : > { %1387 = vmatmul.mubr.f32.gmra.mrb[2].mxu0 %v7362_v50  ;;  %v562_v50 = vpop.permute.xlu1 %561 }
 0x196   : > { %1392 = vmatprep.mubr.f32.mxu0 %v11083_v48 }
 0x199   : > { %1394 = vmatmul.mubr.f32.gmra.mrb[4].mxu0 %v7401_v49  ;;  %v567_v44 = vpop.permute.xlu1 %566 }
 0x19a   : > { %1399 = vmatprep.mubr.f32.mxu0 %v11083_v48 }
 0x19d   : > { %1401 = vmatmul.mubr.f32.gmra.mrb[6].mxu0 %v7448_v9 }
 0x264   : > { %v1381_v25 = vpop.f32.mrb[0].mxu0 }
 0x265   : > { %v6726_v32 = vadd.f32 %v1381_v25, %v557_v1  ;;  %v1383_v39 = vpop.f32.mrb[1].mxu0 }
 0x266   : > { %v6727_v22 = vadd.f32 %v1383_v39, %v557_v1 }
 0x267   : > { %v7683_v37 = vmax.f32 %v6726_v32, 0.0 }
 0x268   : > { %v7685_v28 = vmax.f32 %v6727_v22, 0.0  ;;  %v1388_v38 = vpop.f32.mrb[2].mxu0 }
 0x269   : > { %v1390_v7 = vpop.f32.mrb[3].mxu0  ;;  %1549 = vrot.lane.b32.xlu1 %v7683_v37, %s7039_s14  ;;  %v1452_v49 = vmul.f32 %v7683_v37, %v7201_v31  ;;  %v1608_v2 = vmul.f32 %v7683_v37, %v7214_v35  ;;  %v6728_v46 = vadd.f32 %v1388_v38, %v562_v50  ;;  %v1692_v17 = vmul.f32 %v7683_v37, %v11108_v42 }
 0x26a   : > { %1551 = vrot.lane.b32.xlu0 %v7685_v28, %s7039_s14  ;;  %v1453_v5 = vmul.f32 %v7685_v28, %v7175_v18  ;;  %v6729_v26 = vadd.f32 %v1390_v7, %v562_v50  ;;  %v1609_v59 = vmul.f32 %v7685_v28, %v11107_v34  ;;  %v1693_v62 = vmul.f32 %v7685_v28, %v11109_v57 }
 0x26b   : > { %v7709_v20 = vmax.f32 %v6728_v46, 0.0  ;;  %v1791_v21 = vmul.f32 %v7683_v37, %v11110_v12  ;;  %v2288_v40 = vand.u32 4294901760, %v7685_v28  ;;  %v1792_v23 = vmul.f32 %v7685_v28, %v11111_v15 }
 0x26c   : > { %v1395_v19 = vpop.f32.mrb[4].mxu0  ;;  %v7705_v0 = vmax.f32 %v6729_v26, 0.0  ;;  %v10769_v29 = vand.u32 4294901760, %v7683_v37 }
 0x26d   : > { %v1397_v9 = vpop.f32.mrb[5].mxu0  ;;  %1477 = vrot.lane.b32.xlu1 %v1452_v49, %s7038_s13  ;;  %v6730_v60 = vadd.f32 %v1395_v19, %v567_v44  ;;  %v10768_v24 = vand.u32 4294901760, %v7709_v20  ;;  %v1794_v56 = vmul.f32 %v7709_v20, %v11110_v12  ;;  %v7758_v11 = vsub.f32 %v7685_v28, %v2288_v40 }
 0x26e   : > { %1479 = vrot.lane.b32.xlu0 %v1453_v5, %s7038_s13  ;;  %v6731_v6 = vadd.f32 %v1397_v9, %v567_v44  ;;  %v10770_v43 = vand.u32 4294901760, %v7705_v0  ;;  %v7773_v4 = vsub.f32 %v7683_v37, %v10769_v29  ;;  %v1456_v27 = vmul.f32 %v7705_v0, %v7175_v18  ;;  %v11129_v9 = vld [vmem:[#allocation21_spill] sm:$0xff] }
 0x26f   : > { %v7717_v53 = vmax.f32 %v6730_v60, 0.0  ;;  %v7752_v58 = vsub.f32 %v7709_v20, %v10768_v24  ;;  %11115 = vst [vmem:[#allocation12_spill] sm:$0xff] %v7758_v11  ;;  %v1455_v39 = vmul.f32 %v7709_v20, %v7201_v31  ;;  %v10765_v22 = vand.u32 4294901760, %v7758_v11 }
 0x270   : > { %v1402_v52 = vpop.f32.mrb[6].mxu0  ;;  %v7719_v36 = vmax.f32 %v6731_v6, 0.0  ;;  %v7741_v14 = vsub.f32 %v7705_v0, %v10770_v43  ;;  %11118 = vst [vmem:[#allocation23_spill] sm:$0xff] %v7773_v4  ;;  %v10760_v7 = vand.u32 4294901760, %v7773_v4  ;;  %v1612_v5 = vmul.f32 %v7705_v0, %v11107_v34 }
 0x271   : > { %v1404_v10 = vpop.f32.mrb[7].mxu0  ;;  %1633 = vrot.lane.b32.xlu1 %v1608_v2, %s7037_s23  ;;  %v6732_v61 = vadd.f32 %v1402_v52, %v572_v41  ;;  %v10757_v47 = vand.u32 4294901760, %v7717_v53  ;;  %11114 = vst [vmem:[#allocation11_spill] sm:$0xff] %v7752_v58  ;;  %v10763_v1 = vand.u32 4294901760, %v7752_v58  ;;  %v1611_v46 = vmul.f32 %v7709_v20, %v7214_v35 }
 0x272   : > { %v6733_v55 = vadd.f32 %v1404_v10, %v572_v41  ;;  %1635 = vrot.lane.b32.xlu0 %v1609_v59, %s7037_s23  ;;  %v10767_v45 = vand.u32 4294901760, %v7719_v36  ;;  %11112 = vst [vmem:[#allocation10_spill] sm:$0xff] %v7741_v14  ;;  %v10764_v51 = vand.u32 4294901760, %v7741_v14  ;;  %v1696_v10 = vmul.f32 %v7705_v0, %v11109_v57 }
 0x273   : > { %v7714_v54 = vmax.f32 %v6732_v61, 0.0  ;;  %v7778_v13 = vsub.f32 %v7717_v53, %v10757_v47  ;;  %v7816_v52 = vpack.c.bf16 %v10763_v1, %v10760_v7  ;;  %v1695_v44 = vmul.f32 %v7709_v20, %v11108_v42  ;;  %v2104_v47 = vld [vmem:[%s10720_s3 + $0x8] sm:$0xff] }
 0x274   : > { %v7711_v63 = vmax.f32 %v6733_v55, 0.0  ;;  %v7768_v16 = vsub.f32 %v7719_v36, %v10767_v45  ;;  %v7809_v26 = vpack.c.bf16 %v10764_v51, %v10765_v22  ;;  %v1795_v61 = vmul.f32 %v7705_v0, %v11111_v15  ;;  %v11132_v51 = vld [vmem:[#allocation16_spill] sm:$0xff] }
 0x275   : > { %1717 = vrot.lane.b32.xlu1 %v1692_v17, %s7036_s21  ;;  %v10756_v8 = vand.u32 4294901760, %v7714_v54  ;;  %11119 = vst [vmem:[#allocation24_spill] sm:$0xff] %v7778_v13  ;;  %v10758_v50 = vand.u32 4294901760, %v7778_v13  ;;  %11121 = vst [vmem:[#allocation26_spill] sm:$0xff] %v7816_v52  ;;  %v1459_v55 = vmul.f32 %v7719_v36, %v7175_v18  ;;  %v1615_v60 = vmul.f32 %v7719_v36, %v11107_v34 }
 0x276   : > { %1719 = vrot.lane.b32.xlu0 %v1693_v62, %s7036_s21  ;;  %v10766_v33 = vand.u32 4294901760, %v7711_v63  ;;  %11117 = vst [vmem:[#allocation22_spill] sm:$0xff] %v7768_v16  ;;  %v10759_v49 = vand.u32 4294901760, %v7768_v16  ;;  %11120 = vst [vmem:[#allocation25_spill] sm:$0xff] %v7809_v26  ;;  %v1458_v6 = vmul.f32 %v7717_v53, %v7201_v31  ;;  %v1699_v17 = vmul.f32 %v7719_v36, %v11109_v57 }
 0x277   : > { %v7763_v30 = vsub.f32 %v7714_v54, %v10756_v8  ;;  %v1614_v62 = vmul.f32 %v7717_v53, %v7214_v35  ;;  %v2034_v22 = vmul.f32 %v7709_v20, %v11132_v51  ;;  %v2031_v45 = vmul.f32 %v7683_v37, %v11132_v51 }
 0x278   : > { %v7747_v3 = vsub.f32 %v7711_v63, %v10766_v33  ;;  %v8041_v29 = vmul.f32 %v7717_v53, %v11132_v51  ;;  %v11141_v52 = vand.u32 4294901760, %v7709_v20  ;;  %v11143_v26 = vand.u32 4294901760, %v7719_v36 }
 0x279   : > { %1815 = vrot.lane.b32.xlu1 %v1791_v21, %s7035_s19  ;;  %11116 = vst [vmem:[#allocation20_spill] sm:$0xff] %v7763_v30  ;;  %v10761_v32 = vand.u32 4294901760, %v7763_v30  ;;  %v1698_v21 = vmul.f32 %v7717_v53, %v11108_v42 }
 0x27a   : > { %1557 = vrot.lane.b32.xlu0 %v7705_v0, %s7039_s14  ;;  %11113 = vst [vmem:[#allocation17_spill] sm:$0xff] %v7747_v3  ;;  %v10762_v25 = vand.u32 4294901760, %v7747_v3 }
 0x27b   : > { %v7828_v41 = vpack.c.bf16 %v10761_v32, %v10758_v50  ;;  %v11131_v32 = vld [vmem:[#allocation19_spill] sm:$0xff] }
 0x27c   : > { %v7822_v59 = vpack.c.bf16 %v10762_v25, %v10759_v49  ;;  %v2032_v25 = vmul.f32 %v7685_v28, %v11131_v32  ;;  %v8037_v24 = vmul.f32 %v7711_v63, %v11131_v32 }
 0x27d   : > { %1817 = vrot.lane.b32.xlu1 %v1792_v23, %s7035_s19  ;;  %11123 = vst [vmem:[#allocation28_spill] sm:$0xff] %v7828_v41  ;;  %v1462_v23 = vmul.f32 %v7711_v63, %v7175_v18  ;;  %v1461_v18 = vmul.f32 %v7714_v54, %v7201_v31  ;;  %v1701_v31 = vmul.f32 %v7714_v54, %v11108_v42  ;;  %v11126_v42 = vld [vmem:[#allocation18_spill] sm:$0xff] }
 0x27e   : > { %1821 = vrot.lane.b32.xlu0 %v1794_v56, %s7035_s19  ;;  %11122 = vst [vmem:[#allocation27_spill] sm:$0xff] %v7822_v59  ;;  %v7869_v56 = vpop.permute.xlu0 %1481 }
 0x281   : > { %1555 = vrot.lane.b32.xlu1 %v7709_v20, %s7039_s14 }
 0x282   : > { %1485 = vrot.lane.b32.xlu0 %v1456_v27, %s7038_s13  ;;  %v1798_v27 = vmul.f32 %v7719_v36, %v11111_v15 }
 0x285   : > { %1483 = vrot.lane.b32.xlu1 %v1455_v39, %s7038_s13  ;;  %v11124_v39 = vld [vmem:[#allocation14_spill] sm:$0xff] }
 0x286   : > { %1641 = vrot.lane.b32.xlu0 %v1612_v5, %s7037_s23  ;;  %v7877_v5 = vpop.permute.xlu0 %1493 }
 0x289   : > { %1639 = vrot.lane.b32.xlu1 %v1611_v46, %s7037_s23  ;;  %v1800_v46 = vmul.f32 %v7714_v54, %v11110_v12 }
 0x28a   : > { %1725 = vrot.lane.b32.xlu0 %v1696_v10, %s7036_s21  ;;  %v7887_v10 = vpop.permute.xlu0 %6929 }
 0x28d   : > { %1723 = vrot.lane.b32.xlu1 %v1695_v44, %s7036_s21  ;;  %v11125_v44 = vld [vmem:[#allocation13_spill] sm:$0xff] }
 0x28e   : > { %1561 = vrot.lane.b32.xlu0 %v7717_v53, %s7039_s14 }
 0x291   : > { %1823 = vrot.lane.b32.xlu1 %v1795_v61, %s7035_s19  ;;  %v1617_v61 = vmul.f32 %v7714_v54, %v7214_v35  ;;  %v1797_v35 = vmul.f32 %v7717_v53, %v11110_v12 }
 0x292   : > { %1491 = vrot.lane.b32.xlu0 %v1459_v55, %s7038_s13  ;;  %v1618_v55 = vmul.f32 %v7711_v63, %v11107_v34  ;;  %v1702_v34 = vmul.f32 %v7711_v63, %v11109_v57  ;;  %v1879_v57 = vmul.f32 %v7705_v0, %v11126_v42 }
 0x295   : > { %1563 = vrot.lane.b32.xlu1 %v7719_v36, %s7039_s14 }
 0x296   : > { %1647 = vrot.lane.b32.xlu0 %v1615_v60, %s7037_s23  ;;  %v1476_v60 = vpop.permute.xlu1 %1475 }
 0x299   : > { %1489 = vrot.lane.b32.xlu1 %v1458_v6, %s7038_s13  ;;  %v7899_v6 = vpop.permute.xlu0 %1637 }
 0x29a   : > { %1731 = vrot.lane.b32.xlu0 %v1699_v17, %s7036_s21  ;;  %v7908_v17 = vpop.permute.xlu1 %1487 }
 0x29d   : > { %1645 = vrot.lane.b32.xlu1 %v1614_v62, %s7037_s23  ;;  %v7911_v62 = vpop.permute.xlu0 %1649 }
 0x29e   : > { %1567 = vrot.lane.b32.xlu0 %v7714_v54, %s7039_s14  ;;  %v7920_v12 = vpop.permute.xlu1 %6924 }
 0x29f   : > { %v6926_v2 = vunpack.i.l.bf16 %v7920_v12 }
 0x2a1   : > { %1729 = vrot.lane.b32.xlu1 %v1698_v21, %s7036_s21  ;;  %v1876_v21 = vmul.f32 %v7685_v28, %v11126_v42 }
 0x2a2   : > { %1497 = vrot.lane.b32.xlu0 %v1462_v23, %s7038_s13  ;;  %v11127_v23 = vld [vmem:[#allocation15_spill] sm:$0xff] }
 0x2a5   : > { %1829 = vrot.lane.b32.xlu1 %v1798_v27, %s7035_s19  ;;  %v1878_v27 = vmul.f32 %v7709_v20, %v11127_v23 }
 0x2a6   : > { %1837 = vrot.lane.b32.xlu0 %v11124_v39, %s7035_s19  ;;  %v7924_v39 = vpop.permute.xlu0 %1721 }
 0x2a9   : > { %1569 = vrot.lane.b32.xlu1 %v7711_v63, %s7039_s14 }
 0x2aa   : > { %1833 = vrot.lane.b32.xlu0 %v1800_v46, %s7035_s19  ;;  %v1875_v46 = vmul.f32 %v7683_v37, %v11127_v23 }
 0x2ad   : > { %1495 = vrot.lane.b32.xlu1 %v1461_v18, %s7038_s13  ;;  %v1632_v18 = vpop.permute.xlu1 %1631  ;;  %s7042_s13 = smov [#allocation7]  }
 0x2ae   : > { %1903 = vrot.lane.b32.xlu0 %v11125_v44, %s7033_s17  ;;  %s6972_s14 = sshll.u32 %s7042_s13, 4  ;;  %s6973_s14 = int_to_ptr.vmem [resolvable:$false] %s6972_s14 }
 0x2af   : > { %s6974_s8 = scalar_lea.vmem %s6973_s14, 1024 }
 0x2b1   : > { %1651 = vrot.lane.b32.xlu1 %v1617_v61, %s7037_s23  ;;  %v7932_v61 = vpop.permute.xlu0 %1733 }
 0x2b2   : > { %1653 = vrot.lane.b32.xlu0 %v1618_v55, %s7037_s23  ;;  %v1882_v55 = vmul.f32 %v7719_v36, %v11126_v42 }
 0x2b5   : > { %1735 = vrot.lane.b32.xlu1 %v1701_v31, %s7036_s21  ;;  %v1884_v31 = vmul.f32 %v7714_v54, %v11127_v23 }
 0x2b6   : > { %1909 = vrot.lane.b32.xlu0 %v11125_v44, %s7033_s17 }
 0x2b9   : > { %1827 = vrot.lane.b32.xlu1 %v1797_v35, %s7035_s19  ;;  %v7942_v35 = vpop.permute.xlu1 %1643 }
 0x2ba   : > { %1737 = vrot.lane.b32.xlu0 %v1702_v34, %s7036_s21  ;;  %v1881_v34 = vmul.f32 %v7717_v53, %v11127_v23  ;;  %v1801_v23 = vmul.f32 %v7711_v63, %v11111_v15  ;;  %s10671_s21 = scalar_lea.hbm %s10724_s7, %s5737_s22 }
 0x2bd   : > { %1901 = vrot.lane.b32.xlu1 %v1876_v21, %s7033_s17  ;;  %v7946_v21 = vpop.permute.xlu0 %1819 }
 0x2be   : > { %1905 = vrot.lane.b32.xlu0 %v1878_v27, %s7033_s17 }
 0x2c1   : > { %1907 = vrot.lane.b32.xlu1 %v1879_v57, %s7033_s17  ;;  %v7955_v27 = vpop.permute.xlu0 %1825 }
 0x2c2   : > { %1915 = vrot.lane.b32.xlu0 %v11125_v44, %s7033_s17 }
 0x2c5   : > { %1899 = vrot.lane.b32.xlu1 %v1875_v46, %s7033_s17  ;;  %v7966_v46 = vpop.permute.xlu0 %1831 }
 0x2c6   : > { %1921 = vrot.lane.b32.xlu0 %v11125_v44, %s7033_s17  ;;  %v7951_v44 = vpop.permute.xlu1 %1715  ;;  %11128 = vst [vmem:[#allocation14_spill] sm:$0xff] %v7966_v46 }
 0x2c9   : > { %1913 = vrot.lane.b32.xlu1 %v1882_v55, %s7033_s17 }
 0x2ca   : > { %1917 = vrot.lane.b32.xlu0 %v1884_v31, %s7033_s17  ;;  %v7964_v57 = vpop.permute.xlu1 %1727  ;;  %v1885_v31 = vmul.f32 %v7711_v63, %v11126_v42 }
 0x2cd   : > { %1911 = vrot.lane.b32.xlu1 %v1881_v34, %s7033_s17 }
 0x2ce   : > { %6934 = vrot.lane.b32.xlu0 %v11083_v48, %s7041_s15 }
 0x2d1   : > { %1973 = vrot.lane.b32.xlu1 %v7685_v28, %s7041_s15  ;;  %v11144_v28 = vand.u32 4294901760, %v7711_v63 }
 0x2d2   : > { %1971 = vrot.lane.b32.xlu0 %v7683_v37, %s7041_s15 }
 0x2d5   : > { %1835 = vrot.lane.b32.xlu1 %v1801_v23, %s7035_s19 }
 0x2d6   : > { %1985 = vrot.lane.b32.xlu0 %v7719_v36, %s7041_s15 }
 0x2d9   : > { %1979 = vrot.lane.b32.xlu1 %v7705_v0, %s7041_s15 }
 0x2da   : > { %1991 = vrot.lane.b32.xlu0 %v7711_v63, %s7041_s15 }
 0x2db   : > { %v1550_v55 = vpop.permute.xlu1 %1549 }
 0x2dc   : > { %v1552_v15 = vpop.permute.xlu0 %1551  ;;  %v7983_v38 = vsel %vm340_vm6, %v6926_v2, %v1550_v55  ;;  %v8000_v2 = vand.u32 4294901760, %v2104_v47 }
 0x2dd   : > { %1919 = vrot.lane.b32.xlu1 %v1885_v31, %s7033_s17  ;;  %v7986_v42 = vsel %vm340_vm6, %v1550_v55, %v1552_v15  ;;  %v2035_v55 = vmul.f32 %v7705_v0, %v11131_v32 }
 0x2de   : > { %1989 = vrot.lane.b32.xlu0 %v7714_v54, %s7041_s15  ;;  %11130 = vst [vmem:[#allocation13_spill] sm:$0xff] %v8000_v2  ;;  %v10772_v15 = vand.u32 4294901760, %v7986_v42  ;;  %v8014_v33 = vsub.f32 %v2104_v47, %v8000_v2  ;;  %2802 = vmatprep.mubr.f32.mxu1 %v8000_v2 }
 0x2df   : > { %v1478_v34 = vpop.permute.xlu1 %1477 }
 0x2e0   : > { %v1480_v23 = vpop.permute.xlu0 %1479  ;;  %v7989_v8 = vsel %vm321_vm4, %v1476_v60, %v1478_v34  ;;  %v10771_v60 = vand.u32 4294901760, %v7983_v38  ;;  %11133 = vst [vmem:[#allocation18_spill] sm:$0xff] %v8014_v33 }
 0x2e1   : > { %1977 = vrot.lane.b32.xlu1 %v7709_v20, %s7041_s15  ;;  %v8009_v50 = vsel %vm321_vm4, %v1478_v34, %v1480_v23  ;;  %v8025_v34 = vmul.f32 %v7714_v54, %v11132_v51  ;;  %v8029_v23 = vmul.f32 %v7719_v36, %v11131_v32  ;;  %v11136_v51 = vand.u32 4294901760, %v7705_v0 }
 0x2e2   : > { %2059 = vrot.lane.b32.xlu0 %v11129_v9, %s7034_s18  ;;  %v8047_v43 = vsub.f32 %v7983_v38, %v10771_v60  ;;  %v11138_v1 = vand.u32 4294901760, %v7989_v8  ;;  %v8080_v0 = vpack.c.bf16 %v11144_v28, %v11143_v26  ;;  %v11148_v36 = vand.u32 4294901760, %v7741_v14 }
 0x2e3   : > { %v1634_v19 = vpop.permute.xlu1 %1633  ;;  %v8061_v41 = vpack.c.bf16 %v11136_v51, %v2288_v40  ;;  %v11146_v40 = vand.u32 4294901760, %v8014_v33  ;;  %v11149_v26 = vand.u32 4294901760, %v7752_v58 }
 0x2e4   : > { %v1636_v31 = vpop.permute.xlu0 %1635  ;;  %v8032_v47 = vsel %vm380_vm3, %v1632_v18, %v1634_v19  ;;  %11134 = vst [vmem:[#allocation15_spill] sm:$0xff] %v8047_v43  ;;  %v8052_v18 = vsub.f32 %v7986_v42, %v10772_v15  ;;  %v8066_v60 = vsub.f32 %v7989_v8, %v11138_v1  ;;  %v11140_v15 = vand.u32 4294901760, %v7683_v37  ;;  %11145 = vst [vmem:[#allocation30_spill] sm:$0xff] %v8080_v0 }
 0x2e5   : > { %6939 = vrot.lane.b32.xlu1 %v11083_v48, %s7041_s15  ;;  %11137 = vst [vmem:[#allocation19_spill] sm:$0xff] %v8061_v41  ;;  %v2355_v51 = vsub.f32 %v8014_v33, %v11146_v40  ;;  %v8087_v2 = vsel %vm380_vm3, %v1634_v19, %v1636_v31  ;;  %v11147_v37 = vand.u32 4294901760, %v7758_v11  ;;  %v2624_v63 = vsub.f32 %v7741_v14, %v11148_v36 }
 0x2e6   : > { %2065 = vrot.lane.b32.xlu0 %v11129_v9, %s7034_s18  ;;  %11135 = vst [vmem:[#allocation21_spill] sm:$0xff] %v8052_v18  ;;  %11139 = vst [vmem:[#allocation16_spill] sm:$0xff] %v8066_v60  ;;  %v11150_v19 = vand.u32 4294901760, %v7747_v3 }
 0x2e7   : > { %v1718_v7 = vpop.permute.xlu1 %1717  ;;  %v2612_v20 = vsub.f32 %v7758_v11, %v11147_v37  ;;  %v2356_v28 = vand.u32 4294901760, %v2355_v51  ;;  %v11152_v37 = vand.u32 4294901760, %v8009_v50  ;;  %v11158_v51 = vand.u32 4294901760, %v7778_v13 }
 0x2e8   : > { %v1720_v49 = vpop.permute.xlu0 %1719  ;;  %v2648_v31 = vsub.f32 %v7747_v3, %v11150_v19  ;;  %v8115_v1 = vsel %vm411_vm5, %v7951_v44, %v1718_v7  ;;  %v11156_v44 = vand.u32 4294901760, %v8032_v47 }
 0x2e9   : > { %1983 = vrot.lane.b32.xlu1 %v7717_v53, %s7041_s15  ;;  %v8111_v36 = vsub.f32 %v8009_v50, %v11152_v37  ;;  %v11155_v37 = vand.u32 4294901760, %v7768_v16  ;;  %2357 = vmatprep.mubr.f32.mxu0 %v2356_v28  ;;  %v2613_v19 = vand.u32 4294901760, %v2612_v20  ;;  %v2642_v14 = vsub.f32 %v7778_v13, %v11158_v51 }
 0x2ea   : > { %2061 = vrot.lane.b32.xlu0 %v2034_v22, %s7034_s18  ;;  %v8074_v22 = vpack.c.bf16 %v11141_v52, %v11140_v15  ;;  %v2630_v52 = vsub.f32 %v7752_v58, %v11149_v26  ;;  %v8131_v11 = vsub.f32 %v8032_v47, %v11156_v44  ;;  %v2625_v58 = vand.u32 4294901760, %v2624_v63 }
 0x2eb   : > { %v8055_v32 = vpop.permute.xlu1 %1815  ;;  %11153 = vst [vmem:[#allocation31_spill] sm:$0xff] %v8111_v36  ;;  %v2649_v28 = vand.u32 4294901760, %v2648_v31  ;;  %v11159_v20 = vand.u32 4294901760, %v8052_v18  ;;  %v11160_v51 = vand.u32 4294901760, %v8047_v43  ;;  %v11165_v13 = vand.u32 4294901760, %v7714_v54 }
 0x2ec   : > { %v8068_v59 = vpop.permute.xlu0 %1557  ;;  %11142 = vst [vmem:[#allocation29_spill] sm:$0xff] %v8074_v22  ;;  %11157 = vst [vmem:[#allocation32_spill] sm:$0xff] %v8131_v11  ;;  %v11168_v48 = vand.u32 4294901760, %v8115_v1 }
 0x2ed   : > { %2057 = vrot.lane.b32.xlu1 %v2032_v25, %s7034_s18  ;;  %v11151_v25 = vand.u32 4294901760, %v7763_v30  ;;  %v8147_v63 = vsub.f32 %v8052_v18, %v11159_v20  ;;  %v10788_v20 = vand.u32 4294901760, %v8131_v11 }
 0x2ee   : > { %2071 = vrot.lane.b32.xlu0 %v11129_v9, %s7034_s18 }
 0x2ef   : > { %v2654_v15 = vsub.f32 %v7763_v30, %v11151_v25  ;;  %v1818_v26 = vpop.permute.xlu1 %1817  ;;  %v11154_v25 = vand.u32 4294901760, %v7773_v4  ;;  %v2636_v30 = vsub.f32 %v7768_v16, %v11155_v37  ;;  %v2631_v37 = vand.u32 4294901760, %v2630_v52 }
 0x2f0   : > { %v8119_v3 = vpop.permute.xlu0 %1821 }
 0x2f1   : > { %v2618_v40 = vsub.f32 %v7773_v4, %v11154_v25  ;;  %2063 = vrot.lane.b32.xlu1 %v2035_v55, %s7034_s18  ;;  %v2655_v16 = vand.u32 4294901760, %v2654_v15  ;;  %v8141_v4 = vsel %vm411_vm5, %v1718_v7, %v1720_v49  ;;  %v8152_v25 = vsub.f32 %v8047_v43, %v11160_v51 }
 0x2f2   : > { %2077 = vrot.lane.b32.xlu0 %v11129_v9, %s7034_s18  ;;  %v11161_v9 = vand.u32 4294901760, %v8087_v2  ;;  %v11163_v49 = vand.u32 4294901760, %v8066_v60  ;;  %v2637_v55 = vand.u32 4294901760, %v2636_v30  ;;  %v11164_v51 = vand.u32 4294901760, %v7717_v53 }
 0x2f3   : > { %v1556_v44 = vpop.permute.xlu1 %1555  ;;  %v2619_v15 = vand.u32 4294901760, %v2618_v40  ;;  %v2643_v43 = vand.u32 4294901760, %v2642_v14  ;;  %v10789_v30 = vand.u32 4294901760, %v8141_v4  ;;  %v11172_v14 = vand.u32 4294901760, %v8111_v36 }
 0x2f4   : > { %v8157_v52 = vsub.f32 %v8087_v2, %v11161_v9  ;;  %v1486_v7 = vpop.permute.xlu0 %1485  ;;  %v8162_v31 = vsub.f32 %v8066_v60, %v11163_v49  ;;  %v8170_v33 = vpack.c.bf16 %v11165_v13, %v11164_v51  ;;  %v8172_v9 = vpack.c.bf16 %v2625_v58, %v2613_v19  ;;  %v2188_v58 = vld [vmem:[%s10721_s4 + $0x8] sm:$0xff] }
 0x2f5   : > { %2055 = vrot.lane.b32.xlu1 %v2031_v45, %s7034_s18  ;;  %v8177_v49 = vsub.f32 %v8115_v1, %v11168_v48  ;;  %v8182_v45 = vpack.c.bf16 %v2631_v37, %v2619_v15  ;;  %v8184_v53 = vpack.c.bf16 %v2649_v28, %v2637_v55  ;;  %v8192_v13 = vsub.f32 %v8111_v36, %v11172_v14 }
 0x2f6   : > { %11162 = vst [vmem:[#allocation33_spill] sm:$0xff] %v8157_v52  ;;  %11166 = vst [vmem:[#allocation34_spill] sm:$0xff] %v8170_v33  ;;  %2073 = vrot.lane.b32.xlu0 %v8025_v34, %s7034_s18  ;;  %v8196_v19 = vpack.c.bf16 %v2655_v16, %v2643_v43  ;;  %v2103_v34 = vld [vmem:[%s10720_s3] sm:$0xff]  ;;  %v8210_v14 = vsel %vm394_vm2, %v1818_v26, %v7946_v21  ;;  %v8217_v40 = vsub.f32 %v8131_v11, %v10788_v20 }
 0x2f7   : > { %11167 = vst [vmem:[#allocation35_spill] sm:$0xff] %v8172_v9  ;;  %11169 = vst [vmem:[#allocation36_spill] sm:$0xff] %v8177_v49  ;;  %v1484_v54 = vpop.permute.xlu1 %1483  ;;  %v10790_v21 = vand.u32 4294901760, %v8177_v49 }
 0x2f8   : > { %11170 = vst [vmem:[#allocation37_spill] sm:$0xff] %v8182_v45  ;;  %11171 = vst [vmem:[#allocation38_spill] sm:$0xff] %v8184_v53  ;;  %v1501_v28 = vsel %vm321_vm4, %v7869_v56, %v1484_v54  ;;  %v1502_v55 = vsel %vm321_vm4, %v1484_v54, %v1486_v7  ;;  %v8205_v15 = vpop.permute.xlu0 %1641  ;;  %v8222_v56 = vsub.f32 %v8141_v4, %v10789_v30  ;;  %v8229_v54 = vand.u32 4294901760, %v2103_v34 }
 0x2f9   : > { %11173 = vst [vmem:[#allocation39_spill] sm:$0xff] %v8196_v19  ;;  %v2228_v43 = vand.u32 4294901760, %v1502_v55  ;;  %v2230_v16 = vand.u32 4294901760, %v1501_v28  ;;  %2069 = vrot.lane.b32.xlu1 %v8029_v23, %s7034_s18  ;;  %v8226_v7 = vsel %vm394_vm2, %v8055_v32, %v1818_v26  ;;  %v11176_v23 = vand.u32 4294901760, %v7989_v8  ;;  %v2190_v32 = vld [vmem:[%s10721_s4 + $0x18] sm:$0xff] }
 0x2fa   : > { %11174 = vst [vmem:[#allocation40_spill] sm:$0xff] %v8222_v56  ;;  %2198 = vperm.xlu0 %6921, %v2188_v58   ;;  %11175 = vst [vmem:[#allocation41_spill] sm:$0xff] %v8229_v54  ;;  %v11180_v30 = vand.u32 4294901760, %v8009_v50  ;;  %v11182_v58 = vunpack.i.h.bf16 %v7920_v12 }
 0x2fb   : > { %v8233_v48 = vpack.c.bf16 %v2230_v16, %v11176_v23  ;;  %v8235_v20 = vsub.f32 %v1502_v55, %v2228_v43  ;;  %v8237_v51 = vsub.f32 %v1501_v28, %v2230_v16  ;;  %v1640_v37 = vpop.permute.xlu1 %1639  ;;  %v8254_v28 = vsel %vm340_vm6, %v1556_v44, %v8068_v59  ;;  %v2107_v59 = vld [vmem:[%s10720_s3 + $0x20] sm:$0xff]  ;;  %v2106_v55 = vld [vmem:[%s10720_s3 + $0x18] sm:$0xff] }
 0x2fc   : > { %v8241_v19 = vpack.c.bf16 %v2228_v43, %v11180_v30  ;;  %v8250_v8 = vsel %vm340_vm6, %v11182_v58, %v1556_v44  ;;  %v8258_v50 = vsel %vm380_vm3, %v7899_v6, %v1640_v37  ;;  %v1726_v30 = vpop.permute.xlu0 %1725  ;;  %v2421_v44 = vand.u32 4294901760, %v8192_v13 }
 0x2fd   : > { %11177 = vst [vmem:[#allocation42_spill] sm:$0xff] %v8233_v48  ;;  %11178 = vst [vmem:[#allocation43_spill] sm:$0xff] %v8235_v20  ;;  %v10793_v43 = vand.u32 4294901760, %v8258_v50  ;;  %2075 = vrot.lane.b32.xlu1 %v8037_v24, %s7034_s18  ;;  %v10796_v12 = vand.u32 4294901760, %v8235_v20  ;;  %v10799_v16 = vand.u32 4294901760, %v8237_v51  ;;  %v11183_v23 = vand.u32 4294901760, %v8157_v52 }
 0x2fe   : > { %11179 = vst [vmem:[#allocation44_spill] sm:$0xff] %v8237_v51  ;;  %11181 = vst [vmem:[#allocation45_spill] sm:$0xff] %v8241_v19  ;;  %6099 = vmatprep.subr.bf16.mxu0 %v8241_v19  ;;  %2208 = vperm.xlu0 %6921, %v2190_v32   ;;  %v8281_v58 = vsub.f32 %v8177_v49, %v10790_v21  ;;  %v11191_v11 = vand.u32 4294901760, %v8254_v28  ;;  %v8360_v22 = vand.u32 4294901760, %v2106_v55 }
 0x2ff   : > { %6101 = vmatpush1.bf16.msra.mxu0 %v8233_v48  ;;  %v8276_v24 = vsub.f32 %v8157_v52, %v11183_v23  ;;  %v8288_v32 = vsub.f32 %v8258_v50, %v10793_v43  ;;  %v1724_v13 = vpop.permute.xlu1 %1723  ;;  %v2432_v23 = vsub.f32 %v8235_v20, %v10796_v12  ;;  %v2438_v26 = vsub.f32 %v8237_v51, %v10799_v16 }
 0x300   : > { %v8295_v6 = vsel %vm411_vm5, %v7924_v39, %v1724_v13  ;;  %v8297_v21 = vpop.permute.xlu0 %1561  ;;  %v8303_v48 = vand.u32 4294901760, %v2107_v59  ;;  %v11186_v43 = vand.u32 4294901760, %v8210_v14  ;;  %v11188_v12 = vand.u32 4294901760, %v8226_v7  ;;  %11199 = vst [vmem:[#allocation55_spill] sm:$0xff] %v8360_v22 }
 0x301   : > { %11184 = vst [vmem:[#allocation46_spill] sm:$0xff] %v8288_v32  ;;  %2067 = vrot.lane.b32.xlu1 %v8041_v29, %s7034_s18  ;;  %v8320_v16 = vsub.f32 %v2103_v34, %v8229_v54  ;;  %v2433_v53 = vand.u32 4294901760, %v2432_v23  ;;  %v2439_v45 = vand.u32 4294901760, %v2438_v26  ;;  %v8333_v29 = vsub.f32 %v8254_v28, %v11191_v11 }
 0x302   : > { %11185 = vst [vmem:[#allocation47_spill] sm:$0xff] %v8303_v48  ;;  %v8308_v19 = vsub.f32 %v8210_v14, %v11186_v43  ;;  %v8313_v39 = vsub.f32 %v8226_v7, %v11188_v12  ;;  %v2187_v12 = vld [vmem:[%s10721_s4] sm:$0xff]  ;;  %v11193_v34 = vand.u32 4294901760, %v8250_v8  ;;  %v11195_v43 = vand.u32 4294901760, %v8222_v56 }
 0x303   : > { %11190 = vst [vmem:[#allocation50_spill] sm:$0xff] %v8320_v16  ;;  %11192 = vst [vmem:[#allocation51_spill] sm:$0xff] %v8333_v29  ;;  %v1824_v9 = vpop.permute.xlu1 %1823  ;;  %v11196_v23 = vand.u32 4294901760, %v8295_v6  ;;  %v1658_v41 = vsel %vm380_vm3, %v1640_v37, %v8205_v15  ;;  %v8379_v26 = vsel %vm411_vm5, %v1724_v13, %v1726_v30 }
 0x304   : > { %11187 = vst [vmem:[#allocation48_spill] sm:$0xff] %v8308_v19  ;;  %11189 = vst [vmem:[#allocation49_spill] sm:$0xff] %v8313_v39  ;;  %v8338_v54 = vsub.f32 %v8250_v8, %v11193_v34  ;;  %v8343_v33 = vsub.f32 %v8222_v56, %v11195_v43  ;;  %v8353_v11 = vsel %vm394_vm2, %v8119_v3, %v1824_v9  ;;  %v8355_v0 = vpop.permute.xlu0 %1491  ;;  %v2110_v3 = vld [vmem:[%s10720_s3 + $0x38] sm:$0xff]  ;;  %v11200_v43 = vand.u32 4294901760, %v8162_v31  ;;  %v2189_v56 = vld [vmem:[%s10721_s4 + $0x10] sm:$0xff] }
 0x305   : > { %v8349_v52 = vsub.f32 %v8295_v6, %v11196_v23  ;;  %v8358_v34 = vsub.f32 %v2107_v59, %v8303_v48  ;;  %2193 = vperm.xlu1 %6922, %v2187_v12   ;;  %v6162_v48 = vpack.c.bf16 %v2433_v53, %v2421_v44  ;;  %v11201_v23 = vand.u32 4294901760, %v8353_v11 }
 0x306   : > { %11194 = vst [vmem:[#allocation52_spill] sm:$0xff] %v8338_v54  ;;  %v6164_v12 = vpack.c.bf16 %v2439_v45, %v11200_v43  ;;  %v8390_v31 = vsel %vm394_vm2, %v1824_v9, %v7955_v27  ;;  %v8396_v44 = vsub.f32 %v2106_v55, %v8360_v22  ;;  %v8398_v13 = vand.u32 4294901760, %v2110_v3  ;;  %v8403_v43 = vld [vmem:[%s10720_s3 + $0x30] sm:$0xff] }
 0x307   : > { %11197 = vst [vmem:[#allocation53_spill] sm:$0xff] %v8349_v52  ;;  %11198 = vst [vmem:[#allocation54_spill] sm:$0xff] %v8358_v34  ;;  %v8384_v46 = vsub.f32 %v8353_v11, %v11201_v23  ;;  %v1564_v37 = vpop.permute.xlu1 %1563  ;;  %6163 = vmatprep.subr.bf16.mxu1 %v6162_v48  ;;  %v2260_v23 = vand.u32 4294901760, %v1658_v41  ;;  %v11206_v27 = vunpack.i.l.bf16 %v7887_v10  ;;  %v11207_v55 = vand.u32 4294901760, %v8320_v16 }
 0x308   : > { %v8392_v45 = vpop.permute.xlu0 %1647  ;;  %11203 = vst [vmem:[#allocation57_spill] sm:$0xff] %v8396_v44  ;;  %11204 = vst [vmem:[#allocation58_spill] sm:$0xff] %v8398_v13  ;;  %6165 = vmatpush1.bf16.msra.mxu1 %v6164_v12  ;;  %v11209_v15 = vand.u32 4294901760, %v8308_v19  ;;  %v11212_v30 = vand.u32 4294901760, %v8338_v54  ;;  %v8438_v22 = vand.u32 4294901760, %v8403_v43 }
 0x309   : > { %11202 = vst [vmem:[#allocation56_spill] sm:$0xff] %v8384_v46  ;;  %11205 = vst [vmem:[#allocation59_spill] sm:$0xff] %v8403_v43  ;;  %v8409_v9 = vsel %vm340_vm6, %v11206_v27, %v8297_v21  ;;  %2203 = vperm.xlu1 %6922, %v2189_v56   ;;  %v8416_v59 = vsub.f32 %v8320_v16, %v11207_v55  ;;  %v11210_v27 = vand.u32 4294901760, %v8313_v39  ;;  %v11211_v55 = vand.u32 4294901760, %v8333_v29 }
 0x30a   : > { %v8423_v49 = vsub.f32 %v8308_v19, %v11209_v15  ;;  %v2486_v53 = vsub.f32 %v8338_v54, %v11212_v30  ;;  %11213 = vst [vmem:[#allocation61_spill] sm:$0xff] %v8438_v22  ;;  %v11214_v56 = vand.u32 4294901760, %v8358_v34  ;;  %v11216_v30 = vand.u32 4294901760, %v7983_v38 }
 0x30b   : > { %11208 = vst [vmem:[#allocation60_spill] sm:$0xff] %v8416_v59  ;;  %v8428_v48 = vsub.f32 %v8313_v39, %v11210_v27  ;;  %v1490_v12 = vpop.permute.xlu1 %1489  ;;  %v2480_v16 = vsub.f32 %v8333_v29, %v11211_v55  ;;  %v8443_v27 = vsel %vm340_vm6, %v8297_v21, %v1564_v37  ;;  %v11217_v54 = vand.u32 4294901760, %v8250_v8 }
 0x30c   : > { %v8445_v39 = vpop.permute.xlu0 %1731  ;;  %v8450_v19 = vsub.f32 %v8358_v34, %v11214_v56  ;;  %v8459_v15 = vsub.f32 %v1658_v41, %v2260_v23  ;;  %v8463_v37 = vsub.f32 %v2110_v3, %v8398_v13  ;;  %v11221_v22 = vand.u32 4294901760, %v8379_v26 }
 0x30d   : > { %v8457_v43 = vpack.c.bf16 %v11217_v54, %v11216_v30  ;;  %v11223_v55 = vand.u32 4294901760, %v7986_v42  ;;  %v11224_v38 = vand.u32 4294901760, %v8254_v28  ;;  %v11226_v8 = vand.u32 4294901760, %v8390_v31 }
 0x30e   : > { %11215 = vst [vmem:[#allocation62_spill] sm:$0xff] %v8450_v19  ;;  %11219 = vst [vmem:[#allocation64_spill] sm:$0xff] %v8459_v15  ;;  %v8468_v56 = vsub.f32 %v8379_v26, %v11221_v22  ;;  %v2481_v22 = vand.u32 4294901760, %v2480_v16  ;;  %v2487_v13 = vand.u32 4294901760, %v2486_v53  ;;  %v11228_v42 = vand.u32 4294901760, %v8032_v47 }
 0x30f   : > { %11218 = vst [vmem:[#allocation63_spill] sm:$0xff] %v8457_v43  ;;  %11220 = vst [vmem:[#allocation65_spill] sm:$0xff] %v8463_v37  ;;  %v8474_v34 = vpack.c.bf16 %v11224_v38, %v11223_v55  ;;  %v8481_v3 = vsub.f32 %v8390_v31, %v11226_v8  ;;  %v1646_v21 = vpop.permute.xlu1 %1645  ;;  %v11229_v28 = vand.u32 4294901760, %v8258_v50  ;;  %v11231_v38 = vand.u32 4294901760, %v8409_v9 }
 0x310   : > { %11222 = vst [vmem:[#allocation66_spill] sm:$0xff] %v8468_v56  ;;  %v1568_v54 = vpop.permute.xlu0 %1567  ;;  %v11233_v59 = vand.u32 4294901760, %v8396_v44  ;;  %v8505_v50 = vsel %vm321_vm4, %v1490_v12, %v8355_v0  ;;  %v11234_v53 = vand.u32 4294901760, %v8087_v2  ;;  %v11236_v8 = vunpack.i.h.bf16 %v7887_v10 }
 0x311   : > { %11225 = vst [vmem:[#allocation67_spill] sm:$0xff] %v8474_v34  ;;  %11227 = vst [vmem:[#allocation68_spill] sm:$0xff] %v8481_v3  ;;  %v8488_v55 = vpack.c.bf16 %v11229_v28, %v11228_v42  ;;  %v8493_v41 = vsub.f32 %v8409_v9, %v11231_v38  ;;  %v11237_v16 = vand.u32 4294901760, %v8443_v27  ;;  %v11238_v38 = vand.u32 4294901760, %v8147_v63 }
 0x312   : > { %v8499_v30 = vsub.f32 %v8396_v44, %v11233_v59  ;;  %v8509_v42 = vpack.c.bf16 %v2260_v23, %v11234_v53  ;;  %v8515_v59 = vsel %vm321_vm4, %v7908_v17, %v1490_v12  ;;  %v8520_v47 = vsel %vm340_vm6, %v11236_v8, %v1568_v54 }
 0x313   : > { %11230 = vst [vmem:[#allocation69_spill] sm:$0xff] %v8488_v55  ;;  %11232 = vst [vmem:[#allocation70_spill] sm:$0xff] %v8493_v41  ;;  %v8526_v2 = vsub.f32 %v8443_v27, %v11237_v16  ;;  %v1730_v53 = vpop.permute.xlu1 %1729  ;;  %v8531_v28 = vpack.c.bf16 %v2481_v22, %v11238_v38  ;;  %v11239_v17 = vand.u32 4294901760, %v8115_v1  ;;  %v11240_v10 = vand.u32 4294901760, %v8295_v6 }
 0x314   : > { %11235 = vst [vmem:[#allocation71_spill] sm:$0xff] %v8509_v42  ;;  %v1498_v44 = vpop.permute.xlu0 %1497  ;;  %v11242_v16 = vand.u32 4294901760, %v8152_v25  ;;  %v2234_v23 = vand.u32 4294901760, %v8515_v59  ;;  %v11243_v63 = vand.u32 4294901760, %v8520_v47  ;;  %v11245_v1 = vand.u32 4294901760, %v8459_v15 }
 0x315   : > { %v8537_v12 = vpack.c.bf16 %v11240_v10, %v11239_v17  ;;  %v11246_v38 = vand.u32 4294901760, %v8288_v32  ;;  %v11247_v10 = vand.u32 4294901760, %v8226_v7  ;;  %v11248_v25 = vand.u32 4294901760, %v8353_v11 }
 0x316   : > { %v8543_v19 = vpack.c.bf16 %v2487_v13, %v11242_v16  ;;  %v8549_v22 = vsub.f32 %v8520_v47, %v11243_v63  ;;  %v2528_v6 = vsub.f32 %v8459_v15, %v11245_v1  ;;  %v11250_v8 = vand.u32 4294901760, %v8468_v56 }
 0x317   : > { %11241 = vst [vmem:[#allocation72_spill] sm:$0xff] %v8537_v12  ;;  %v2534_v17 = vsub.f32 %v8288_v32, %v11246_v38  ;;  %v8561_v13 = vpack.c.bf16 %v11248_v25, %v11247_v10  ;;  %v11251_v0 = vand.u32 4294901760, %v8349_v52  ;;  %v8573_v38 = vsel %vm380_vm3, %v1646_v21, %v8392_v45  ;;  %v8577_v11 = vpop.permute.xlu1 %1829 }
 0x318   : > { %11244 = vst [vmem:[#allocation73_spill] sm:$0xff] %v8549_v22  ;;  %v2576_v63 = vsub.f32 %v8468_v56, %v11250_v8  ;;  %v11252_v10 = vand.u32 4294901760, %v8481_v3  ;;  %v11253_v8 = vand.u32 4294901760, %v8505_v50  ;;  %v8591_v45 = vpop.permute.xlu0 %1837  ;;  %v11255_v15 = vand.u32 4294901760, %v8493_v41 }
 0x319   : > { %11249 = vst [vmem:[#allocation74_spill] sm:$0xff] %v8561_v13  ;;  %v2582_v1 = vsub.f32 %v8349_v52, %v11251_v0  ;;  %v8589_v0 = vsel %vm380_vm3, %v7942_v35, %v1646_v21  ;;  %11254 = vst [vmem:[#allocation75_spill] sm:$0xff] %v8591_v45  ;;  %v2529_v35 = vand.u32 4294901760, %v2528_v6  ;;  %v2535_v21 = vand.u32 4294901760, %v2534_v17 }
 0x31a   : > { %v2672_v25 = vsub.f32 %v8481_v3, %v11252_v10  ;;  %v8585_v16 = vsub.f32 %v8505_v50, %v11253_v8  ;;  %v8596_v7 = vsub.f32 %v8493_v41, %v11255_v15  ;;  %v8601_v10 = vsub.f32 %v8515_v59, %v2234_v23 }
 0x31b   : > { %v11256_v8 = vand.u32 4294901760, %v8141_v4  ;;  %v11257_v3 = vand.u32 4294901760, %v8379_v26  ;;  %v10849_v32 = vand.u32 4294901760, %v8573_v38  ;;  %v2577_v13 = vand.u32 4294901760, %v2576_v63  ;;  %v1570_v59 = vpop.permute.xlu1 %1569 }
 0x31c   : > { %v2583_v45 = vand.u32 4294901760, %v2582_v1  ;;  %v11259_v15 = vand.u32 4294901760, %v8384_v46  ;;  %v11260_v36 = vand.u32 4294901760, %v8526_v2  ;;  %v2673_v26 = vand.u32 4294901760, %v2672_v25  ;;  %v8625_v63 = vpop.permute.xlu0 %1833 }
 0x31d   : > { %v8607_v56 = vpack.c.bf16 %v11257_v3, %v11256_v8  ;;  %v8623_v17 = vsel %vm340_vm6, %v1568_v54, %v1570_v59  ;;  %v11261_v8 = vand.u32 4294901760, %v8210_v14  ;;  %v11264_v25 = vand.u32 4294901760, %v8276_v24 }
 0x31e   : > { %v2678_v41 = vsub.f32 %v8384_v46, %v11259_v15  ;;  %v8617_v4 = vsub.f32 %v8526_v2, %v11260_v36  ;;  %v11262_v15 = vand.u32 4294901760, %v8390_v31  ;;  %v10850_v36 = vand.u32 4294901760, %v8601_v10 }
 0x31f   : > { %11258 = vst [vmem:[#allocation76_spill] sm:$0xff] %v8607_v56  ;;  %v8637_v3 = vpack.c.bf16 %v2529_v35, %v11264_v25  ;;  %v11265_v6 = vand.u32 4294901760, %v8217_v40  ;;  %v8647_v14 = vsub.f32 %v8573_v38, %v10849_v32  ;;  %v2252_v31 = vand.u32 4294901760, %v8623_v17 }
 0x320   : > { %v8632_v52 = vpack.c.bf16 %v11262_v15, %v11261_v8  ;;  %v11267_v8 = vand.u32 4294901760, %v8343_v33  ;;  %v2679_v24 = vand.u32 4294901760, %v2678_v41  ;;  %v11268_v35 = vand.u32 4294901760, %v8589_v0 }
 0x321   : > { %v8641_v54 = vpack.c.bf16 %v2535_v21, %v11265_v6  ;;  %11266 = vst [vmem:[#allocation78_spill] sm:$0xff] %v8647_v14  ;;  %v1496_v21 = vpop.permute.xlu1 %1495  ;;  %v11269_v25 = vand.u32 4294901760, %v8281_v58  ;;  %v11270_v1 = vand.u32 4294901760, %v8423_v49  ;;  %v8670_v33 = vsel %vm411_vm5, %v7964_v57, %v1730_v53 }
 0x322   : > { %11263 = vst [vmem:[#allocation77_spill] sm:$0xff] %v8632_v52  ;;  %v8652_v15 = vpack.c.bf16 %v2577_v13, %v11267_v8  ;;  %v8657_v40 = vsub.f32 %v8589_v0, %v11268_v35  ;;  %v1505_v41 = vsel %vm321_vm4, %v7877_v5, %v1496_v21  ;;  %v1506_v13 = vsel %vm321_vm4, %v1496_v21, %v1498_v44  ;;  %v8675_v8 = vpop.permute.xlu0 %1903 }
 0x323   : > { %v8662_v59 = vpack.c.bf16 %v2583_v45, %v11269_v25  ;;  %v8666_v32 = vpack.c.bf16 %v2673_v26, %v11270_v1  ;;  %v11271_v35 = vand.u32 4294901760, %v8585_v16  ;;  %v8682_v49 = vsel %vm411_vm5, %v1730_v53, %v8445_v39 }
 0x324   : > { %v2236_v45 = vand.u32 4294901760, %v1506_v13  ;;  %v2238_v26 = vand.u32 4294901760, %v1505_v41  ;;  %v2450_v57 = vsub.f32 %v8601_v10, %v10850_v36  ;;  %v8689_v44 = vsub.f32 %v8623_v17, %v2252_v31 }
 0x325   : > { %v2444_v58 = vsub.f32 %v8585_v16, %v11271_v35  ;;  %v11272_v1 = vand.u32 4294901760, %v8428_v48  ;;  %v1652_v6 = vpop.permute.xlu1 %1651  ;;  %v11274_v36 = vand.u32 4294901760, %v8505_v50  ;;  %v11281_v29 = vand.u32 4294901760, %v8682_v49 }
 0x326   : > { %v8697_v39 = vpack.c.bf16 %v2238_v26, %v2234_v23  ;;  %v8699_v53 = vsub.f32 %v1506_v13, %v2236_v45  ;;  %v8701_v35 = vsub.f32 %v1505_v41, %v2238_v26  ;;  %v1654_v23 = vpop.permute.xlu0 %1653  ;;  %v11280_v18 = vand.u32 4294901760, %v8689_v44 }
 0x327   : > { %v8693_v21 = vpack.c.bf16 %v2679_v24, %v11272_v1  ;;  %v8705_v5 = vpack.c.bf16 %v2236_v45, %v11274_v36  ;;  %v8712_v1 = vsel %vm380_vm3, %v7911_v62, %v1652_v6  ;;  %v1662_v26 = vsel %vm380_vm3, %v1652_v6, %v1654_v23 }
 0x328   : > { %11273 = vst [vmem:[#allocation79_spill] sm:$0xff] %v8697_v39  ;;  %v10856_v13 = vand.u32 4294901760, %v8699_v53  ;;  %v10859_v41 = vand.u32 4294901760, %v8701_v35  ;;  %v10851_v36 = vand.u32 4294901760, %v8712_v1  ;;  %v2445_v62 = vand.u32 4294901760, %v2444_v58 }
 0x329   : > { %11275 = vst [vmem:[#allocation80_spill] sm:$0xff] %v8705_v5  ;;  %6103 = vmatprep.subr.bf16.mxu0 %v8705_v5  ;;  %v2268_v50 = vand.u32 4294901760, %v1662_v26  ;;  %v1736_v24 = vpop.permute.xlu1 %1735  ;;  %v2451_v6 = vand.u32 4294901760, %v2450_v57  ;;  %v11276_v45 = vand.u32 4294901760, %v8647_v14  ;;  %v11278_v23 = vand.u32 4294901760, %v8443_v27 }
 0x32a   : > { %6105 = vmatpush1.bf16.msra.mxu0 %v8697_v39  ;;  %v8728_v17 = vsub.f32 %v8712_v1, %v10851_v36  ;;  %v2456_v48 = vsub.f32 %v8699_v53, %v10856_v13  ;;  %v8737_v58 = vsel %vm411_vm5, %v7932_v61, %v1736_v24  ;;  %v8739_v25 = vpop.permute.xlu0 %1909  ;;  %v2462_v36 = vsub.f32 %v8701_v35, %v10859_v41  ;;  %v11277_v39 = vld [vmem:[#allocation14_spill] sm:$0xff] }
 0x32b   : > { %6107 = vmatprep.subr.bf16.mxu0 %v8474_v34  ;;  %v8747_v34 = vsub.f32 %v8647_v14, %v11276_v45  ;;  %v8752_v57 = vsel %vm394_vm2, %v8577_v11, %v11277_v39  ;;  %v8759_v5 = vpack.c.bf16 %v2252_v31, %v11278_v23  ;;  %v8761_v41 = vsub.f32 %v1662_v26, %v2268_v50 }
 0x32c   : > { %v2457_v45 = vand.u32 4294901760, %v2456_v48  ;;  %v2463_v46 = vand.u32 4294901760, %v2462_v36  ;;  %v2504_v39 = vsub.f32 %v8689_v44, %v11280_v18  ;;  %v8770_v61 = vsub.f32 %v8682_v49, %v11281_v29 }
 0x32d   : > { %11279 = vst [vmem:[#allocation14_spill] sm:$0xff] %v8759_v5  ;;  %v11282_v13 = vand.u32 4294901760, %v8670_v33  ;;  %v11283_v31 = vand.u32 4294901760, %v8737_v58  ;;  %v1828_v48 = vpop.permute.xlu1 %1827  ;;  %v11284_v18 = vand.u32 4294901760, %v8657_v40  ;;  %v11285_v29 = vand.u32 4294901760, %v8409_v9 }
 0x32e   : > { %6109 = vmatpush1.bf16.msra.mxu0 %v8457_v43  ;;  %v11286_v23 = vand.u32 4294901760, %v8520_v47  ;;  %v6166_v60 = vpack.c.bf16 %v2457_v45, %v2445_v62  ;;  %v6168_v51 = vpack.c.bf16 %v2463_v46, %v2451_v6  ;;  %v10877_v20 = vand.u32 4294901760, %v8752_v57 }
 0x32f   : > { %v8775_v27 = vsub.f32 %v8670_v33, %v11282_v13  ;;  %v8780_v26 = vsub.f32 %v8737_v58, %v11283_v31  ;;  %6111 = vmatprep.subr.bf16.mxu0 %v8759_v5  ;;  %v8786_v36 = vsub.f32 %v8657_v40, %v11284_v18  ;;  %v1738_v13 = vpop.permute.xlu0 %1737  ;;  %v11288_v9 = vand.u32 4294901760, %v8549_v22 }
 0x330   : > { %v8792_v43 = vpack.c.bf16 %v11286_v23, %v11285_v29  ;;  %v8800_v18 = vsel %vm411_vm5, %v1736_v24, %v1738_v13  ;;  %v10878_v29 = vand.u32 4294901760, %v8761_v41  ;;  %6167 = vmatprep.subr.bf16.mxu1 %v6166_v60  ;;  %v2505_v46 = vand.u32 4294901760, %v2504_v39  ;;  %v11292_v39 = vld [vmem:[#allocation59_spill] sm:$0xff] }
 0x331   : > { %v2510_v47 = vsub.f32 %v8549_v22, %v11288_v9  ;;  %v10876_v62 = vand.u32 4294901760, %v8800_v18  ;;  %6169 = vmatpush1.bf16.msra.mxu1 %v6168_v51  ;;  %v1902_v24 = vpop.permute.xlu1 %1901  ;;  %v8816_v9 = vld [vmem:[%s10720_s3 + $0x50] sm:$0xff]  ;;  %v8823_v5 = vsel %vm394_vm2, %v1828_v48, %v8577_v11  ;;  %v11289_v60 = vand.u32 4294901760, %v8573_v38  ;;  %v11291_v48 = vld [vmem:[#allocation61_spill] sm:$0xff] }
 0x332   : > { %11287 = vst [vmem:[#allocation81_spill] sm:$0xff] %v8792_v43  ;;  %6113 = vmatpush1.bf16.msra.mxu0 %v8792_v43  ;;  %v8832_v31 = vsel %vm363_vm1, %v1902_v24, %v8675_v8  ;;  %6171 = vmatprep.subr.bf16.mxu1 %v8531_v28  ;;  %v8842_v45 = vsub.f32 %v11292_v39, %v11291_v48  ;;  %v11294_v28 = vand.u32 4294901760, %v8617_v4 }
 0x333   : > { %6115 = vmatprep.subr.bf16.mxu0 %v8509_v42  ;;  %v8828_v51 = vsub.f32 %v8800_v18, %v10876_v62  ;;  %v1906_v13 = vpop.permute.xlu0 %1905  ;;  %v8837_v6 = vpack.c.bf16 %v2268_v50, %v11289_v60  ;;  %v2511_v23 = vand.u32 4294901760, %v2510_v47  ;;  %v8847_v62 = vsub.f32 %v8752_v57, %v10877_v20 }
 0x334   : > { %11293 = vst [vmem:[#allocation59_spill] sm:$0xff] %v8842_v45  ;;  %v6174_v8 = vpack.c.bf16 %v2505_v46, %v11294_v28  ;;  %v2552_v38 = vsub.f32 %v8761_v41, %v10878_v29  ;;  %v8856_v50 = vand.u32 4294901760, %v8816_v9  ;;  %v11296_v47 = vand.u32 4294901760, %v8589_v0 }
 0x335   : > { %11290 = vst [vmem:[#allocation82_spill] sm:$0xff] %v8837_v6  ;;  %v11297_v60 = vand.u32 4294901760, %v8712_v1  ;;  %6173 = vmatpush1.bf16.msra.mxu1 %v8543_v19  ;;  %v1908_v4 = vpop.permute.xlu1 %1907  ;;  %v11299_v46 = vand.u32 4294901760, %v8770_v61  ;;  %v11303_v29 = vand.u32 4294901760, %v8463_v37 }
 0x336   : > { %6117 = vmatpush1.bf16.msra.mxu0 %v8488_v55  ;;  %11295 = vst [vmem:[#allocation83_spill] sm:$0xff] %v8856_v50  ;;  %v8874_v0 = vsel %vm363_vm1, %v1906_v13, %v1908_v4  ;;  %v8878_v1 = vsel %vm363_vm1, %v1908_v4, %v8739_v25  ;;  %6175 = vmatprep.subr.bf16.mxu1 %v6174_v8  ;;  %v11301_v13 = vand.u32 4294901760, %v8596_v7  ;;  %v11304_v7 = vand.u32 4294901760, %v8823_v5 }
 0x337   : > { %v8862_v39 = vpack.c.bf16 %v11297_v60, %v11296_v47  ;;  %6119 = vmatprep.subr.bf16.mxu0 %v8837_v6  ;;  %v8871_v28 = vsub.f32 %v8770_v61, %v11299_v46  ;;  %v1916_v47 = vpop.permute.xlu0 %1915  ;;  %v11300_v60 = vand.u32 4294901760, %v8728_v17  ;;  %v10885_v46 = vand.u32 4294901760, %v8878_v1 }
 0x338   : > { %v6176_v20 = vpack.c.bf16 %v2511_v23, %v11301_v13  ;;  %v11302_v6 = vand.u32 4294901760, %v8775_v27  ;;  %v8900_v11 = vsub.f32 %v8463_v37, %v11303_v29  ;;  %v8905_v23 = vsub.f32 %v8823_v5, %v11304_v7 }
 0x339   : > { %11298 = vst [vmem:[#allocation84_spill] sm:$0xff] %v8862_v39  ;;  %v2558_v19 = vsub.f32 %v8728_v17, %v11300_v60  ;;  %v2553_v60 = vand.u32 4294901760, %v2552_v38  ;;  %v8916_v38 = vsub.f32 %v8878_v1, %v10885_v46  ;;  %v1900_v29 = vpop.permute.xlu1 %1899  ;;  %v11308_v46 = vand.u32 4294901760, %v8682_v49 }
 0x33a   : > { %v8892_v25 = vsub.f32 %v8775_v27, %v11302_v6  ;;  %6121 = vmatpush1.bf16.msra.mxu0 %v8862_v39  ;;  %v11305_v6 = vand.u32 4294901760, %v8832_v31  ;;  %6177 = vmatpush1.bf16.msra.mxu1 %v6176_v20  ;;  %v8920_v8 = vsel %vm363_vm1, %v1900_v29, %v1902_v24  ;;  %v2589_v39 = vand.u32 4294901760, %v8871_v28 }
 0x33b   : > { %11307 = vst [vmem:[#allocation86_spill] sm:$0xff] %v8916_v38  ;;  %6123 = vmatprep.subr.bf16.mxu0 %v8607_v56  ;;  %6179 = vmatprep.subr.bf16.mxu1 %v8637_v3  ;;  %v8923_v7 = vpop.permute.xlu0 %1921  ;;  %v11309_v20 = vand.u32 4294901760, %v8800_v18  ;;  %v11311_v24 = vand.u32 4294901760, %v8828_v51  ;;  %v2112_v3 = vld [vmem:[%s10720_s3 + $0x48] sm:$0xff]  ;;  %v11315_v4 = vand.u32 4294901760, %v8699_v53  ;;  %v11323_v28 = vand.u32 4294901760, %v8737_v58 }
 0x33c   : > { %v8910_v13 = vsub.f32 %v8832_v31, %v11305_v6  ;;  %v2559_v6 = vand.u32 4294901760, %v2558_v19  ;;  %v11312_v19 = vand.u32 4294901760, %v8747_v34  ;;  %v2595_v18 = vand.u32 4294901760, %v8892_v25 }
 0x33d   : > { %v8932_v42 = vpack.c.bf16 %v11309_v20, %v11308_v46  ;;  %v2600_v29 = vsub.f32 %v8828_v51, %v11311_v24  ;;  %v11313_v46 = vand.u32 4294901760, %v8847_v62  ;;  %v11314_v24 = vand.u32 4294901760, %v8585_v16 }
 0x33e   : > { %11306 = vst [vmem:[#allocation85_spill] sm:$0xff] %v8910_v13  ;;  %6125 = vmatpush1.bf16.msra.mxu0 %v8537_v12  ;;  %v6182_v49 = vpack.c.bf16 %v2553_v60, %v11312_v19  ;;  %v11317_v12 = vand.u32 4294901760, %v8874_v0  ;;  %v11319_v25 = vand.u32 4294901760, %v8920_v8  ;;  %6181 = vmatpush1.bf16.msra.mxu1 %v8641_v54  ;;  %v1914_v19 = vpop.permute.xlu1 %1913  ;;  %v8984_v54 = vand.u32 4294901760, %v2112_v3 }
 0x33f   : > { %11310 = vst [vmem:[#allocation87_spill] sm:$0xff] %v8932_v42  ;;  %v8949_v20 = vsub.f32 %v8847_v62, %v11313_v46  ;;  %v8955_v55 = vpack.c.bf16 %v11315_v4, %v11314_v24  ;;  %6127 = vmatprep.subr.bf16.mxu0 %v8932_v42  ;;  %v11321_v4 = vand.u32 4294901760, %v8780_v26  ;;  %v11322_v24 = vand.u32 4294901760, %v8670_v33  ;;  %v11334_v33 = vld [vmem:[#allocation19_spill] sm:$0xff] }
 0x340   : > { %v8961_v34 = vsub.f32 %v8874_v0, %v11317_v12  ;;  %v8966_v60 = vsub.f32 %v8920_v8, %v11319_v25  ;;  %6183 = vmatprep.subr.bf16.mxu1 %v6182_v49  ;;  %v8982_v25 = vpop.permute.xlu0 %1917  ;;  %11325 = vst [vmem:[#allocation92_spill] sm:$0xff] %v8984_v54  ;;  %v11326_v42 = vand.u32 4294901760, %v8601_v10  ;;  %v11327_v56 = vand.u32 4294901760, %v8701_v35 }
 0x341   : > { %11316 = vst [vmem:[#allocation88_spill] sm:$0xff] %v8955_v55  ;;  %v2606_v46 = vsub.f32 %v8780_v26, %v11321_v4  ;;  %v8977_v12 = vpack.c.bf16 %v11323_v28, %v11322_v24  ;;  %v8980_v55 = vsel %vm363_vm1, %v1914_v19, %v1916_v47  ;;  %v11329_v58 = vand.u32 4294901760, %v8786_v36 }
 0x342   : > { %11318 = vst [vmem:[#allocation89_spill] sm:$0xff] %v8961_v34  ;;  %11320 = vst [vmem:[#allocation90_spill] sm:$0xff] %v8966_v60  ;;  %v8990_v43 = vpack.c.bf16 %v11327_v56, %v11326_v42  ;;  %v2601_v4 = vand.u32 4294901760, %v2600_v29  ;;  %v11330_v24 = vand.u32 4294901760, %v8842_v45  ;;  %v9006_v56 = vsub.f32 %v8816_v9, %v8856_v50 }
 0x343   : > { %11324 = vst [vmem:[#allocation91_spill] sm:$0xff] %v8977_v12  ;;  %v6184_v28 = vpack.c.bf16 %v2559_v6, %v11329_v58  ;;  %6129 = vmatpush1.bf16.msra.mxu0 %v8977_v12  ;;  %v11331_v42 = vand.u32 4294901760, %v8526_v2  ;;  %v11332_v36 = vand.u32 4294901760, %v8689_v44  ;;  %v2719_v29 = vand.u32 4294901760, %v8916_v38  ;;  %v1912_v58 = vpop.permute.xlu1 %1911 }
 0x344   : > { %11328 = vst [vmem:[#allocation93_spill] sm:$0xff] %v8990_v43  ;;  %v9002_v37 = vsub.f32 %v8842_v45, %v11330_v24  ;;  %6131 = vmatprep.subr.bf16.mxu0 %v11334_v33  ;;  %v2607_v47 = vand.u32 4294901760, %v2606_v46  ;;  %v11335_v49 = vand.u32 4294901760, %v8905_v23  ;;  %v2713_v43 = vand.u32 4294901760, %v8966_v60  ;;  %v11336_v46 = vld [vmem:[#allocation70_spill] sm:$0xff] }
 0x345   : > { %v9012_v6 = vpack.c.bf16 %v11332_v36, %v11331_v42  ;;  %6185 = vmatpush1.bf16.msra.mxu1 %v6184_v28  ;;  %v9024_v12 = vsel %vm363_vm1, %v1912_v58, %v1914_v19  ;;  %v9027_v42 = vpop.permute.xlu0 %6934  ;;  %v9030_v28 = vsub.f32 %v2112_v3, %v8984_v54  ;;  %v11337_v36 = vand.u32 4294901760, %v11336_v46  ;;  %v11341_v54 = vld [vmem:[#allocation29_spill] sm:$0xff] }
 0x346   : > { %v9020_v9 = vsub.f32 %v8905_v23, %v11335_v49  ;;  %6187 = vmatprep.subr.bf16.mxu1 %v8652_v15  ;;  %v11338_v24 = vand.u32 4294901760, %v8549_v22  ;;  %v2707_v49 = vand.u32 4294901760, %v8910_v13  ;;  %v2725_v33 = vand.u32 4294901760, %v8961_v34 }
 0x347   : > { %11333 = vst [vmem:[#allocation94_spill] sm:$0xff] %v9012_v6  ;;  %v6936_v19 = vunpack.i.l.bf16 %v9027_v42  ;;  %v6190_v58 = vpack.c.bf16 %v2601_v4, %v2589_v39  ;;  %v11340_v15 = vand.u32 4294901760, %v8980_v55  ;;  %6133 = vmatpush1.bf16.msra.mxu0 %v11341_v54  ;;  %v11342_v46 = vand.u32 4294901760, %v8647_v14  ;;  %v1974_v4 = vpop.permute.xlu1 %1973 }
 0x348   : > { %v9036_v6 = vpack.c.bf16 %v11338_v24, %v11337_v36  ;;  %v11343_v24 = vand.u32 4294901760, %v8761_v41  ;;  %v11346_v22 = vand.u32 4294901760, %v8728_v17  ;;  %v6192_v3 = vpack.c.bf16 %v2607_v47, %v2595_v18 }
 0x349   : > { %v9044_v45 = vsub.f32 %v8980_v55, %v11340_v15  ;;  %6189 = vmatpush1.bf16.msra.mxu1 %v8662_v59  ;;  %v11348_v15 = vld [vmem:[#allocation30_spill] sm:$0xff]  ;;  %v11349_v54 = vand.u32 4294901760, %v8832_v31  ;;  %v11350_v14 = vand.u32 4294901760, %v8878_v1  ;;  %v2714_v59 = vsub.f32 %v8966_v60, %v2713_v43 }
 0x34a   : > { %11339 = vst [vmem:[#allocation95_spill] sm:$0xff] %v9036_v6  ;;  %v9052_v36 = vpack.c.bf16 %v11343_v24, %v11342_v46  ;;  %v11345_v6 = vand.u32 4294901760, %v8657_v40  ;;  %6135 = vmatprep.subr.bf16.mxu0 %v11348_v15  ;;  %v2720_v24 = vsub.f32 %v8916_v38, %v2719_v29  ;;  %6191 = vmatprep.subr.bf16.mxu1 %v6190_v58  ;;  %v11353_v18 = vand.u32 4294901760, %v8828_v51  ;;  %v11364_v60 = vld [vmem:[#allocation74_spill] sm:$0xff] }
 0x34b   : > { %v9066_v50 = vpack.c.bf16 %v11350_v14, %v11349_v54  ;;  %v11355_v14 = vand.u32 4294901760, %v8775_v27  ;;  %v11356_v1 = vand.u32 4294901760, %v8780_v26  ;;  %v2708_v58 = vsub.f32 %v8910_v13, %v2707_v49 }
 0x34c   : > { %11344 = vst [vmem:[#allocation96_spill] sm:$0xff] %v9052_v36  ;;  %v9058_v39 = vpack.c.bf16 %v11346_v22, %v11345_v6  ;;  %v9071_v36 = vsel %vm492_vm8, %v1974_v4, %v6936_v19  ;;  %v1972_v22 = vpop.permute.xlu0 %1971  ;;  %v11352_v6 = vand.u32 4294901760, %v8770_v61  ;;  %v2726_v46 = vsub.f32 %v8961_v34, %v2725_v33 }
 0x34d   : > { %11351 = vst [vmem:[#allocation98_spill] sm:$0xff] %v9066_v50  ;;  %v9084_v54 = vpack.c.bf16 %v11356_v1, %v11355_v14  ;;  %v10908_v47 = vand.u32 4294901760, %v9071_v36  ;;  %v9088_v19 = vsel %vm492_vm8, %v1972_v22, %v1974_v4  ;;  %v11359_v14 = vld [vmem:[#allocation34_spill] sm:$0xff]  ;;  %v9100_v1 = vpack.c.bf16 %v2719_v29, %v2707_v49  ;;  %6193 = vmatpush1.bf16.msra.mxu1 %v6192_v3 }
 0x34e   : > { %11347 = vst [vmem:[#allocation97_spill] sm:$0xff] %v9058_v39  ;;  %v9078_v31 = vpack.c.bf16 %v11353_v18, %v11352_v6  ;;  %v11358_v6 = vand.u32 4294901760, %v9024_v12  ;;  %6137 = vmatpush1.bf16.msra.mxu0 %v11359_v14  ;;  %v6937_v4 = vunpack.i.h.bf16 %v9027_v42  ;;  %v1836_v39 = vpop.permute.xlu1 %1835  ;;  %v11362_v42 = vld [vmem:[#allocation75_spill] sm:$0xff]  ;;  %v11369_v15 = vand.u32 4294901760, %v8752_v57 }
 0x34f   : > { %11357 = vst [vmem:[#allocation100_spill] sm:$0xff] %v9084_v54  ;;  %11360 = vst [vmem:[#allocation101_spill] sm:$0xff] %v9100_v1  ;;  %v9106_v22 = vsub.f32 %v9071_v36, %v10908_v47  ;;  %6139 = vmatprep.subr.bf16.mxu0 %v8632_v52  ;;  %v2721_v54 = vand.u32 4294901760, %v2720_v24  ;;  %v1845_v29 = vsel %vm394_vm2, %v8625_v63, %v1836_v39  ;;  %v11363_v47 = vld [vmem:[#allocation35_spill] sm:$0xff]  ;;  %v2715_v1 = vand.u32 4294901760, %v2714_v59 }
 0x350   : > { %11354 = vst [vmem:[#allocation99_spill] sm:$0xff] %v9078_v31  ;;  %v9096_v18 = vsub.f32 %v9024_v12, %v11358_v6  ;;  %v10911_v31 = vand.u32 4294901760, %v9088_v19  ;;  %v9109_v6 = vpack.c.bf16 %v2725_v33, %v2713_v43  ;;  %v1846_v49 = vsel %vm394_vm2, %v1836_v39, %v11362_v42  ;;  %6195 = vmatprep.subr.bf16.mxu1 %v11363_v47  ;;  %v9121_v3 = vpop.permute.xlu0 %1985 }
 0x351   : > { %v2316_v52 = vand.u32 4294901760, %v1846_v49  ;;  %v2318_v24 = vand.u32 4294901760, %v1845_v29  ;;  %v2709_v43 = vand.u32 4294901760, %v2708_v58  ;;  %v2727_v33 = vand.u32 4294901760, %v2726_v46  ;;  %v11368_v58 = vld [vmem:[#allocation37_spill] sm:$0xff] }
 0x352   : > { %11361 = vst [vmem:[#allocation102_spill] sm:$0xff] %v9109_v6  ;;  %v9114_v14 = vsub.f32 %v9088_v19, %v10911_v31  ;;  %6141 = vmatpush1.bf16.msra.mxu0 %v11364_v60  ;;  %v11365_v63 = vand.u32 4294901760, %v9044_v45  ;;  %v11366_v47 = vand.u32 4294901760, %v8823_v5  ;;  %6197 = vmatpush1.bf16.msra.mxu1 %v11368_v58  ;;  %v1980_v31 = vpop.permute.xlu1 %1979  ;;  %v11371_v60 = vand.u32 4294901760, %v8920_v8 }
 0x353   : > { %v9136_v42 = vsub.f32 %v1846_v49, %v2316_v52  ;;  %v9138_v46 = vsub.f32 %v1845_v29, %v2318_v24  ;;  %v9143_v6 = vpack.c.bf16 %v2316_v52, %v11369_v15  ;;  %v1998_v5 = vsel %vm492_vm8, %v1980_v31, %v6937_v4 }
 0x354   : > { %v9130_v39 = vsub.f32 %v9044_v45, %v11365_v63  ;;  %v9134_v59 = vpack.c.bf16 %v2318_v24, %v11366_v47  ;;  %v11372_v63 = vand.u32 4294901760, %v8874_v0  ;;  %v11374_v47 = vld [vmem:[#allocation38_spill] sm:$0xff]  ;;  %v9153_v49 = vpop.permute.xlu0 %1991  ;;  %v9155_v29 = vpack.c.bf16 %v2721_v54, %v2709_v43 }
 0x355   : > { %11370 = vst [vmem:[#allocation35_spill] sm:$0xff] %v9143_v6  ;;  %6199 = vmatprep.subr.bf16.mxu1 %v11374_v47  ;;  %v9157_v24 = vpack.c.bf16 %v2727_v33, %v2715_v1  ;;  %v2695_v57 = vand.u32 4294901760, %v9136_v42  ;;  %v2701_v52 = vand.u32 4294901760, %v9138_v46  ;;  %v2340_v0 = vand.u32 4294901760, %v1998_v5  ;;  %6143 = vmatprep.subr.bf16.mxu0 %v9143_v6 }
 0x356   : > { %11367 = vst [vmem:[#allocation75_spill] sm:$0xff] %v9134_v59  ;;  %v9149_v34 = vpack.c.bf16 %v11372_v63, %v11371_v60  ;;  %6145 = vmatpush1.bf16.msra.mxu0 %v9134_v59  ;;  %v11375_v60 = vand.u32 4294901760, %v9096_v18  ;;  %v11376_v54 = vand.u32 4294901760, %v9106_v22  ;;  %v11377_v4 = vand.u32 4294901760, %v9114_v14  ;;  %v11378_v63 = vld [vmem:[#allocation39_spill] sm:$0xff]  ;;  %v1920_v47 = vpop.permute.xlu1 %1919 }
 0x357   : > { %v9182_v58 = vsub.f32 %v1998_v5, %v2340_v0  ;;  %6201 = vmatpush1.bf16.msra.mxu1 %v11378_v63  ;;  %6147 = vmatprep.subr.bf16.mxu0 %v9066_v50  ;;  %v2733_v8 = vand.u32 4294901760, %v9130_v39  ;;  %v1930_v59 = vsel %vm363_vm1, %v1920_v47, %v8923_v7  ;;  %v11379_v63 = vand.u32 4294901760, %v9071_v36 }
 0x358   : > { %11373 = vst [vmem:[#allocation37_spill] sm:$0xff] %v9149_v34  ;;  %v9168_v15 = vsub.f32 %v9096_v18, %v11375_v60  ;;  %v9173_v1 = vsub.f32 %v9106_v22, %v11376_v54  ;;  %v9178_v43 = vsub.f32 %v9114_v14, %v11377_v4  ;;  %v2696_v60 = vsub.f32 %v9136_v42, %v2695_v57  ;;  %v1990_v5 = vpop.permute.xlu0 %1989 }
 0x359   : > { %v2702_v54 = vsub.f32 %v9138_v46, %v2701_v52  ;;  %v1929_v4 = vsel %vm363_vm1, %v8982_v25, %v1920_v47  ;;  %6203 = vmatprep.subr.bf16.mxu1 %v8666_v32  ;;  %v9196_v33 = vpack.c.bf16 %v2340_v0, %v11379_v63  ;;  %v11381_v50 = vand.u32 4294901760, %v8847_v62 }
 0x35a   : > { %v2332_v39 = vand.u32 4294901760, %v1930_v59  ;;  %v2334_v38 = vand.u32 4294901760, %v1929_v4  ;;  %v9205_v25 = vsel %vm492_vm8, %v1990_v5, %v9153_v49  ;;  %6149 = vmatpush1.bf16.msra.mxu0 %v9149_v34  ;;  %v2697_v32 = vand.u32 4294901760, %v2696_v60  ;;  %v1978_v5 = vpop.permute.xlu1 %1977 }
 0x35b   : > { %11380 = vst [vmem:[#allocation38_spill] sm:$0xff] %v9196_v33  ;;  %v9200_v6 = vpack.c.bf16 %v2695_v57, %v11381_v50  ;;  %v2703_v36 = vand.u32 4294901760, %v2702_v54  ;;  %v11383_v50 = vand.u32 4294901760, %v9024_v12  ;;  %6205 = vmatpush1.bf16.msra.mxu1 %v8693_v21  ;;  %v11385_v13 = vand.u32 4294901760, %v8980_v55 }
 0x35c   : > { %v9215_v47 = vsub.f32 %v1930_v59, %v2332_v39  ;;  %v9217_v63 = vsub.f32 %v1929_v4, %v2334_v38  ;;  %v11387_v60 = vand.u32 4294901760, %v9205_v25  ;;  %v1997_v12 = vsel %vm492_vm8, %v1978_v5, %v1980_v31 }
 0x35d   : > { %11382 = vst [vmem:[#allocation39_spill] sm:$0xff] %v9200_v6  ;;  %v9213_v57 = vpack.c.bf16 %v2334_v38, %v11383_v50  ;;  %v9222_v7 = vpack.c.bf16 %v2332_v39, %v11385_v13  ;;  %v9230_v50 = vpop.permute.xlu0 %2059  ;;  %v11388_v59 = vand.u32 4294901760, %v8949_v20  ;;  %v11389_v4 = vand.u32 4294901760, %v9020_v9 }
 0x35e   : > { %v9227_v54 = vsub.f32 %v9205_v25, %v11387_v60  ;;  %v2743_v0 = vand.u32 4294901760, %v9215_v47  ;;  %v2749_v55 = vand.u32 4294901760, %v9217_v63  ;;  %v2342_v39 = vand.u32 4294901760, %v1997_v12 }
 0x35f   : > { %11384 = vst [vmem:[#allocation103_spill] sm:$0xff] %v9213_v57  ;;  %11386 = vst [vmem:[#allocation104_spill] sm:$0xff] %v9222_v7  ;;  %v6206_v38 = vpack.c.bf16 %v2697_v32, %v11388_v59  ;;  %v6208_v21 = vpack.c.bf16 %v2703_v36, %v11389_v4  ;;  %6151 = vmatprep.subr.bf16.mxu0 %v9222_v7  ;;  %v2739_v31 = vand.u32 4294901760, %v9168_v15  ;;  %v11390_v20 = vand.u32 4294901760, %v9182_v58  ;;  %v6940_v4 = vpop.permute.xlu1 %6939 }
 0x360   : > { %6153 = vmatpush1.bf16.msra.mxu0 %v9213_v57  ;;  %v11391_v36 = vand.u32 4294901760, %v8905_v23  ;;  %v11393_v60 = vand.u32 4294901760, %v9088_v19  ;;  %v2744_v15 = vsub.f32 %v9215_v47, %v2743_v0  ;;  %v6942_v13 = vunpack.i.h.bf16 %v6940_v4 }
 0x361   : > { %6207 = vmatprep.subr.bf16.mxu1 %v6206_v38  ;;  %v2768_v9 = vsub.f32 %v9182_v58, %v11390_v20  ;;  %v9256_v38 = vsub.f32 %v1997_v12, %v2342_v39  ;;  %6155 = vmatprep.subr.bf16.mxu0 %v9196_v33  ;;  %v2757_v20 = vand.u32 4294901760, %v9173_v1  ;;  %v6941_v32 = vunpack.i.l.bf16 %v6940_v4 }
 0x362   : > { %v9250_v5 = vpack.c.bf16 %v2701_v52, %v11391_v36  ;;  %v9254_v59 = vpack.c.bf16 %v2342_v39, %v11393_v60  ;;  %6209 = vmatpush1.bf16.msra.mxu1 %v6208_v21  ;;  %v9262_v52 = vpop.permute.xlu0 %2065  ;;  %v2750_v19 = vsub.f32 %v9217_v63, %v2749_v55  ;;  %v2745_v39 = vand.u32 4294901760, %v2744_v15 }
 0x363   : > { %11395 = vst [vmem:[#allocation107_spill] sm:$0xff] %v9256_v38  ;;  %6211 = vmatprep.subr.bf16.mxu1 %v9155_v29  ;;  %v2769_v36 = vand.u32 4294901760, %v2768_v9  ;;  %v2773_v12 = vand.u32 4294901760, %v9256_v38  ;;  %v2763_v60 = vand.u32 4294901760, %v9178_v43  ;;  %v2000_v1 = vsel %vm492_vm8, %v9121_v3, %v6941_v32  ;;  %v1984_v9 = vpop.permute.xlu1 %1983 }
 0x364   : > { %11392 = vst [vmem:[#allocation105_spill] sm:$0xff] %v9250_v5  ;;  %11394 = vst [vmem:[#allocation106_spill] sm:$0xff] %v9254_v59  ;;  %v2797_v5 = vand.u32 4294901760, %v9227_v54  ;;  %v2002_v29 = vsel %vm492_vm8, %v9153_v49, %v6942_v13  ;;  %6157 = vmatpush1.bf16.msra.mxu0 %v9254_v59  ;;  %v2751_v4 = vand.u32 4294901760, %v2750_v19  ;;  %v6214_v6 = vpack.c.bf16 %v2745_v39, %v2733_v8 }
 0x365   : > { %v2344_v33 = vand.u32 4294901760, %v2000_v1  ;;  %v2348_v21 = vand.u32 4294901760, %v2002_v29  ;;  %v2774_v15 = vsub.f32 %v9256_v38, %v2773_v12  ;;  %v1999_v43 = vsel %vm492_vm8, %v1984_v9, %v9121_v3 }
 0x366   : > { %6213 = vmatpush1.bf16.msra.mxu1 %v9157_v24  ;;  %v6216_v57 = vpack.c.bf16 %v2751_v4, %v2739_v31  ;;  %v6218_v7 = vpack.c.bf16 %v2769_v36, %v2757_v20  ;;  %v11396_v32 = vand.u32 4294901760, %v9044_v45  ;;  %v2346_v49 = vand.u32 4294901760, %v1999_v43  ;;  %v2062_v13 = vpop.permute.xlu0 %2061 }
 0x367   : > { %6215 = vmatprep.subr.bf16.mxu1 %v6214_v6  ;;  %v9283_v19 = vpack.c.bf16 %v2348_v21, %v2344_v33  ;;  %v9285_v24 = vsub.f32 %v2000_v1, %v2344_v33  ;;  %v9287_v8 = vsub.f32 %v2002_v29, %v2348_v21  ;;  %v2775_v39 = vand.u32 4294901760, %v2774_v15  ;;  %v2058_v1 = vpop.permute.xlu1 %2057 }
 0x368   : > { %v9281_v34 = vpack.c.bf16 %v2743_v0, %v11396_v32  ;;  %v11399_v59 = vand.u32 4294901760, %v9096_v18  ;;  %v11401_v3 = vand.u32 4294901760, %v9106_v22  ;;  %v11402_v31 = vand.u32 4294901760, %v9182_v58 }
 0x369   : > { %11398 = vst [vmem:[#allocation109_spill] sm:$0xff] %v9283_v19  ;;  %v11404_v20 = vand.u32 4294901760, %v9114_v14  ;;  %v11406_v33 = vand.u32 4294901760, %v9205_v25  ;;  %v9307_v21 = vsub.f32 %v1999_v43, %v2346_v49  ;;  %6159 = vmatprep.subr.bf16.mxu0 %v9283_v19  ;;  %v2080_v29 = vsel %vm304_vm0, %v2058_v1, %v9230_v50  ;;  %v2105_v25 = vld [vmem:[%s10720_s3 + $0x10] sm:$0xff] }
 0x36a   : > { %11397 = vst [vmem:[#allocation108_spill] sm:$0xff] %v9281_v34  ;;  %v9291_v38 = vpack.c.bf16 %v2749_v55, %v11399_v59  ;;  %v9297_v0 = vpack.c.bf16 %v11402_v31, %v11401_v3  ;;  %6217 = vmatpush1.bf16.msra.mxu1 %v6216_v57  ;;  %v2779_v55 = vand.u32 4294901760, %v9285_v24  ;;  %v2791_v59 = vand.u32 4294901760, %v9287_v8  ;;  %v11446_v34 = vld [vmem:[#allocation58_spill] sm:$0xff] }
 0x36b   : > { %v9301_v6 = vpack.c.bf16 %v2773_v12, %v11404_v20  ;;  %v9305_v36 = vpack.c.bf16 %v11406_v33, %v2346_v49  ;;  %6219 = vmatprep.subr.bf16.mxu1 %v6218_v7  ;;  %v6220_v12 = vpack.c.bf16 %v2775_v39, %v2763_v60  ;;  %v2785_v4 = vand.u32 4294901760, %v9307_v21  ;;  %v2072_v49 = vpop.permute.xlu0 %2071  ;;  %v2064_v39 = vpop.permute.xlu1 %2063 }
 0x36c   : > { %11400 = vst [vmem:[#allocation110_spill] sm:$0xff] %v9291_v38  ;;  %11403 = vst [vmem:[#allocation111_spill] sm:$0xff] %v9297_v0  ;;  %v2780_v15 = vsub.f32 %v9285_v24, %v2779_v55  ;;  %v2798_v7 = vsub.f32 %v9227_v54, %v2797_v5  ;;  %v3694_v50 = vand.u32 4294901760, %v2080_v29  ;;  %v2792_v60 = vsub.f32 %v9287_v8, %v2791_v59 }
 0x36d   : > { %11405 = vst [vmem:[#allocation112_spill] sm:$0xff] %v9301_v6  ;;  %6161 = vmatpush1.bf16.msra.mxu0 %v9305_v36  ;;  %v9327_v32 = vpack.c.bf16 %v2791_v59, %v2779_v55  ;;  %v2786_v31 = vsub.f32 %v9307_v21, %v2785_v4  ;;  %v2213_v20 = vsel %vm2211_vm9, %v2105_v25, 0  ;;  %v9331_v33 = vpack.c.bf16 %v2797_v5, %v2785_v4  ;;  %v11409_v6 = vld [vmem:[#allocation60_spill] sm:$0xff] }
 0x36e   : > { %6221 = vmatpush1.bf16.msra.mxu1 %v6220_v12  ;;  %v2781_v3 = vand.u32 4294901760, %v2780_v15  ;;  %v2081_v9 = vsel %vm304_vm0, %v2062_v13, %v2064_v39  ;;  %v2082_v57 = vsel %vm304_vm0, %v2064_v39, %v9262_v52  ;;  %v11410_v0 = vand.u32 4294901760, %v11409_v6  ;;  %v11411_v15 = vld [vmem:[#allocation62_spill] sm:$0xff] }
 0x36f   : > { %11407 = vst [vmem:[#allocation113_spill] sm:$0xff] %v9327_v32  ;;  %11408 = vst [vmem:[#allocation114_spill] sm:$0xff] %v9331_v33  ;;  %v2793_v55 = vand.u32 4294901760, %v2792_v60  ;;  %v3698_v12 = vand.u32 4294901760, %v2082_v57  ;;  %v3700_v43 = vand.u32 4294901760, %v2081_v9  ;;  %v11412_v32 = vand.u32 4294901760, %v11411_v15  ;;  %v2056_v60 = vpop.permute.xlu1 %2055 }
 0x370   : > { %2363 = vmatmul.mubr.f32.vlgmr.msra.gmra.mrb[8].mxu0 %v11410_v0  ;;  %v2787_v38 = vand.u32 4294901760, %v2786_v31  ;;  %v2799_v25 = vand.u32 4294901760, %v2798_v7  ;;  %v9341_v5 = vsub.f32 %v2080_v29, %v3694_v50  ;;  %v11414_v13 = vand.u32 4294901760, %v9006_v56 }
 0x371   : > { %2373 = vmatprep.mubr.f32.mxu0 %v11412_v32  ;;  %v6222_v4 = vpack.c.bf16 %v2793_v55, %v2781_v3  ;;  %v9346_v39 = vand.u32 4294901760, %v2213_v20  ;;  %v9348_v0 = vpack.c.bf16 %v3698_v12, %v3694_v50  ;;  %v9350_v6 = vsub.f32 %v2082_v57, %v3698_v12  ;;  %v2078_v57 = vpop.permute.xlu0 %2077 }
 0x372   : > { %11413 = vst [vmem:[#allocation60_spill] sm:$0xff] %v9341_v5  ;;  %v2403_v52 = vsub.f32 %v9006_v56, %v11414_v13  ;;  %v6224_v59 = vpack.c.bf16 %v2799_v25, %v2787_v38  ;;  %v2079_v15 = vsel %vm304_vm0, %v2056_v60, %v2058_v1  ;;  %v11418_v7 = vand.u32 4294901760, %v8499_v30  ;;  %v11421_v1 = vld [vmem:[#allocation43_spill] sm:$0xff] }
 0x373   : > { %11415 = vst [vmem:[#allocation62_spill] sm:$0xff] %v9346_v39  ;;  %11416 = vst [vmem:[#allocation115_spill] sm:$0xff] %v9348_v0  ;;  %6223 = vmatprep.subr.bf16.mxu1 %v6222_v4  ;;  %v2394_v29 = vand.u32 4294901760, %v9002_v37  ;;  %v11419_v32 = vand.u32 4294901760, %v9030_v28  ;;  %v3825_v31 = vand.u32 4294901760, %v9350_v6  ;;  %v9360_v50 = vsub.f32 %v2081_v9, %v3700_v43  ;;  %6483 = vmatprep.subr.bf16.mxu0 %v9348_v0  ;;  %v11422_v37 = vld [vmem:[#allocation31_spill] sm:$0xff]  ;;  %v2070_v60 = vpop.permute.xlu1 %2069 }
 0x374   : > { %11417 = vst [vmem:[#allocation116_spill] sm:$0xff] %v9350_v6  ;;  %2379 = vmatmul.mubr.f32.gmra.mrb[10].mxu0 %v11418_v7  ;;  %v3696_v55 = vand.u32 4294901760, %v2079_v15  ;;  %6225 = vmatpush1.bf16.msra.mxu1 %v6224_v59  ;;  %v3813_v30 = vand.u32 4294901760, %v9341_v5  ;;  %v11423_v12 = vpack.c.bf16 %v11421_v1, %v11422_v37  ;;  %v11424_v25 = vand.u32 4294901760, %v8900_v11 }
 0x375   : > { %v2409_v3 = vsub.f32 %v9030_v28, %v11419_v32  ;;  %11420 = vst [vmem:[#allocation117_spill] sm:$0xff] %v9360_v50  ;;  %v2404_v4 = vand.u32 4294901760, %v2403_v52  ;;  %v9372_v9 = vsub.f32 %v2213_v20, %v9346_v39  ;;  %v2084_v7 = vsel %vm304_vm0, %v2070_v60, %v2072_v49  ;;  %v11428_v32 = vld [vmem:[#allocation41_spill] sm:$0xff] }
 0x376   : > { %6227 = vmatprep.subr.bf16.mxu1 %v11423_v12  ;;  %2389 = vmatprep.mubr.f32.mxu0 %v11424_v25  ;;  %v9374_v13 = vpack.c.bf16 %v3700_v43, %v3696_v55  ;;  %v9376_v59 = vsub.f32 %v2079_v15, %v3696_v55  ;;  %v9380_v0 = vpack.c.bf16 %v3825_v31, %v3813_v30  ;;  %v3831_v11 = vand.u32 4294901760, %v9360_v50  ;;  %v11430_v12 = vld [vmem:[#allocation44_spill] sm:$0xff] }
 0x377   : > { %11425 = vst [vmem:[#allocation43_spill] sm:$0xff] %v9372_v9  ;;  %2804 = vmatmul.mubr.f32.vlgmr.msra.gmra.mrb[0].mxu1 %v11428_v32  ;;  %v2410_v38 = vand.u32 4294901760, %v2409_v3  ;;  %v3702_v43 = vand.u32 4294901760, %v2084_v7  ;;  %v11431_v15 = vld [vmem:[#allocation16_spill] sm:$0xff]  ;;  %v11433_v49 = vpack.c.bf16 %v8699_v53, %v8585_v16  ;;  %v2074_v3 = vpop.permute.xlu0 %2073  ;;  %v11435_v32 = vld [vmem:[#allocation47_spill] sm:$0xff] }
 0x378   : > { %11426 = vst [vmem:[#allocation31_spill] sm:$0xff] %v9374_v13  ;;  %11427 = vst [vmem:[#allocation118_spill] sm:$0xff] %v9376_v59  ;;  %2395 = vmatmul.mubr.f32.gmra.mrb[12].mxu0 %v2394_v29  ;;  %v3819_v52 = vand.u32 4294901760, %v9376_v59  ;;  %v11432_v55 = vpack.c.bf16 %v11430_v12, %v11431_v15  ;;  %2810 = vmatprep.mubr.f32.mxu1 %v11435_v32  ;;  %v11437_v16 = vld [vmem:[#allocation55_spill] sm:$0xff]  ;;  %v11439_v29 = vmov 0.0   ;;  %v11441_v32 = vld [vmem:[#allocation21_spill] sm:$0xff] }
 0x379   : > { %11429 = vst [vmem:[#allocation119_spill] sm:$0xff] %v9380_v0  ;;  %6485 = vmatpush1.bf16.msra.mxu0 %v9374_v13  ;;  %2405 = vmatprep.mubr.f32.mxu0 %v2404_v4  ;;  %v9394_v25 = vsub.f32 %v2084_v7, %v3702_v43  ;;  %v2076_v0 = vpop.permute.xlu1 %2075  ;;  %v3826_v13 = vsub.f32 %v9350_v6, %v3825_v31  ;;  %v11445_v6 = vand.u32 4294901760, %v9372_v9 }
 0x37a   : > { %6229 = vmatpush1.bf16.msra.mxu1 %v11432_v55  ;;  %v9397_v20 = vpack.c.bf16 %v3831_v11, %v3819_v52  ;;  %v2085_v33 = vsel %vm304_vm0, %v2074_v3, %v2076_v0  ;;  %v2086_v55 = vsel %vm304_vm0, %v2076_v0, %v2078_v57  ;;  %v11438_v7 = vpack.c.bf16 %v8701_v35, %v8601_v10  ;;  %v11443_v0 = vld [vmem:[#allocation15_spill] sm:$0xff]  ;;  %v11444_v57 = vld [vmem:[#allocation52_spill] sm:$0xff] }
 0x37b   : > { %6231 = vmatprep.subr.bf16.mxu1 %v11433_v49  ;;  %11434 = vst [vmem:[#allocation44_spill] sm:$0xff] %v9394_v25  ;;  %2812 = vmatmul.mubr.f32.gmra.mrb[2].mxu1 %v11437_v16  ;;  %v3837_v53 = vand.u32 4294901760, %v9394_v25  ;;  %v3706_v4 = vand.u32 4294901760, %v2086_v55  ;;  %v3708_v49 = vand.u32 4294901760, %v2085_v33  ;;  %v3814_v31 = vsub.f32 %v9341_v5, %v3813_v30 }
 0x37c   : > { %11436 = vst [vmem:[#allocation16_spill] sm:$0xff] %v9397_v20  ;;  %2411 = vmatmul.mubr.f32.gmra.mrb[14].mxu0 %v2410_v38  ;;  %v11440_v20 = vld [vmem:[#allocation51_spill] sm:$0xff]  ;;  %v6236_v38 = vpack.c.bf16 %v11444_v57, %v11443_v0  ;;  %v3770_v16 = vsub.f32 %v9372_v9, %v11445_v6  ;;  %2818 = vmatprep.mubr.f32.mxu1 %v11446_v34  ;;  %v3827_v30 = vand.u32 4294901760, %v3826_v13  ;;  %v11451_v13 = vld [vmem:[#allocation33_spill] sm:$0xff]  ;;  %v11456_v34 = vld [vmem:[#allocation92_spill] sm:$0xff] }
 0x37d   : > { %3766 = vmatprep.mubr.f32.mxu0 %v11439_v29  ;;  %v11442_v3 = vpack.c.bf16 %v11440_v20, %v11441_v32  ;;  %v3820_v10 = vsub.f32 %v9376_v59, %v3819_v52  ;;  %v9419_v35 = vpack.c.bf16 %v3706_v4, %v3702_v43  ;;  %v9423_v39 = vsub.f32 %v2085_v33, %v3708_v49  ;;  %v11453_v9 = vld [vmem:[#allocation83_spill] sm:$0xff] }
 0x37e   : > { %6233 = vmatpush1.bf16.msra.mxu1 %v11438_v7  ;;  %v9421_v7 = vsub.f32 %v2086_v55, %v3706_v4  ;;  %v3832_v20 = vsub.f32 %v9360_v50, %v3831_v11  ;;  %v3838_v5 = vsub.f32 %v9394_v25, %v3837_v53  ;;  %v11450_v11 = vpack.c.bf16 %v8689_v44, %v8526_v2 }
 0x37f   : > { %6235 = vmatprep.subr.bf16.mxu1 %v11442_v3  ;;  %11447 = vst [vmem:[#allocation21_spill] sm:$0xff] %v9419_v35  ;;  %11449 = vst [vmem:[#allocation120_spill] sm:$0xff] %v9423_v39  ;;  %v2068_v3 = vpop.permute.xlu1 %2067  ;;  %2820 = vmatmul.mubr.f32.gmra.mrb[4].mxu1 %v11291_v48  ;;  %v3855_v52 = vand.u32 4294901760, %v9423_v39  ;;  %v3815_v4 = vand.u32 4294901760, %v3814_v31  ;;  %v3821_v59 = vand.u32 4294901760, %v3820_v10  ;;  %v11459_v10 = vld [vmem:[#allocation70_spill] sm:$0xff] }
 0x380   : > { %11448 = vst [vmem:[#allocation15_spill] sm:$0xff] %v9421_v7  ;;  %v2083_v57 = vsel %vm304_vm0, %v2068_v3, %v2070_v60  ;;  %v3849_v6 = vand.u32 4294901760, %v9421_v7  ;;  %6487 = vmatprep.subr.bf16.mxu0 %v9419_v35  ;;  %v11452_v60 = vld [vmem:[#allocation64_spill] sm:$0xff]  ;;  %v3771_v3 = vand.u32 4294901760, %v3770_v16  ;;  %2826 = vmatprep.mubr.f32.mxu1 %v11453_v9  ;;  %v3833_v48 = vand.u32 4294901760, %v3832_v20  ;;  %v11463_v31 = vld [vmem:[#allocation46_spill] sm:$0xff] }
 0x381   : > { %v3704_v43 = vand.u32 4294901760, %v2083_v57  ;;  %v6242_v55 = vpack.c.bf16 %v11452_v60, %v11451_v13  ;;  %v6490_v33 = vpack.c.bf16 %v3827_v30, %v3815_v4  ;;  %v3839_v25 = vand.u32 4294901760, %v3838_v5  ;;  %6944 = vrot.lane.b32.xlu0 %v11439_v29, %s7035_s19  ;;  %6949 = vrot.lane.b32.xlu1 %v11439_v29, %s7041_s15 }
 0x382   : > { %6237 = vmatpush1.bf16.msra.mxu1 %v6236_v38  ;;  %v3850_v35 = vsub.f32 %v9421_v7, %v3849_v6  ;;  %v9446_v2 = vpack.c.bf16 %v3849_v6, %v3837_v53  ;;  %v3856_v44 = vsub.f32 %v9423_v39, %v3855_v52  ;;  %v6492_v53 = vpack.c.bf16 %v3833_v48, %v3821_v59  ;;  %v11461_v6 = vld [vmem:[#allocation18_spill] sm:$0xff]  ;;  %v11468_v48 = vld [vmem:[#allocation40_spill] sm:$0xff] }
 0x383   : > { %6239 = vmatprep.subr.bf16.mxu1 %v11450_v11  ;;  %v9440_v50 = vpack.c.bf16 %v3708_v49, %v3704_v43  ;;  %v9442_v38 = vsub.f32 %v2083_v57, %v3704_v43  ;;  %2828 = vmatmul.mubr.f32.gmra.mrb[6].mxu1 %v11456_v34  ;;  %v11458_v49 = vld [vmem:[#allocation73_spill] sm:$0xff]  ;;  %v11469_v59 = vld [vmem:[#allocation66_spill] sm:$0xff]  ;;  %v11545_v39 = vand.u32 4294901760, %v11421_v1  ;;  %v11550_v1 = vld [vmem:[#allocation88_spill] sm:$0xff] }
 0x384   : > { %11457 = vst [vmem:[#allocation83_spill] sm:$0xff] %v9446_v2  ;;  %v11460_v57 = vpack.c.bf16 %v11458_v49, %v11459_v10  ;;  %v3851_v20 = vand.u32 4294901760, %v3850_v35  ;;  %3028 = vmatprep.mubr.f32.mxu1 %v11461_v6  ;;  %v3857_v11 = vand.u32 4294901760, %v3856_v44  ;;  %v11464_v2 = vld [vmem:[#allocation32_spill] sm:$0xff]  ;;  %v11466_v35 = vld [vmem:[#allocation78_spill] sm:$0xff]  ;;  %v11475_v10 = vpack.c.bf16 %v8780_v26, %v8775_v27  ;;  %v11491_v26 = vld [vmem:[#allocation49_spill] sm:$0xff] }
 0x385   : > { %11454 = vst [vmem:[#allocation33_spill] sm:$0xff] %v9440_v50  ;;  %11455 = vst [vmem:[#allocation64_spill] sm:$0xff] %v9442_v38  ;;  %v3843_v16 = vand.u32 4294901760, %v9442_v38  ;;  %6489 = vmatpush1.bf16.msra.mxu0 %v9440_v50  ;;  %v11465_v49 = vpack.c.bf16 %v11463_v31, %v11464_v2  ;;  %v11472_v44 = vld [vmem:[#allocation36_spill] sm:$0xff]  ;;  %v2108_v50 = vld [vmem:[%s10720_s3 + $0x28] sm:$0xff]  ;;  %6954 = vrot.lane.b32.xlu0 %v11439_v29, %s7034_s18 }
 0x386   : > { %6241 = vmatpush1.bf16.msra.mxu1 %v11460_v57  ;;  %6491 = vmatprep.subr.bf16.mxu0 %v6490_v33  ;;  %v6494_v30 = vpack.c.bf16 %v3851_v20, %v3839_v25  ;;  %v6250_v25 = vpack.c.bf16 %v11469_v59, %v11468_v48  ;;  %v11476_v57 = vld [vmem:[#allocation10_spill] sm:$0xff]  ;;  %v11477_v20 = vld [vmem:[#allocation12_spill] sm:$0xff] }
 0x387   : > { %6243 = vmatprep.subr.bf16.mxu1 %v6242_v55  ;;  %v3844_v5 = vsub.f32 %v9442_v38, %v3843_v16  ;;  %v9458_v43 = vpack.c.bf16 %v3855_v52, %v3843_v16  ;;  %v11467_v55 = vpack.c.bf16 %v8761_v41, %v11466_v35  ;;  %v11470_v52 = vpack.c.bf16 %v8728_v17, %v8657_v40  ;;  %v11479_v40 = vld [vmem:[#allocation11_spill] sm:$0xff]  ;;  %v11486_v35 = vld [vmem:[#allocation68_spill] sm:$0xff] }
 0x388   : > { %3772 = vmatmul.mubr.f32.vlgmr.msra.gmra.mrb[16].mxu0 %v3771_v3  ;;  %v11471_v3 = vld [vmem:[#allocation53_spill] sm:$0xff]  ;;  %v11474_v41 = vpack.c.bf16 %v8828_v51, %v8770_v61  ;;  %v11480_v17 = vld [vmem:[#allocation23_spill] sm:$0xff]  ;;  %v11487_v51 = vld [vmem:[#allocation20_spill] sm:$0xff]  ;;  %v11544_v38 = vand.u32 4294901760, %v11422_v37  ;;  %6959 = vrot.lane.b32.xlu1 %v11439_v29, %s7035_s19 }
 0x389   : > { %11462 = vst [vmem:[#allocation92_spill] sm:$0xff] %v9458_v43  ;;  %v3845_v4 = vand.u32 4294901760, %v3844_v5  ;;  %6493 = vmatpush1.bf16.msra.mxu0 %v6492_v53  ;;  %3777 = vmatprep.mubr.f32.mxu0 %v11439_v29  ;;  %v11473_v16 = vpack.c.bf16 %v11471_v3, %v11472_v44  ;;  %v11478_v5 = vpack.c.bf16 %v11476_v57, %v11477_v20  ;;  %v11490_v27 = vld [vmem:[#allocation56_spill] sm:$0xff]  ;;  %v11498_v20 = vld [vmem:[#allocation89_spill] sm:$0xff]  ;;  %v11543_v43 = vld [vmem:[#allocation106_spill] sm:$0xff] }
 0x38a   : > { %6245 = vmatpush1.bf16.msra.mxu1 %v11465_v49  ;;  %6495 = vmatprep.subr.bf16.mxu0 %v6494_v30  ;;  %v11481_v53 = vpack.c.bf16 %v11479_v40, %v11480_v17  ;;  %v11482_v30 = vld [vmem:[#allocation17_spill] sm:$0xff]  ;;  %v11485_v49 = vld [vmem:[#allocation48_spill] sm:$0xff]  ;;  %v11501_v17 = vpack.c.bf16 %v9215_v47, %v9044_v45  ;;  %v11507_v45 = vpack.c.bf16 %v9227_v54, %v9307_v21  ;;  %v11517_v54 = vld [vmem:[#allocation59_spill] sm:$0xff] }
 0x38b   : > { %6247 = vmatprep.subr.bf16.mxu1 %v11467_v55  ;;  %v6496_v33 = vpack.c.bf16 %v3857_v11, %v3845_v4  ;;  %v11483_v11 = vld [vmem:[#allocation22_spill] sm:$0xff]  ;;  %v6266_v61 = vpack.c.bf16 %v11486_v35, %v11485_v49  ;;  %v11488_v55 = vld [vmem:[#allocation24_spill] sm:$0xff]  ;;  %v11508_v47 = vld [vmem:[#allocation45_spill] sm:$0xff]  ;;  %v6354_v7 = vpack.c.bf16 %v11545_v39, %v11544_v38  ;;  %6964 = vrot.lane.b32.xlu0 %v11439_v29, %s7041_s15 }
 0x38c   : > { %v11484_v4 = vpack.c.bf16 %v11482_v30, %v11483_v11  ;;  %v11514_v30 = vld [vmem:[#allocation79_spill] sm:$0xff]  ;;  %v11519_v11 = vld [vmem:[#allocation14_spill] sm:$0xff] }
 0x38d   : > { %6497 = vmatpush1.bf16.msra.mxu0 %v6496_v33  ;;  %v11489_v33 = vpack.c.bf16 %v11487_v51, %v11488_v55  ;;  %v11518_v21 = vld [vmem:[#allocation63_spill] sm:$0xff]  ;;  %v11523_v55 = vld [vmem:[#allocation69_spill] sm:$0xff] }
 0x38e   : > { %6249 = vmatpush1.bf16.msra.mxu1 %v11470_v52  ;;  %v11493_v52 = vpack.c.bf16 %v9136_v42, %v8847_v62  ;;  %v11502_v62 = vpack.c.bf16 %v9217_v63, %v9096_v18  ;;  %v11504_v42 = vld [vmem:[#allocation107_spill] sm:$0xff]  ;;  %v11509_v18 = vld [vmem:[#allocation50_spill] sm:$0xff] }
 0x38f   : > { %6251 = vmatprep.subr.bf16.mxu1 %v6250_v25  ;;  %v11492_v25 = vpack.c.bf16 %v11490_v27, %v11491_v26  ;;  %v11510_v63 = vld [vmem:[#allocation42_spill] sm:$0xff]  ;;  %v11522_v51 = vld [vmem:[#allocation71_spill] sm:$0xff]  ;;  %4548 = vrot.lane.b32.xlu0 %v11439_v29, %s7034_s18 }
 0x392   : > { %6253 = vmatpush1.bf16.msra.mxu1 %v11473_v16  ;;  %v11494_v16 = vpack.c.bf16 %v9138_v46, %v8905_v23  ;;  %v11503_v23 = vpack.c.bf16 %v9182_v58, %v9106_v22  ;;  %v11505_v46 = vpack.c.bf16 %v11504_v42, %v9114_v14  ;;  %v11511_v22 = vld [vmem:[#allocation54_spill] sm:$0xff]  ;;  %v11512_v58 = vld [vmem:[#allocation80_spill] sm:$0xff]  ;;  %v11513_v14 = vld [vmem:[#allocation57_spill] sm:$0xff] }
 0x393   : > { %6255 = vmatprep.subr.bf16.mxu1 %v11474_v41  ;;  %v11495_v41 = vld [vmem:[#allocation86_spill] sm:$0xff]  ;;  %v11549_v39 = vand.u32 4294901760, %v11511_v22 }
 0x394   : > { %v11538_v42 = vld [vmem:[#allocation98_spill] sm:$0xff] }
 0x396   : > { %6257 = vmatpush1.bf16.msra.mxu1 %v11475_v10  ;;  %v11496_v10 = vld [vmem:[#allocation85_spill] sm:$0xff] }
 0x397   : > { %6259 = vmatprep.subr.bf16.mxu1 %v11478_v5  ;;  %v11497_v57 = vpack.c.bf16 %v11495_v41, %v11496_v10  ;;  %v11499_v5 = vld [vmem:[#allocation90_spill] sm:$0xff]  ;;  %v11528_v41 = vld [vmem:[#allocation87_spill] sm:$0xff] }
 0x398   : > { %v11500_v40 = vpack.c.bf16 %v11498_v20, %v11499_v5  ;;  %v11529_v10 = vld [vmem:[#allocation91_spill] sm:$0xff]  ;;  %v11532_v20 = vld [vmem:[#allocation30_spill] sm:$0xff] }
 0x399   : > { %v11533_v5 = vld [vmem:[#allocation34_spill] sm:$0xff] }
 0x39a   : > { %6261 = vmatpush1.bf16.msra.mxu1 %v11481_v53  ;;  %v11506_v53 = vpack.c.bf16 %v9287_v8, %v9285_v24  ;;  %v11515_v24 = vld [vmem:[#allocation65_spill] sm:$0xff]  ;;  %v11516_v8 = vld [vmem:[#allocation67_spill] sm:$0xff] }
 0x39b   : > { %6263 = vmatprep.subr.bf16.mxu1 %v11484_v4  ;;  %v11520_v4 = vld [vmem:[#allocation81_spill] sm:$0xff] }
 0x39e   : > { %6265 = vmatpush1.bf16.msra.mxu1 %v11489_v33  ;;  %v11524_v33 = vld [vmem:[#allocation82_spill] sm:$0xff] }
 0x39f   : > { %6267 = vmatprep.subr.bf16.mxu1 %v6266_v61  ;;  %v11521_v61 = vand.u32 4294901760, %v11461_v6  ;;  %v11531_v6 = vld [vmem:[#allocation29_spill] sm:$0xff] }
 0x3a2   : > { %6269 = vmatpush1.bf16.msra.mxu1 %v11492_v25  ;;  %v11525_v25 = vld [vmem:[#allocation84_spill] sm:$0xff] }
 0x3a3   : > { %6271 = vmatprep.subr.bf16.mxu1 %v11493_v52  ;;  %v11526_v52 = vld [vmem:[#allocation76_spill] sm:$0xff] }
 0x3a6   : > { %6273 = vmatpush1.bf16.msra.mxu1 %v11494_v16  ;;  %v11527_v16 = vld [vmem:[#allocation72_spill] sm:$0xff] }
 0x3a7   : > { %6275 = vmatprep.subr.bf16.mxu1 %v11497_v57  ;;  %v11530_v57 = vld [vmem:[#allocation19_spill] sm:$0xff] }
 0x3aa   : > { %6277 = vmatpush1.bf16.msra.mxu1 %v11500_v40  ;;  %v11534_v40 = vld [vmem:[#allocation77_spill] sm:$0xff] }
 0x3ab   : > { %6279 = vmatprep.subr.bf16.mxu1 %v11501_v17  ;;  %v11535_v17 = vld [vmem:[#allocation74_spill] sm:$0xff] }
 0x3ae   : > { %6281 = vmatpush1.bf16.msra.mxu1 %v11502_v62  ;;  %v11536_v62 = vld [vmem:[#allocation35_spill] sm:$0xff] }
 0x3af   : > { %6283 = vmatprep.subr.bf16.mxu1 %v11503_v23  ;;  %v11537_v23 = vld [vmem:[#allocation75_spill] sm:$0xff] }
 0x3b2   : > { %6285 = vmatpush1.bf16.msra.mxu1 %v11505_v46  ;;  %v11539_v46 = vld [vmem:[#allocation37_spill] sm:$0xff] }
 0x3b3   : > { %6287 = vmatprep.subr.bf16.mxu1 %v11506_v53  ;;  %v11540_v53 = vld [vmem:[#allocation104_spill] sm:$0xff] }
 0x3b6   : > { %6289 = vmatpush1.bf16.msra.mxu1 %v11507_v45  ;;  %v11541_v45 = vld [vmem:[#allocation103_spill] sm:$0xff] }
 0x3b7   : > { %6291 = vmatprep.subr.bf16.mxu1 %v11508_v47 }
 0x3b9   : > { %3031 = vmatmul.mubr.f32.vlgmr.msra.gmra.mrb[0].mxu1 %v11509_v18 }
 0x3ba   : > { %6293 = vmatpush1.bf16.msra.mxu1 %v11510_v63  ;;  %3038 = vmatprep.mubr.f32.mxu1 %v11511_v22  ;;  %v11556_v22 = vand.u32 4294901760, %v11515_v24 }
 0x3bb   : > { %6295 = vmatprep.subr.bf16.mxu1 %v11512_v58 }
 0x3bd   : > { %3041 = vmatmul.mubr.f32.gmra.mrb[2].mxu1 %v11513_v14 }
 0x3be   : > { %6297 = vmatpush1.bf16.msra.mxu1 %v11514_v30  ;;  %3048 = vmatprep.mubr.f32.mxu1 %v11515_v24  ;;  %v11562_v24 = vld [vmem:[#allocation94_spill] sm:$0xff] }
 0x3bf   : > { %6299 = vmatprep.subr.bf16.mxu1 %v11516_v8 }
 0x3c1   : > { %3051 = vmatmul.mubr.f32.gmra.mrb[4].mxu1 %v11517_v54 }
 0x3c2   : > { %6301 = vmatpush1.bf16.msra.mxu1 %v11518_v21  ;;  %3058 = vmatprep.mubr.f32.mxu1 %v9006_v56 }
 0x3c3   : > { %6303 = vmatprep.subr.bf16.mxu1 %v11519_v11 }
 0x3c5   : > { %3061 = vmatmul.mubr.f32.gmra.mrb[6].mxu1 %v9030_v28 }
 0x3c6   : > { %6305 = vmatpush1.bf16.msra.mxu1 %v11520_v4  ;;  %3198 = vmatprep.mubr.f32.mxu1 %v11521_v61  ;;  %v11542_v61 = vld [vmem:[#allocation38_spill] sm:$0xff] }
 0x3c7   : > { %6307 = vmatprep.subr.bf16.mxu1 %v11522_v51 }
 0x3ca   : > { %6309 = vmatpush1.bf16.msra.mxu1 %v11523_v55 }
 0x3cb   : > { %6311 = vmatprep.subr.bf16.mxu1 %v11524_v33 }
 0x3ce   : > { %6313 = vmatpush1.bf16.msra.mxu1 %v11525_v25 }
 0x3cf   : > { %6315 = vmatprep.subr.bf16.mxu1 %v11526_v52 }
 0x3d2   : > { %6317 = vmatpush1.bf16.msra.mxu1 %v11527_v16 }
 0x3d3   : > { %6319 = vmatprep.subr.bf16.mxu1 %v11528_v41 }
 0x3d6   : > { %6321 = vmatpush1.bf16.msra.mxu1 %v11529_v10 }
 0x3d7   : > { %6323 = vmatprep.subr.bf16.mxu1 %v11530_v57 }
 0x3da   : > { %6325 = vmatpush1.bf16.msra.mxu1 %v11531_v6 }
 0x3db   : > { %6327 = vmatprep.subr.bf16.mxu1 %v11532_v20 }
 0x3de   : > { %6329 = vmatpush1.bf16.msra.mxu1 %v11533_v5 }
 0x3df   : > { %6331 = vmatprep.subr.bf16.mxu1 %v11534_v40 }
 0x3e2   : > { %6333 = vmatpush1.bf16.msra.mxu1 %v11535_v17 }
 0x3e3   : > { %6335 = vmatprep.subr.bf16.mxu1 %v11536_v62 }
 0x3e6   : > { %6337 = vmatpush1.bf16.msra.mxu1 %v11537_v23 }
 0x3e7   : > { %6339 = vmatprep.subr.bf16.mxu1 %v11538_v42 }
 0x3ea   : > { %6341 = vmatpush1.bf16.msra.mxu1 %v11539_v46 }
 0x3eb   : > { %6343 = vmatprep.subr.bf16.mxu1 %v11540_v53 }
 0x3ee   : > { %6345 = vmatpush1.bf16.msra.mxu1 %v11541_v45  ;;  %v11546_v45 = vand.u32 4294901760, %v11431_v15  ;;  %v11551_v15 = vand.u32 4294901760, %v11441_v32  ;;  %v11557_v32 = vand.u32 4294901760, %v11443_v0  ;;  %v11564_v0 = vand.u32 4294901760, %v11452_v60 }
 0x3ef   : > { %6347 = vmatprep.subr.bf16.mxu1 %v11542_v61  ;;  %v11547_v61 = vand.u32 4294901760, %v11430_v12  ;;  %v11552_v12 = vld [vmem:[#allocation51_spill] sm:$0xff] }
 0x3f0   : > { %v11553_v38 = vand.u32 4294901760, %v11552_v12  ;;  %v11563_v12 = vand.u32 4294901760, %v11451_v13  ;;  %v11570_v13 = vand.u32 4294901760, %v11463_v31  ;;  %v11573_v31 = vand.u32 4294901760, %v11469_v59  ;;  %v11577_v59 = vld [vmem:[#allocation99_spill] sm:$0xff] }
 0x3f1   : > { %v6356_v53 = vpack.c.bf16 %v11547_v61, %v11546_v45 }
 0x3f2   : > { %6349 = vmatpush1.bf16.msra.mxu1 %v11543_v43  ;;  %v2216_v43 = vsel %vm2211_vm9, %v2108_v50, 0  ;;  %v6362_v45 = vpack.c.bf16 %v11553_v38, %v11551_v15  ;;  %v11554_v50 = vand.u32 4294901760, %v11513_v14  ;;  %v11560_v14 = vand.u32 4294901760, %v11517_v54  ;;  %v11566_v54 = vld [vmem:[#allocation95_spill] sm:$0xff] }
 0x3f3   : > { %6351 = vmatprep.subr.bf16.mxu1 %v9283_v19  ;;  %v11548_v19 = vand.u32 4294901760, %v11509_v18  ;;  %v9583_v37 = vand.u32 4294901760, %v2216_v43  ;;  %v11555_v18 = vld [vmem:[#allocation93_spill] sm:$0xff]  ;;  %v11561_v15 = vand.u32 4294901760, %v9006_v56  ;;  %v6370_v38 = vpack.c.bf16 %v11564_v0, %v11563_v12  ;;  %v11568_v56 = vld [vmem:[#allocation62_spill] sm:$0xff]  ;;  %v11578_v12 = vld [vmem:[#allocation100_spill] sm:$0xff] }
 0x3f4   : > { %v11579_v0 = vld [vmem:[#allocation25_spill] sm:$0xff] }
 0x3f6   : > { %6353 = vmatpush1.bf16.msra.mxu1 %v9305_v36 }
 0x3f7   : > { %6355 = vmatprep.subr.bf16.mxu1 %v6354_v7  ;;  %v9589_v7 = vsub.f32 %v2216_v43, %v9583_v37 }
 0x3f9   : > { %3202 = vmatmul.mubr.f32.vlgmr.msra.gmra.mrb[0].mxu1 %v11548_v19  ;;  %v3780_v19 = vand.u32 4294901760, %v9589_v7 }
 0x3fa   : > { %6357 = vmatpush1.bf16.msra.mxu1 %v6356_v53  ;;  %3210 = vmatprep.mubr.f32.mxu1 %v11549_v39  ;;  %v11558_v53 = vld [vmem:[#allocation52_spill] sm:$0xff] }
 0x3fb   : > { %6359 = vmatprep.subr.bf16.mxu1 %v11550_v1  ;;  %v3781_v43 = vsub.f32 %v9589_v7, %v3780_v19  ;;  %v11559_v61 = vand.u32 4294901760, %v11558_v53 }
 0x3fd   : > { %3214 = vmatmul.mubr.f32.gmra.mrb[2].mxu1 %v11554_v50  ;;  %v6364_v39 = vpack.c.bf16 %v11559_v61, %v11557_v32  ;;  %v3782_v1 = vand.u32 4294901760, %v3781_v43  ;;  %v11567_v50 = vld [vmem:[#allocation13_spill] sm:$0xff]  ;;  %v11571_v43 = vld [vmem:[#allocation96_spill] sm:$0xff] }
 0x3fe   : > { %6361 = vmatpush1.bf16.msra.mxu1 %v11555_v18  ;;  %3222 = vmatprep.mubr.f32.mxu1 %v11556_v22  ;;  %v2111_v18 = vld [vmem:[%s10720_s3 + $0x40] sm:$0xff]  ;;  %v11569_v22 = vand.u32 4294901760, %v11464_v2  ;;  %v2114_v32 = vld [vmem:[%s10720_s3 + $0x58] sm:$0xff]  ;;  %v11572_v2 = vand.u32 4294901760, %v11468_v48 }
 0x3ff   : > { %6363 = vmatprep.subr.bf16.mxu1 %v6362_v45  ;;  %3783 = vmatmul.mubr.f32.gmra.mrb[18].mxu0 %v3782_v1  ;;  %v11565_v45 = vand.u32 4294901760, %v9030_v28  ;;  %v9632_v28 = vsel %vm2211_vm9, %v2111_v18, 0  ;;  %v11575_v1 = vand.u32 4294901760, %v11472_v44  ;;  %v11581_v44 = vld [vmem:[#allocation27_spill] sm:$0xff]  ;;  %v11584_v18 = vld [vmem:[#allocation28_spill] sm:$0xff] }
 0x400   : > { %3915 = vmatprep.mubr.f32.mxu0 %v11439_v29  ;;  %v6372_v60 = vpack.c.bf16 %v11570_v13, %v11569_v22  ;;  %v6378_v53 = vpack.c.bf16 %v11573_v31, %v11572_v2  ;;  %v9645_v61 = vand.u32 4294901760, %v9632_v28  ;;  %v11585_v22 = vand.u32 4294901760, %v11491_v26  ;;  %v11589_v2 = vld [vmem:[#allocation101_spill] sm:$0xff]  ;;  %v11590_v31 = vld [vmem:[#allocation102_spill] sm:$0xff] }
 0x401   : > { %3226 = vmatmul.mubr.f32.gmra.mrb[4].mxu1 %v11560_v14  ;;  %v9649_v14 = vsel %vm2211_vm9, %v2114_v32, 0  ;;  %v11586_v13 = vand.u32 4294901760, %v11490_v27  ;;  %v11588_v32 = vld [vmem:[#allocation105_spill] sm:$0xff]  ;;  %v11596_v27 = vld [vmem:[#allocation114_spill] sm:$0xff] }
 0x402   : > { %6365 = vmatpush1.bf16.msra.mxu1 %v6364_v39  ;;  %3234 = vmatprep.mubr.f32.mxu1 %v11561_v15  ;;  %v11574_v39 = vld [vmem:[#allocation97_spill] sm:$0xff]  ;;  %v11576_v15 = vand.u32 4294901760, %v11471_v3  ;;  %v9658_v48 = vand.u32 4294901760, %v9649_v14  ;;  %v11582_v3 = vand.u32 4294901760, %v11485_v49  ;;  %v11591_v49 = vld [vmem:[#allocation108_spill] sm:$0xff] }
 0x403   : > { %6367 = vmatprep.subr.bf16.mxu1 %v11562_v24  ;;  %3917 = vmatmul.mubr.f32.vlgmr.msra.gmra.mrb[16].mxu0 %v11568_v56  ;;  %v11595_v26 = vld [vmem:[#allocation113_spill] sm:$0xff] }
 0x404   : > { %3922 = vmatprep.mubr.f32.mxu0 %v11439_v29  ;;  %v6380_v24 = vpack.c.bf16 %v11576_v15, %v11575_v1  ;;  %v11597_v1 = vld [vmem:[#allocation41_spill] sm:$0xff]  ;;  %v11598_v15 = vld [vmem:[#allocation47_spill] sm:$0xff] }
 0x405   : > { %3238 = vmatmul.mubr.f32.gmra.mrb[6].mxu1 %v11565_v45  ;;  %v11583_v45 = vand.u32 4294901760, %v11486_v35  ;;  %v11592_v35 = vld [vmem:[#allocation110_spill] sm:$0xff] }
 0x406   : > { %6369 = vmatpush1.bf16.msra.mxu1 %v11566_v54  ;;  %3501 = vmatprep.mubr.f32.mxu1 %v11567_v50 }
 0x407   : > { %6371 = vmatprep.subr.bf16.mxu1 %v6370_v38  ;;  %3924 = vmatmul.mubr.f32.gmra.mrb[18].mxu0 %v9583_v37  ;;  %v11580_v38 = vld [vmem:[#allocation26_spill] sm:$0xff]  ;;  %v6394_v54 = vpack.c.bf16 %v11583_v45, %v11582_v3  ;;  %v11621_v45 = vld [vmem:[#allocation64_spill] sm:$0xff] }
 0x408   : > { %3929 = vmatprep.mubr.f32.mxu0 %v11439_v29 }
 0x40a   : > { %6373 = vmatpush1.bf16.msra.mxu1 %v6372_v60  ;;  %v6396_v60 = vpack.c.bf16 %v11586_v13, %v11585_v22  ;;  %v11626_v13 = vld [vmem:[#allocation16_spill] sm:$0xff] }
 0x40b   : > { %6375 = vmatprep.subr.bf16.mxu1 %v11571_v43  ;;  %3931 = vmatmul.mubr.f32.gmra.mrb[20].mxu0 %v9645_v61  ;;  %v11587_v43 = vld [vmem:[#allocation39_spill] sm:$0xff] }
 0x40c   : > { %3936 = vmatprep.mubr.f32.mxu0 %v11439_v29 }
 0x40e   : > { %6377 = vmatpush1.bf16.msra.mxu1 %v11574_v39  ;;  %v11594_v39 = vld [vmem:[#allocation112_spill] sm:$0xff] }
 0x40f   : > { %6379 = vmatprep.subr.bf16.mxu1 %v6378_v53  ;;  %3938 = vmatmul.mubr.f32.gmra.mrb[22].mxu0 %v9658_v48  ;;  %v11593_v53 = vld [vmem:[#allocation111_spill] sm:$0xff] }
 0x412   : > { %6381 = vmatpush1.bf16.msra.mxu1 %v6380_v24  ;;  %v11599_v24 = vld [vmem:[#allocation55_spill] sm:$0xff] }
 0x413   : > { %6383 = vmatprep.subr.bf16.mxu1 %v11577_v59  ;;  %v11600_v59 = vld [vmem:[#allocation58_spill] sm:$0xff] }
 0x416   : > { %6385 = vmatpush1.bf16.msra.mxu1 %v11578_v12  ;;  %v11601_v12 = vld [vmem:[#allocation61_spill] sm:$0xff] }
 0x417   : > { %6387 = vmatprep.subr.bf16.mxu1 %v11579_v0 }
 0x41a   : > { %6389 = vmatpush1.bf16.msra.mxu1 %v11580_v38  ;;  %v11617_v38 = vld [vmem:[#allocation15_spill] sm:$0xff] }
 0x41b   : > { %6391 = vmatprep.subr.bf16.mxu1 %v11581_v44  ;;  %v11618_v44 = vld [vmem:[#allocation44_spill] sm:$0xff] }
 0x41c   : > { %v11619_v3 = vpack.c.bf16 %v11617_v38, %v11618_v44 }
 0x41e   : > { %6393 = vmatpush1.bf16.msra.mxu1 %v11584_v18  ;;  %v11624_v18 = vld [vmem:[#allocation119_spill] sm:$0xff] }
 0x41f   : > { %6395 = vmatprep.subr.bf16.mxu1 %v6394_v54  ;;  %v11623_v54 = vld [vmem:[#allocation43_spill] sm:$0xff] }
 0x420   : > { %v11625_v22 = vand.u32 4294901760, %v11623_v54 }
 0x422   : > { %6397 = vmatpush1.bf16.msra.mxu1 %v6396_v60  ;;  %v11627_v60 = vld [vmem:[#allocation83_spill] sm:$0xff] }
 0x423   : > { %6399 = vmatprep.subr.bf16.mxu1 %v11587_v43  ;;  %v11628_v43 = vld [vmem:[#allocation92_spill] sm:$0xff] }
 0x426   : > { %6401 = vmatpush1.bf16.msra.mxu1 %v11588_v32 }
 0x427   : > { %6403 = vmatprep.subr.bf16.mxu1 %v11589_v2 }
 0x42a   : > { %6405 = vmatpush1.bf16.msra.mxu1 %v11590_v31 }
 0x42b   : > { %6407 = vmatprep.subr.bf16.mxu1 %v11591_v49 }
 0x42e   : > { %6409 = vmatpush1.bf16.msra.mxu1 %v11592_v35  ;;  %v2199_v35 = vpop.permute.xlu0 %2198 }
 0x42f   : > { %6411 = vmatprep.subr.bf16.mxu1 %v11593_v53 }
 0x432   : > { %6413 = vmatpush1.bf16.msra.mxu1 %v11594_v39 }
 0x433   : > { %6415 = vmatprep.subr.bf16.mxu1 %v11595_v26 }
 0x436   : > { %6417 = vmatpush1.bf16.msra.mxu1 %v11596_v27 }
 0x437   : > { %6419 = vmatprep.subr.bf16.mxu1 %v11508_v47 }
 0x439   : > { %3503 = vmatmul.mubr.f32.vlgmr.msra.gmra.mrb[0].mxu1 %v11597_v1 }
 0x43a   : > { %6421 = vmatpush1.bf16.msra.mxu1 %v11510_v63  ;;  %3509 = vmatprep.mubr.f32.mxu1 %v11598_v15 }
 0x43b   : > { %6423 = vmatprep.subr.bf16.mxu1 %v11512_v58 }
 0x43d   : > { %3511 = vmatmul.mubr.f32.gmra.mrb[2].mxu1 %v11599_v24 }
 0x43e   : > { %6425 = vmatpush1.bf16.msra.mxu1 %v11514_v30  ;;  %3517 = vmatprep.mubr.f32.mxu1 %v11600_v59 }
 0x43f   : > { %6427 = vmatprep.subr.bf16.mxu1 %v11516_v8 }
 0x441   : > { %3519 = vmatmul.mubr.f32.gmra.mrb[4].mxu1 %v11601_v12 }
 0x442   : > { %6429 = vmatpush1.bf16.msra.mxu1 %v11518_v21  ;;  %3525 = vmatprep.mubr.f32.mxu1 %v11453_v9 }
 0x443   : > { %6431 = vmatprep.subr.bf16.mxu1 %v11519_v11  ;;  %v9698_v47 = vpop.f32.mrb[8].mxu0 }
 0x444   : > { %v9700_v63 = vpop.f32.mrb[9].mxu0 }
 0x445   : > { %3527 = vmatmul.mubr.f32.gmra.mrb[6].mxu1 %v11456_v34 }
 0x446   : > { %6433 = vmatpush1.bf16.msra.mxu1 %v11520_v4  ;;  %3662 = vmatprep.mubr.f32.mxu1 %v11567_v50 }
 0x447   : > { %6435 = vmatprep.subr.bf16.mxu1 %v11522_v51  ;;  %v9706_v58 = vpop.f32.mrb[10].mxu0  ;;  %v11602_v51 = vld [vmem:[#allocation104_spill] sm:$0xff] }
 0x448   : > { %v9708_v30 = vpop.f32.mrb[11].mxu0  ;;  %v2381_v26 = vadd.f32 %v9706_v58, %v2199_v35  ;;  %v4581_v58 = vld [vmem:[%s10723_s6 + $0x8] sm:$0xff] }
 0x449   : > { %v2383_v27 = vadd.f32 %v9708_v30, %v2199_v35 }
 0x44a   : > { %6437 = vmatpush1.bf16.msra.mxu1 %v11523_v55  ;;  %v11603_v55 = vld [vmem:[#allocation103_spill] sm:$0xff] }
 0x44b   : > { %6439 = vmatprep.subr.bf16.mxu1 %v11524_v33  ;;  %v9712_v8 = vpop.f32.mrb[12].mxu0  ;;  %v11604_v33 = vld [vmem:[#allocation38_spill] sm:$0xff] }
 0x44c   : > { %v9714_v21 = vpop.f32.mrb[13].mxu0 }
 0x44e   : > { %6441 = vmatpush1.bf16.msra.mxu1 %v11525_v25  ;;  %v11605_v25 = vld [vmem:[#allocation106_spill] sm:$0xff] }
 0x44f   : > { %6443 = vmatprep.subr.bf16.mxu1 %v11526_v52  ;;  %v9718_v11 = vpop.f32.mrb[14].mxu0  ;;  %v11606_v52 = vld [vmem:[#allocation109_spill] sm:$0xff] }
 0x450   : > { %v9720_v4 = vpop.f32.mrb[15].mxu0 }
 0x452   : > { %6445 = vmatpush1.bf16.msra.mxu1 %v11527_v16  ;;  %v11607_v16 = vld [vmem:[#allocation115_spill] sm:$0xff] }
 0x453   : > { %6447 = vmatprep.subr.bf16.mxu1 %v11528_v41  ;;  %v3790_v41 = vsub.f32 %v9632_v28, %v9645_v61  ;;  %v11614_v28 = vld [vmem:[#allocation117_spill] sm:$0xff] }
 0x456   : > { %6449 = vmatpush1.bf16.msra.mxu1 %v11529_v10  ;;  %v11608_v10 = vld [vmem:[#allocation31_spill] sm:$0xff] }
 0x457   : > { %6451 = vmatprep.subr.bf16.mxu1 %v11530_v57  ;;  %v11609_v57 = vld [vmem:[#allocation21_spill] sm:$0xff] }
 0x45a   : > { %6453 = vmatpush1.bf16.msra.mxu1 %v11531_v6  ;;  %v3791_v6 = vand.u32 4294901760, %v3790_v41 }
 0x45b   : > { %6455 = vmatprep.subr.bf16.mxu1 %v11532_v20  ;;  %v3801_v20 = vsub.f32 %v9649_v14, %v9658_v48  ;;  %v11615_v14 = vld [vmem:[#allocation118_spill] sm:$0xff] }
 0x45c   : > { %v11616_v0 = vpack.c.bf16 %v11614_v28, %v11615_v14 }
 0x45e   : > { %6457 = vmatpush1.bf16.msra.mxu1 %v11533_v5  ;;  %v11611_v5 = vld [vmem:[#allocation116_spill] sm:$0xff] }
 0x45f   : > { %6459 = vmatprep.subr.bf16.mxu1 %v11534_v40  ;;  %v11612_v40 = vld [vmem:[#allocation60_spill] sm:$0xff] }
 0x462   : > { %6461 = vmatpush1.bf16.msra.mxu1 %v11535_v17  ;;  %v11613_v17 = vpack.c.bf16 %v11611_v5, %v11612_v40  ;;  %v4582_v5 = vld [vmem:[%s10723_s6 + $0x10] sm:$0xff]  ;;  %v4583_v40 = vld [vmem:[%s10723_s6 + $0x18] sm:$0xff] }
 0x463   : > { %6463 = vmatprep.subr.bf16.mxu1 %v11536_v62  ;;  %v3792_v62 = vsub.f32 %v3790_v41, %v3791_v6  ;;  %v4619_v44 = vand.u32 4294901760, %v4582_v5 }
 0x466   : > { %6465 = vmatpush1.bf16.msra.mxu1 %v11537_v23  ;;  %v3802_v23 = vand.u32 4294901760, %v3801_v20 }
 0x467   : > { %6467 = vmatprep.subr.bf16.mxu1 %v11538_v42  ;;  %v3793_v42 = vand.u32 4294901760, %v3792_v62 }
 0x46a   : > { %6469 = vmatpush1.bf16.msra.mxu1 %v11539_v46  ;;  %v3803_v46 = vsub.f32 %v3801_v20, %v3802_v23 }
 0x46b   : > { %6471 = vmatprep.subr.bf16.mxu1 %v11602_v51 }
 0x46c   : > { %v3804_v50 = vand.u32 4294901760, %v3803_v46 }
 0x46e   : > { %6473 = vmatpush1.bf16.msra.mxu1 %v11603_v55  ;;  %v4598_v55 = vld [vmem:[%s10723_s6 + $0x90] sm:$0xff] }
 0x46f   : > { %6475 = vmatprep.subr.bf16.mxu1 %v11604_v33  ;;  %v4599_v33 = vld [vmem:[%s10723_s6 + $0x98] sm:$0xff] }
 0x472   : > { %6477 = vmatpush1.bf16.msra.mxu1 %v11605_v25 }
 0x473   : > { %6479 = vmatprep.subr.bf16.mxu1 %v11606_v52  ;;  %v4616_v52 = vand.u32 4294901760, %v4581_v58 }
 0x475   : > { %v9874_v46 = vsub.f32 %v4581_v58, %v4616_v52  ;;  %v4602_v58 = vld [vmem:[%s10723_s6 + $0xb0] sm:$0xff] }
 0x476   : > { %6481 = vmatpush1.bf16.msra.mxu1 %v9305_v36  ;;  %v11610_v36 = vld [vmem:[#allocation33_spill] sm:$0xff] }
 0x477   : > { %6722 = vmatprep.subr.bf16.mxu1 %v11607_v16 }
 0x479   : > { %3664 = vmatmul.mubr.f32.vlgmr.msra.gmra.mrb[0].mxu1 %v11597_v1 }
 0x47a   : > { %6724 = vmatpush1.bf16.msra.mxu1 %v11608_v10  ;;  %3670 = vmatprep.mubr.f32.mxu1 %v11598_v15 }
 0x47b   : > { %6723 = vmatprep.subr.bf16.mxu1 %v11609_v57 }
 0x47d   : > { %3672 = vmatmul.mubr.f32.gmra.mrb[2].mxu1 %v11599_v24  ;;  %v4596_v24 = vld [vmem:[%s10723_s6 + $0x80] sm:$0xff] }
 0x47e   : > { %6725 = vmatpush1.bf16.msra.mxu1 %v11610_v36  ;;  %3678 = vmatprep.mubr.f32.mxu1 %v11600_v59  ;;  %v4597_v59 = vld [vmem:[%s10723_s6 + $0x88] sm:$0xff] }
 0x47f   : > { %6499 = vmatprep.subr.bf16.mxu1 %v11613_v17  ;;  %v4664_v51 = vand.u32 4294901760, %v4597_v59 }
 0x481   : > { %3680 = vmatmul.mubr.f32.gmra.mrb[4].mxu1 %v11601_v12  ;;  %v4580_v12 = vld [vmem:[%s10723_s6] sm:$0xff] }
 0x482   : > { %3686 = vmatprep.mubr.f32.mxu1 %v11453_v9  ;;  %v11620_v9 = vld [vmem:[#allocation120_spill] sm:$0xff]  ;;  %v4613_v30 = vand.u32 4294901760, %v4580_v12 }
 0x485   : > { %3688 = vmatmul.mubr.f32.gmra.mrb[6].mxu1 %v11456_v34  ;;  %v11622_v34 = vpack.c.bf16 %v11620_v9, %v11621_v45 }
 0x486   : > { %3788 = vmatprep.mubr.f32.mxu1 %v11439_v29 }
 0x489   : > { %3794 = vmatmul.mubr.f32.vlgmr.msra.gmra.mrb[4].mxu1 %v3793_v42  ;;  %v9872_v42 = vsub.f32 %v4580_v12, %v4613_v30 }
 0x48a   : > { %6501 = vmatpush1.bf16.msra.mxu1 %v11616_v0  ;;  %3799 = vmatprep.mubr.f32.mxu1 %v11439_v29 }
 0x48b   : > { %6503 = vmatprep.subr.bf16.mxu1 %v11619_v3  ;;  %v4622_v3 = vand.u32 4294901760, %v4583_v40 }
 0x48d   : > { %3805 = vmatmul.mubr.f32.gmra.mrb[6].mxu1 %v3804_v50  ;;  %v9889_v45 = vpack.c.bf16 %v4622_v3, %v4619_v44 }
 0x48e   : > { %6505 = vmatpush1.bf16.msra.mxu1 %v11622_v34  ;;  %4024 = vmatprep.mubr.f32.mxu1 %v11439_v29  ;;  %v9891_v34 = vsub.f32 %v4582_v5, %v4619_v44 }
 0x48f   : > { %6507 = vmatprep.subr.bf16.mxu1 %v11607_v16  ;;  %11632 = vst [vmem:[#allocation46_spill] sm:$0xff] %v9889_v45 }
 0x491   : > { %4027 = vmatmul.mubr.f32.vlgmr.msra.gmra.mrb[8].mxu1 %v11623_v54  ;;  %v9893_v54 = vsub.f32 %v4583_v40, %v4622_v3 }
 0x492   : > { %6509 = vmatpush1.bf16.msra.mxu1 %v11608_v10  ;;  %4032 = vmatprep.mubr.f32.mxu1 %v11439_v29 }
 0x493   : > { %6511 = vmatprep.subr.bf16.mxu1 %v11609_v57 }
 0x495   : > { %4035 = vmatmul.mubr.f32.gmra.mrb[10].mxu1 %v9589_v7 }
 0x496   : > { %6513 = vmatpush1.bf16.msra.mxu1 %v11610_v36  ;;  %4040 = vmatprep.mubr.f32.mxu1 %v11439_v29 }
 0x497   : > { %6515 = vmatprep.subr.bf16.mxu1 %v11624_v18 }
 0x499   : > { %4043 = vmatmul.mubr.f32.gmra.mrb[12].mxu1 %v3790_v41  ;;  %v4670_v41 = vand.u32 4294901760, %v4599_v33 }
 0x49a   : > { %4048 = vmatprep.mubr.f32.mxu1 %v11439_v29 }
 0x49b   : > { %v9881_v0 = vsub.f32 %v4599_v33, %v4670_v41  ;;  %v4679_v33 = vand.u32 4294901760, %v4602_v58 }
 0x49d   : > { %4051 = vmatmul.mubr.f32.gmra.mrb[14].mxu1 %v3801_v20  ;;  %v9952_v40 = vsub.f32 %v4602_v58, %v4679_v33 }
 0x49e   : > { %4129 = vmatprep.mubr.f32.mxu1 %v11439_v29 }
 0x4a1   : > { %4133 = vmatmul.mubr.f32.vlgmr.msra.gmra.mrb[8].mxu1 %v11625_v22 }
 0x4a2   : > { %6517 = vmatpush1.bf16.msra.mxu1 %v11626_v13  ;;  %4138 = vmatprep.mubr.f32.mxu1 %v11439_v29 }
 0x4a3   : > { %6519 = vmatprep.subr.bf16.mxu1 %v11627_v60 }
 0x4a5   : > { %4142 = vmatmul.mubr.f32.gmra.mrb[10].mxu1 %v3780_v19 }
 0x4a6   : > { %6521 = vmatpush1.bf16.msra.mxu1 %v11628_v43  ;;  %4147 = vmatprep.mubr.f32.mxu1 %v11439_v29 }
 0x4a7   : > { %6523 = vmatprep.subr.bf16.mxu1 %v11607_v16  ;;  %v4667_v16 = vand.u32 4294901760, %v4598_v55 }
 0x4a9   : > { %4151 = vmatmul.mubr.f32.gmra.mrb[12].mxu1 %v3791_v6  ;;  %v9877_v28 = vpack.c.bf16 %v4670_v41, %v4667_v16  ;;  %v9879_v14 = vsub.f32 %v4598_v55, %v4667_v16  ;;  %v4586_v55 = vld [vmem:[%s10723_s6 + $0x30] sm:$0xff]  ;;  %v4587_v16 = vld [vmem:[%s10723_s6 + $0x38] sm:$0xff] }
 0x4aa   : > { %4156 = vmatprep.mubr.f32.mxu1 %v11439_v29  ;;  %v4631_v41 = vand.u32 4294901760, %v4586_v55 }
 0x4ab   : > { %11631 = vst [vmem:[#allocation18_spill] sm:$0xff] %v9877_v28 }
 0x4ad   : > { %4160 = vmatmul.mubr.f32.gmra.mrb[14].mxu1 %v3802_v23  ;;  %v9870_v23 = vpack.c.bf16 %v4616_v52, %v4613_v30  ;;  %v4603_v30 = vld [vmem:[%s10723_s6 + $0xb8] sm:$0xff] }
 0x4ae   : > { %4254 = vmatprep.mubr.f32.mxu1 %v11439_v29  ;;  %v4682_v52 = vand.u32 4294901760, %v4603_v30 }
 0x4af   : > { %11630 = vst [vmem:[#allocation70_spill] sm:$0xff] %v9870_v23 }
 0x4b0   : > { %v9950_v5 = vpack.c.bf16 %v4682_v52, %v4679_v33 }
 0x4b1   : > { %4256 = vmatmul.mubr.f32.vlgmr.msra.gmra.mrb[8].mxu1 %v11568_v56 }
 0x4b2   : > { %6525 = vmatpush1.bf16.msra.mxu1 %v11608_v10  ;;  %4261 = vmatprep.mubr.f32.mxu1 %v11439_v29  ;;  %11635 = vst [vmem:[#allocation40_spill] sm:$0xff] %v9950_v5 }
 0x4b3   : > { %6527 = vmatprep.subr.bf16.mxu1 %v11609_v57 }
 0x4b5   : > { %4263 = vmatmul.mubr.f32.gmra.mrb[10].mxu1 %v9583_v37 }
 0x4b6   : > { %6529 = vmatpush1.bf16.msra.mxu1 %v11610_v36  ;;  %4268 = vmatprep.mubr.f32.mxu1 %v11439_v29  ;;  %v9862_v36 = vsub.f32 %v4597_v59, %v4664_v51 }
 0x4b9   : > { %4270 = vmatmul.mubr.f32.gmra.mrb[12].mxu1 %v9645_v61 }
 0x4ba   : > { %4275 = vmatprep.mubr.f32.mxu1 %v11439_v29 }
 0x4bd   : > { %4277 = vmatmul.mubr.f32.gmra.mrb[14].mxu1 %v9658_v48 }
 0x4be   : > { %4355 = vmatprep.mubr.f32.mxu1 %v11439_v29 }
 0x4c1   : > { %4357 = vmatmul.mubr.f32.vlgmr.msra.gmra.mrb[8].mxu1 %v11568_v56 }
 0x4c2   : > { %4362 = vmatprep.mubr.f32.mxu1 %v11439_v29 }
 0x4c5   : > { %4364 = vmatmul.mubr.f32.gmra.mrb[10].mxu1 %v9583_v37 }
 0x4c6   : > { %4369 = vmatprep.mubr.f32.mxu1 %v11439_v29 }
 0x4c9   : > { %4371 = vmatmul.mubr.f32.gmra.mrb[12].mxu1 %v9645_v61  ;;  %v2194_v61 = vpop.permute.xlu1 %2193 }
 0x4ca   : > { %4376 = vmatprep.mubr.f32.mxu1 %v11439_v29  ;;  %v2367_v53 = vadd.f32 %v9700_v63, %v2194_v61  ;;  %v4661_v63 = vand.u32 4294901760, %v4596_v24 }
 0x4cc   : > { %v9858_v6 = vpack.c.bf16 %v4664_v51, %v4661_v63  ;;  %v9860_v20 = vsub.f32 %v4596_v24, %v4661_v63 }
 0x4cd   : > { %4378 = vmatmul.mubr.f32.gmra.mrb[14].mxu1 %v9658_v48  ;;  %v2365_v48 = vadd.f32 %v9698_v47, %v2194_v61  ;;  %v2204_v18 = vpop.permute.xlu1 %2203 }
 0x4ce   : > { %11629 = vst [vmem:[#allocation73_spill] sm:$0xff] %v9858_v6  ;;  %6531 = vmatprep.subr.bf16.mxu0 %v9858_v6  ;;  %v2397_v22 = vadd.f32 %v9712_v8, %v2204_v18  ;;  %v2399_v13 = vadd.f32 %v9714_v21, %v2204_v18 }
 0x4cf   : > { %6533 = vmatpush3.bf16.msra.mxu0 %v9870_v23 }
 0x4d0   : > { %6535 = vmatprep.subr.bf16.mxu0 %v9877_v28 }
 0x4d3   : > { %6537 = vmatpush3.bf16.msra.mxu0 %v9889_v45 }
 0x4d6   : > { %v3918_v7 = vpop.f32.mrb[16].mxu0 }
 0x4d7   : > { %v3920_v19 = vpop.f32.mrb[17].mxu0 }
 0x4da   : > { %v3925_v32 = vpop.f32.mrb[18].mxu0 }
 0x4db   : > { %v3927_v2 = vpop.f32.mrb[19].mxu0 }
 0x4de   : > { %v9812_v31 = vpop.f32.mrb[20].mxu0 }
 0x4df   : > { %v9814_v49 = vpop.f32.mrb[21].mxu0 }
 0x4e2   : > { %v9816_v56 = vpop.f32.mrb[22].mxu0 }
 0x4e3   : > { %v9822_v37 = vpop.f32.mrb[23].mxu0 }
 0x54c   : > { %v3665_v39 = vpop.f32.mrb[0].mxu1 }
 0x54d   : > { %v6735_v1 = vadd.f32 %v3665_v39, %v2365_v48  ;;  %v3667_v15 = vpop.f32.mrb[1].mxu1 }
 0x54e   : > { %v6739_v47 = vadd.f32 %v3667_v15, %v2367_v53 }
 0x54f   : > { %v9854_v25 = vadd.f32 %v6735_v1, %v3918_v7 }
 0x550   : > { %v9856_v10 = vadd.f32 %v6739_v47, %v3920_v19  ;;  %v3673_v57 = vpop.f32.mrb[2].mxu1  ;;  %v2209_v19 = vpop.permute.xlu0 %2208 }
 0x551   : > { %v6743_v17 = vadd.f32 %v3673_v57, %v2381_v26  ;;  %v3675_v62 = vpop.f32.mrb[3].mxu1  ;;  %v2415_v48 = vadd.f32 %v9720_v4, %v2209_v19  ;;  %v4601_v4 = vld [vmem:[%s10723_s6 + $0xa8] sm:$0xff]  ;;  %v4634_v57 = vand.u32 4294901760, %v4587_v16 }
 0x552   : > { %v6747_v50 = vadd.f32 %v3675_v62, %v2383_v27  ;;  %v4676_v1 = vand.u32 4294901760, %v4601_v4  ;;  %v9956_v62 = vsub.f32 %v4586_v55, %v4631_v41 }
 0x553   : > { %v9883_v38 = vadd.f32 %v6743_v17, %v3925_v32  ;;  %v9954_v17 = vsub.f32 %v4603_v30, %v4682_v52  ;;  %v9958_v44 = vpack.c.bf16 %v4634_v57, %v4631_v41  ;;  %v9960_v3 = vsub.f32 %v4587_v16, %v4634_v57  ;;  %v4590_v41 = vld [vmem:[%s10723_s6 + $0x50] sm:$0xff] }
 0x554   : > { %v9886_v9 = vadd.f32 %v6747_v50, %v3927_v2  ;;  %v2413_v2 = vadd.f32 %v9718_v11, %v2209_v19  ;;  %v4600_v11 = vld [vmem:[%s10723_s6 + $0xa0] sm:$0xff]  ;;  %v9928_v12 = vsub.f32 %v4601_v4, %v4676_v1 }
 0x555   : > { %11636 = vst [vmem:[#allocation66_spill] sm:$0xff] %v9958_v44 }
 0x55c   : > { %v3795_v60 = vpop.f32.mrb[4].mxu1 }
 0x55d   : > { %v6751_v43 = vadd.f32 %v3795_v60, %v2397_v22  ;;  %v3797_v7 = vpop.f32.mrb[5].mxu1  ;;  %v4605_v60 = vld [vmem:[%s10723_s6 + $0xc8] sm:$0xff] }
 0x55e   : > { %v6755_v32 = vadd.f32 %v3797_v7, %v2399_v13  ;;  %v4604_v13 = vld [vmem:[%s10723_s6 + $0xc0] sm:$0xff]  ;;  %v4688_v19 = vand.u32 4294901760, %v4605_v60 }
 0x55f   : > { %v9900_v61 = vadd.f32 %v6751_v43, %v9812_v31  ;;  %v4584_v31 = vld [vmem:[%s10723_s6 + $0x20] sm:$0xff] }
 0x560   : > { %v9904_v35 = vadd.f32 %v6755_v32, %v9814_v49  ;;  %v3806_v53 = vpop.f32.mrb[6].mxu1  ;;  %v4673_v49 = vand.u32 4294901760, %v4600_v11  ;;  %v4588_v43 = vld [vmem:[%s10723_s6 + $0x40] sm:$0xff]  ;;  %v4589_v32 = vld [vmem:[%s10723_s6 + $0x48] sm:$0xff] }
 0x561   : > { %v6759_v39 = vadd.f32 %v3806_v53, %v2413_v2  ;;  %v3808_v8 = vpop.f32.mrb[7].mxu1  ;;  %v4637_v2 = vand.u32 4294901760, %v4588_v43  ;;  %v4640_v53 = vand.u32 4294901760, %v4589_v32 }
 0x562   : > { %v6763_v26 = vadd.f32 %v3808_v8, %v2415_v48  ;;  %v9924_v24 = vpack.c.bf16 %v4676_v1, %v4673_v49  ;;  %v9926_v59 = vsub.f32 %v4600_v11, %v4673_v49  ;;  %v9984_v11 = vsub.f32 %v4605_v60, %v4688_v19  ;;  %v4609_v60 = vld [vmem:[%s10723_s6 + $0xe8] sm:$0xff] }
 0x563   : > { %v9907_v21 = vadd.f32 %v6759_v39, %v9816_v56  ;;  %v4585_v56 = vld [vmem:[%s10723_s6 + $0x28] sm:$0xff]  ;;  %v9993_v49 = vsub.f32 %v4588_v43, %v4637_v2 }
 0x564   : > { %v9910_v27 = vadd.f32 %v6763_v26, %v9822_v37  ;;  %v4625_v37 = vand.u32 4294901760, %v4584_v31  ;;  %v4628_v15 = vand.u32 4294901760, %v4585_v56  ;;  %11633 = vst [vmem:[#allocation32_spill] sm:$0xff] %v9924_v24  ;;  %6539 = vmatprep.subr.bf16.mxu0 %v9924_v24  ;;  %v11001_v45 = vand.u32 4294901760, %v9926_v59 }
 0x565   : > { %11639 = vst [vmem:[#allocation10_spill] sm:$0xff] %v9993_v49 }
 0x566   : > { %v9930_v47 = vpack.c.bf16 %v4628_v15, %v4625_v37  ;;  %v9932_v63 = vsub.f32 %v4584_v31, %v4625_v37  ;;  %v9934_v51 = vsub.f32 %v4585_v56, %v4628_v15  ;;  %v9991_v31 = vpack.c.bf16 %v4640_v53, %v4637_v2 }
 0x567   : > { %v9997_v56 = vsub.f32 %v4589_v32, %v4640_v53  ;;  %v4593_v53 = vld [vmem:[%s10723_s6 + $0x68] sm:$0xff] }
 0x568   : > { %11634 = vst [vmem:[#allocation78_spill] sm:$0xff] %v9930_v47  ;;  %6541 = vmatpush3.bf16.msra.mxu0 %v9930_v47  ;;  %11638 = vst [vmem:[#allocation36_spill] sm:$0xff] %v9991_v31 }
 0x569   : > { %6543 = vmatprep.subr.bf16.mxu0 %v9950_v5  ;;  %11640 = vst [vmem:[#allocation12_spill] sm:$0xff] %v9997_v56 }
 0x56c   : > { %6545 = vmatpush3.bf16.msra.mxu0 %v9958_v44 }
 0x594   : > { %v4358_v50 = vpop.f32.mrb[8].mxu1 }
 0x595   : > { %v6737_v18 = vadd.f32 %v9854_v25, %v4358_v50  ;;  %v4360_v22 = vpop.f32.mrb[9].mxu1  ;;  %v4685_v25 = vand.u32 4294901760, %v4604_v13 }
 0x596   : > { %v6741_v7 = vadd.f32 %v9856_v10, %v4360_v22  ;;  %v4608_v22 = vld [vmem:[%s10723_s6 + $0xe0] sm:$0xff] }
 0x597   : > { %v9978_v48 = vmax.f32 %v6737_v18, 0.0  ;;  %v9980_v8 = vpack.c.bf16 %v4688_v19, %v4685_v25  ;;  %v9982_v26 = vsub.f32 %v4604_v13, %v4685_v25  ;;  %v4643_v18 = vand.u32 4294901760, %v4590_v41 }
 0x598   : > { %v4365_v39 = vpop.f32.mrb[10].mxu1  ;;  %v9999_v37 = vmax.f32 %v6741_v7, 0.0  ;;  %v4697_v43 = vand.u32 4294901760, %v4608_v22  ;;  %v4592_v7 = vld [vmem:[%s10723_s6 + $0x60] sm:$0xff] }
 0x599   : > { %11637 = vst [vmem:[#allocation53_spill] sm:$0xff] %v9980_v8  ;;  %v6745_v10 = vadd.f32 %v9883_v38, %v4365_v39  ;;  %v4367_v4 = vpop.f32.mrb[11].mxu1  ;;  %4484 = vrot.lane.b32.xlu0 %v9978_v48, %s7041_s15  ;;  %4436 = vrot.lane.b32.xlu1 %v9978_v48, %s7035_s19  ;;  %v10055_v2 = vsub.f32 %v4590_v41, %v4643_v18 }
 0x59a   : > { %v6749_v1 = vadd.f32 %v9886_v9, %v4367_v4  ;;  %6547 = vmatprep.subr.bf16.mxu0 %v9980_v8  ;;  %v4700_v4 = vand.u32 4294901760, %v4609_v60 }
 0x59b   : > { %6549 = vmatpush3.bf16.msra.mxu0 %v9991_v31  ;;  %v10012_v30 = vmax.f32 %v6745_v10, 0.0  ;;  %11644 = vst [vmem:[#allocation22_spill] sm:$0xff] %v10055_v2 }
 0x59c   : > { %v4372_v38 = vpop.f32.mrb[12].mxu1  ;;  %v10022_v16 = vmax.f32 %v6749_v1, 0.0  ;;  %v10064_v1 = vsub.f32 %v4608_v22, %v4697_v43 }
 0x59d   : > { %v10003_v15 = vadd.f32 %v9900_v61, %v4372_v38  ;;  %v4374_v58 = vpop.f32.mrb[13].mxu1  ;;  %4486 = vrot.lane.b32.xlu0 %v9999_v37, %s7041_s15  ;;  %4532 = vrot.lane.b32.xlu1 %v9978_v48, %s7034_s18  ;;  %v4610_v38 = vld [vmem:[%s10723_s6 + $0xf0] sm:$0xff] }
 0x59e   : > { %v10010_v9 = vadd.f32 %v9904_v35, %v4374_v58  ;;  %v4606_v35 = vld [vmem:[%s10723_s6 + $0xd0] sm:$0xff]  ;;  %11647 = vst [vmem:[#allocation20_spill] sm:$0xff] %v10064_v1  ;;  %v4611_v58 = vld [vmem:[%s10723_s6 + $0xf8] sm:$0xff]  ;;  %v11008_v6 = vand.u32 4294901760, %v10064_v1 }
 0x59f   : > { %v4691_v57 = vand.u32 4294901760, %v4606_v35  ;;  %v4706_v41 = vand.u32 4294901760, %v4611_v58 }
 0x5a0   : > { %v4379_v55 = vpop.f32.mrb[14].mxu1 }
 0x5a1   : > { %v10015_v33 = vadd.f32 %v9907_v21, %v4379_v55  ;;  %v4381_v52 = vpop.f32.mrb[15].mxu1  ;;  %4538 = vrot.lane.b32.xlu0 %v10012_v30, %s7034_s18  ;;  %4438 = vrot.lane.b32.xlu1 %v9999_v37, %s7035_s19  ;;  %v4607_v21 = vld [vmem:[%s10723_s6 + $0xd8] sm:$0xff]  ;;  %v10051_v19 = vsub.f32 %v4606_v35, %v4691_v57  ;;  %v4594_v55 = vld [vmem:[%s10723_s6 + $0x70] sm:$0xff]  ;;  %v4652_v35 = vand.u32 4294901760, %v4593_v53 }
 0x5a2   : > { %v6765_v61 = vadd.f32 %v9910_v27, %v4381_v52  ;;  %v4694_v50 = vand.u32 4294901760, %v4607_v21  ;;  %v4591_v27 = vld [vmem:[%s10723_s6 + $0x58] sm:$0xff]  ;;  %v4649_v52 = vand.u32 4294901760, %v4592_v7 }
 0x5a3   : > { %v4646_v13 = vand.u32 4294901760, %v4591_v27  ;;  %11642 = vst [vmem:[#allocation23_spill] sm:$0xff] %v10051_v19 }
 0x5a4   : > { %v10049_v25 = vpack.c.bf16 %v4694_v50, %v4691_v57  ;;  %v10053_v32 = vsub.f32 %v4607_v21, %v4694_v50  ;;  %v4703_v21 = vand.u32 4294901760, %v4610_v38  ;;  %v4595_v57 = vld [vmem:[%s10723_s6 + $0x78] sm:$0xff]  ;;  %v10083_v50 = vpack.c.bf16 %v4700_v4, %v4697_v43 }
 0x5a5   : > { %4444 = vrot.lane.b32.xlu0 %v10022_v16, %s7035_s19  ;;  %4534 = vrot.lane.b32.xlu1 %v9999_v37, %s7034_s18  ;;  %v10060_v39 = vpack.c.bf16 %v4646_v13, %v4643_v18  ;;  %v10062_v10 = vsub.f32 %v4591_v27, %v4646_v13  ;;  %v10085_v27 = vsub.f32 %v4609_v60, %v4700_v4  ;;  %v4655_v18 = vand.u32 4294901760, %v4594_v55 }
 0x5a6   : > { %11641 = vst [vmem:[#allocation11_spill] sm:$0xff] %v10049_v25  ;;  %11643 = vst [vmem:[#allocation17_spill] sm:$0xff] %v10053_v32  ;;  %6551 = vmatprep.subr.bf16.mxu0 %v10049_v25  ;;  %v10088_v22 = vpack.c.bf16 %v4652_v35, %v4649_v52  ;;  %v10090_v13 = vsub.f32 %v4592_v7, %v4649_v52  ;;  %v10092_v25 = vsub.f32 %v4593_v53, %v4652_v35 }
 0x5a7   : > { %11645 = vst [vmem:[#allocation48_spill] sm:$0xff] %v10060_v39  ;;  %11646 = vst [vmem:[#allocation68_spill] sm:$0xff] %v10062_v10  ;;  %6553 = vmatpush3.bf16.msra.mxu0 %v10060_v39  ;;  %v4658_v31 = vand.u32 4294901760, %v4595_v57  ;;  %v10095_v8 = vpack.c.bf16 %v4706_v41, %v4703_v21  ;;  %v10097_v44 = vsub.f32 %v4610_v38, %v4703_v21  ;;  %v10113_v53 = vmax.f32 %v10003_v15, 0.0 }
 0x5a8   : > { %11648 = vst [vmem:[#allocation24_spill] sm:$0xff] %v10083_v50  ;;  %11649 = vst [vmem:[#allocation56_spill] sm:$0xff] %v10085_v27  ;;  %6555 = vmatprep.subr.bf16.mxu0 %v10083_v50  ;;  %v10099_v43 = vsub.f32 %v4611_v58, %v4706_v41  ;;  %v10101_v60 = vsub.f32 %v4594_v55, %v4655_v18  ;;  %v10122_v38 = vmax.f32 %v10010_v9, 0.0  ;;  %v10125_v58 = vmax.f32 %v10015_v33, 0.0 }
 0x5a9   : > { %4492 = vrot.lane.b32.xlu0 %v10022_v16, %s7041_s15  ;;  %4442 = vrot.lane.b32.xlu1 %v10012_v30, %s7035_s19  ;;  %11650 = vst [vmem:[#allocation49_spill] sm:$0xff] %v10088_v22  ;;  %11651 = vst [vmem:[#allocation86_spill] sm:$0xff] %v10090_v13  ;;  %v10103_v4 = vsub.f32 %v4595_v57, %v4658_v31  ;;  %v10110_v7 = vpack.c.bf16 %v4658_v31, %v4655_v18  ;;  %v10127_v31 = vmax.f32 %v6765_v61, 0.0 }
 0x5aa   : > { %11652 = vst [vmem:[#allocation85_spill] sm:$0xff] %v10092_v25  ;;  %11653 = vst [vmem:[#allocation89_spill] sm:$0xff] %v10095_v8  ;;  %v10963_v15 = vand.u32 4294901760, %v9860_v20  ;;  %v10966_v55 = vand.u32 4294901760, %v9862_v36  ;;  %v10969_v52 = vand.u32 4294901760, %v9872_v42  ;;  %v10970_v9 = vand.u32 4294901760, %v9874_v46 }
 0x5ab   : > { %11654 = vst [vmem:[#allocation90_spill] sm:$0xff] %v10097_v44  ;;  %11655 = vst [vmem:[#allocation107_spill] sm:$0xff] %v10099_v43  ;;  %6557 = vmatpush3.bf16.msra.mxu0 %v10088_v22  ;;  %v10971_v35 = vand.u32 4294901760, %v9879_v14  ;;  %v11661_v61 = vand.u32 4294901760, %v9881_v0 }
 0x5ac   : > { %11656 = vst [vmem:[#allocation45_spill] sm:$0xff] %v10101_v60  ;;  %11657 = vst [vmem:[#allocation50_spill] sm:$0xff] %v10103_v4  ;;  %6559 = vmatprep.subr.bf16.mxu0 %v10095_v8  ;;  %v4885_v41 = vsub.f32 %v9860_v20, %v10963_v15  ;;  %v4892_v57 = vsub.f32 %v9862_v36, %v10966_v55  ;;  %v4773_v18 = vsub.f32 %v9872_v42, %v10969_v52 }
 0x5ad   : > { %4540 = vrot.lane.b32.xlu0 %v10022_v16, %s7034_s18  ;;  %4490 = vrot.lane.b32.xlu1 %v10012_v30, %s7041_s15  ;;  %11658 = vst [vmem:[#allocation42_spill] sm:$0xff] %v10110_v7  ;;  %11659 = vst [vmem:[#allocation54_spill] sm:$0xff] %v10125_v58  ;;  %v4780_v33 = vsub.f32 %v9874_v46, %v10970_v9  ;;  %v4899_v21 = vsub.f32 %v9879_v14, %v10971_v35  ;;  %v11663_v8 = vand.u32 4294901760, %v9893_v54 }
 0x5ae   : > { %11660 = vst [vmem:[#allocation80_spill] sm:$0xff] %v10127_v31  ;;  %v4906_v15 = vsub.f32 %v9881_v0, %v11661_v61  ;;  %v4886_v9 = vand.u32 4294901760, %v4885_v41  ;;  %v4893_v35 = vand.u32 4294901760, %v4892_v57  ;;  %v4774_v22 = vand.u32 4294901760, %v4773_v18 }
 0x5af   : > { %6561 = vmatpush3.bf16.msra.mxu0 %v10110_v7  ;;  %v11662_v7 = vand.u32 4294901760, %v9891_v34  ;;  %v4794_v52 = vsub.f32 %v9893_v54, %v11663_v8  ;;  %v4781_v50 = vand.u32 4294901760, %v4780_v33  ;;  %v4900_v39 = vand.u32 4294901760, %v4899_v21 }
 0x5b0   : > { %v4907_v61 = vand.u32 4294901760, %v4906_v15  ;;  %v6562_v24 = vpack.c.bf16 %v4893_v35, %v4886_v9  ;;  %v10999_v8 = vand.u32 4294901760, %v9928_v12  ;;  %v10998_v41 = vand.u32 4294901760, %v9932_v63 }
 0x5b1   : > { %4544 = vrot.lane.b32.xlu0 %v10113_v53, %s7034_s18  ;;  %4448 = vrot.lane.b32.xlu1 %v10113_v53, %s7035_s19  ;;  %v4787_v55 = vsub.f32 %v9891_v34, %v11662_v7  ;;  %v4795_v47 = vand.u32 4294901760, %v4794_v52  ;;  %v10169_v7 = vpack.c.bf16 %v4781_v50, %v4774_v22  ;;  %v10994_v57 = vand.u32 4294901760, %v9934_v51 }
 0x5b2   : > { %v10173_v28 = vpack.c.bf16 %v4907_v61, %v4900_v39  ;;  %v4913_v50 = vsub.f32 %v9926_v59, %v11001_v45  ;;  %v4920_v39 = vsub.f32 %v9928_v12, %v10999_v8  ;;  %6563 = vmatprep.subr.bf16.mxu0 %v6562_v24  ;;  %v10991_v24 = vand.u32 4294901760, %v9952_v40 }
 0x5b3   : > { %v4788_v5 = vand.u32 4294901760, %v4787_v55  ;;  %v10990_v35 = vand.u32 4294901760, %v9954_v17  ;;  %v10992_v33 = vand.u32 4294901760, %v9956_v62  ;;  %v10993_v18 = vand.u32 4294901760, %v9960_v3 }
 0x5b4   : > { %v4914_v22 = vand.u32 4294901760, %v4913_v50  ;;  %v4921_v15 = vand.u32 4294901760, %v4920_v39  ;;  %v4927_v61 = vsub.f32 %v9952_v40, %v10991_v24  ;;  %v11000_v24 = vand.u32 4294901760, %v9997_v56 }
 0x5b5   : > { %4450 = vrot.lane.b32.xlu0 %v10122_v38, %s7035_s19  ;;  %4496 = vrot.lane.b32.xlu1 %v10113_v53, %s7041_s15  ;;  %v10175_v23 = vpack.c.bf16 %v4795_v47, %v4788_v5  ;;  %v4801_v47 = vsub.f32 %v9932_v63, %v10998_v41  ;;  %v4808_v5 = vsub.f32 %v9934_v51, %v10994_v57  ;;  %v11004_v57 = vand.u32 4294901760, %v10051_v19 }
 0x5b6   : > { %v10199_v9 = vpack.c.bf16 %v4921_v15, %v4914_v22  ;;  %v4815_v50 = vsub.f32 %v9956_v62, %v10992_v33  ;;  %v4822_v39 = vsub.f32 %v9960_v3, %v10993_v18  ;;  %v10996_v15 = vand.u32 4294901760, %v9982_v26 }
 0x5b7   : > { %v4802_v55 = vand.u32 4294901760, %v4801_v47  ;;  %v4809_v52 = vand.u32 4294901760, %v4808_v5  ;;  %v4928_v47 = vand.u32 4294901760, %v4927_v61  ;;  %v11010_v61 = vand.u32 4294901760, %v10053_v32 }
 0x5b8   : > { %v4816_v22 = vand.u32 4294901760, %v4815_v50  ;;  %v4941_v18 = vsub.f32 %v9982_v26, %v10996_v15  ;;  %v11006_v8 = vand.u32 4294901760, %v10062_v10 }
 0x5b9   : > { %4502 = vrot.lane.b32.xlu0 %v10125_v58, %s7041_s15  ;;  %4498 = vrot.lane.b32.xlu1 %v10122_v38, %s7041_s15  ;;  %v10204_v21 = vpack.c.bf16 %v4809_v52, %v4802_v55  ;;  %v4823_v55 = vand.u32 4294901760, %v4822_v39  ;;  %v10995_v52 = vand.u32 4294901760, %v9984_v11 }
 0x5bb   : > { %v4948_v50 = vsub.f32 %v9984_v11, %v10995_v52  ;;  %v11007_v52 = vand.u32 4294901760, %v10055_v2 }
 0x5bd   : > { %4456 = vrot.lane.b32.xlu0 %v10127_v31, %s7035_s19  ;;  %4546 = vrot.lane.b32.xlu1 %v10122_v38, %s7034_s18  ;;  %v4949_v15 = vand.u32 4294901760, %v4948_v50  ;;  %v4850_v50 = vsub.f32 %v10062_v10, %v11006_v8  ;;  %v11014_v8 = vand.u32 4294901760, %v10097_v44 }
 0x5c1   : > { %4454 = vrot.lane.b32.xlu1 %v10125_v58, %s7035_s19  ;;  %4554 = vrot.lane.b32.xlu0 %v11439_v29, %s7034_s18  ;;  %v4934_v29 = vsub.f32 %v9954_v17, %v10990_v35  ;;  %v10997_v35 = vand.u32 4294901760, %v9993_v49 }
 0x5c3   : > { %v4935_v5 = vand.u32 4294901760, %v4934_v29  ;;  %v10232_v29 = vpack.c.bf16 %v4823_v55, %v4816_v22  ;;  %v4829_v39 = vsub.f32 %v9993_v49, %v10997_v35  ;;  %v4955_v22 = vsub.f32 %v10051_v19, %v11004_v57 }
 0x5c4   : > { %v4962_v55 = vsub.f32 %v10053_v32, %v11010_v61  ;;  %v4983_v61 = vsub.f32 %v10097_v44, %v11014_v8 }
 0x5c5   : > { %4504 = vrot.lane.b32.xlu1 %v10127_v31, %s7041_s15  ;;  %v10225_v33 = vpack.c.bf16 %v4935_v5, %v4928_v47  ;;  %v4836_v47 = vsub.f32 %v9997_v56, %v11000_v24  ;;  %v4942_v5 = vand.u32 4294901760, %v4941_v18  ;;  %v4830_v35 = vand.u32 4294901760, %v4829_v39 }
 0x5c6   : > { %v4956_v24 = vand.u32 4294901760, %v4955_v22  ;;  %v4963_v45 = vand.u32 4294901760, %v4962_v55  ;;  %v4843_v18 = vsub.f32 %v10055_v2, %v11007_v52  ;;  %v11009_v39 = vand.u32 4294901760, %v10085_v27 }
 0x5c7   : > { %v4837_v41 = vand.u32 4294901760, %v4836_v47  ;;  %v10257_v57 = vpack.c.bf16 %v4949_v15, %v4942_v5  ;;  %v4969_v55 = vsub.f32 %v10064_v1, %v11008_v6  ;;  %v11011_v15 = vand.u32 4294901760, %v10090_v13 }
 0x5c8   : > { %v10267_v47 = vpack.c.bf16 %v4963_v45, %v4956_v24  ;;  %v4844_v22 = vand.u32 4294901760, %v4843_v18  ;;  %v11013_v5 = vand.u32 4294901760, %v10092_v25  ;;  %v11015_v24 = vand.u32 4294901760, %v10099_v43 }
 0x5c9   : > { %4552 = vrot.lane.b32.xlu1 %v10127_v31, %s7034_s18  ;;  %v10259_v31 = vpack.c.bf16 %v4837_v41, %v4830_v35  ;;  %v4851_v41 = vand.u32 4294901760, %v4850_v50  ;;  %v4976_v35 = vsub.f32 %v10085_v27, %v11009_v39  ;;  %v4970_v52 = vand.u32 4294901760, %v4969_v55 }
 0x5ca   : > { %11665 = vst [vmem:[#allocation79_spill] sm:$0xff] %v10267_v47  ;;  %v4857_v45 = vsub.f32 %v10090_v13, %v11011_v15  ;;  %v11017_v18 = vand.u32 4294901760, %v10101_v60  ;;  %v4864_v39 = vsub.f32 %v10092_v25, %v11013_v5  ;;  %v4990_v15 = vsub.f32 %v10099_v43, %v11015_v24 }
 0x5cb   : > { %11664 = vst [vmem:[#allocation57_spill] sm:$0xff] %v10259_v31  ;;  %v10283_v6 = vpack.c.bf16 %v4851_v41, %v4844_v22  ;;  %v4977_v50 = vand.u32 4294901760, %v4976_v35  ;;  %v11016_v22 = vand.u32 4294901760, %v10103_v4 }
 0x5cc   : > { %v4858_v55 = vand.u32 4294901760, %v4857_v45  ;;  %v4865_v35 = vand.u32 4294901760, %v4864_v39  ;;  %v4991_v47 = vand.u32 4294901760, %v4990_v15 }
 0x5cd   : > { %4550 = vrot.lane.b32.xlu1 %v10125_v58, %s7034_s18  ;;  %11666 = vst [vmem:[#allocation65_spill] sm:$0xff] %v10283_v6  ;;  %v4871_v58 = vsub.f32 %v10101_v60, %v11017_v18  ;;  %v10298_v41 = vpack.c.bf16 %v4977_v50, %v4970_v52  ;;  %v4984_v6 = vand.u32 4294901760, %v4983_v61  ;;  %v4878_v45 = vsub.f32 %v10103_v4, %v11016_v22  ;;  %v6950_v22 = vpop.permute.xlu1 %6949  ;;  %s269_s18 = sand.u32 1, %s7022_s25  }
 0x5ce   : > { %v10307_v31 = vpack.c.bf16 %v4865_v35, %v4858_v55  ;;  %v6945_v55 = vpop.permute.xlu0 %6944  ;;  %v6951_v35 = vunpack.i.l.bf16 %v6950_v22  ;;  %s5727_s19 = sshll.u32 %s269_s18, 5  ;;  %s10676_s23 = scalar_lea.sflag [#allocation8], %s269_s18 }
 0x5cf   : > { %v4872_v8 = vand.u32 4294901760, %v4871_v58  ;;  %v10311_v50 = vpack.c.bf16 %v4991_v47, %v4984_v6  ;;  %v4879_v61 = vand.u32 4294901760, %v4878_v45  ;;  %v6946_v18 = vunpack.i.l.bf16 %v6945_v55  ;;  %s271_s15 = scalar_lea.vmem [#allocation7], %s5727_s19 }
 0x5d0   : > { %v6947_v32 = vunpack.i.h.bf16 %v6945_v55  ;;  %s5661_s20 = sshll.u32 %s271_s15, 4  ;;  %s10673_s20 = int_to_ptr.vmem [resolvable:$true] %s5661_s20 }
 0x5d1   : > { %v10317_v15 = vpack.c.bf16 %v4879_v61, %v4872_v8  ;;  %v10343_v45 = vpop.permute.xlu1 %6959  ;;  %s6968_s28 = scalar_lea.vmem %s10673_s20, 512  ;;  %p6975_p0 = scmp.lt.s32.totalorder %s10673_s20, %s6973_s14 }
 0x5d2   : > { %v6955_v47 = vpop.permute.xlu0 %6954  ;;  %p6969_p11 = scmp.ne.s32.totalorder %s10673_s20, %s6968_s28  ;;  %p6976_p1 = scmp.lt.s32.totalorder %s6974_s8, %s6968_s28 }
 0x5d3   : > { %v6956_v43 = vunpack.i.l.bf16 %v6955_v47 }
 0x5d4   : > { %p6970_p12 = pnand %p6969_p11, %p7123_p5  ;;  %p6977_p2 = por %p6976_p1, %p6975_p0 }
 0x5d6   : > { %v10341_v58 = vpop.permute.xlu0 %6964  ;;  %p6971_p13 = pneg %p6970_p12 }
 0x5d8   : > { %p6978_p3 = pnand %p6977_p2, %p6971_p13 }
 0x5da   : > { %v10345_v8 = vpop.permute.xlu0 %4548 }
 0x60b   : > { %v4485_v39 = vpop.permute.xlu0 %4484  ;;  %v4437_v61 = vpop.permute.xlu1 %4436 }
 0x60f   : > { %v4487_v52 = vpop.permute.xlu0 %4486  ;;  %v4533_v24 = vpop.permute.xlu1 %4532 }
 0x610   : > { %v4508_v25 = vsel %vm492_vm8, %v4485_v39, %v4487_v52  ;;  %v4509_v1 = vsel %vm492_vm8, %v4487_v52, %v6951_v35 }
 0x613   : > { %v4539_v5 = vpop.permute.xlu0 %4538  ;;  %v4439_v13 = vpop.permute.xlu1 %4438 }
 0x614   : > { %v4460_v44 = vsel %vm394_vm2, %v4437_v61, %v4439_v13  ;;  %v4461_v6 = vsel %vm394_vm2, %v4439_v13, %v6946_v18  ;;  %v6952_v18 = vunpack.i.h.bf16 %v6950_v22 }
 0x615   : > { %v4476_v60 = vmax.f32 %v9978_v48, %v4460_v44  ;;  %v4477_v4 = vmax.f32 %v9999_v37, %v4461_v6 }
 0x617   : > { %v4445_v27 = vpop.permute.xlu0 %4444  ;;  %v4524_v2 = vmax.f32 %v4476_v60, %v4508_v25  ;;  %v4525_v10 = vmax.f32 %v4477_v4, %v4509_v1  ;;  %v4535_v19 = vpop.permute.xlu1 %4534 }
 0x618   : > { %v4556_v49 = vsel %vm304_vm0, %v4533_v24, %v4535_v19  ;;  %v4557_v61 = vsel %vm304_vm0, %v4535_v19, %v6956_v43  ;;  %v4463_v44 = vsel %vm394_vm2, %v4445_v27, %v6947_v32  ;;  %v6957_v19 = vunpack.i.h.bf16 %v6955_v47 }
 0x619   : > { %v4572_v56 = vmax.f32 %v4524_v2, %v4556_v49  ;;  %v4573_v13 = vmax.f32 %v4525_v10, %v4557_v61  ;;  %v4479_v60 = vmax.f32 %v10022_v16, %v4463_v44 }
 0x61b   : > { %v10356_v48 = vand.u32 4294901760, %v4573_v13  ;;  %v10358_v37 = vand.u32 4294901760, %v4572_v56  ;;  %v4493_v39 = vpop.permute.xlu0 %4492  ;;  %v4443_v52 = vpop.permute.xlu1 %4442 }
 0x61c   : > { %v4511_v25 = vsel %vm492_vm8, %v4493_v39, %v6952_v18  ;;  %v4462_v1 = vsel %vm394_vm2, %v4443_v52, %v4445_v27 }
 0x61d   : > { %v10364_v4 = vsub.f32 %v4573_v13, %v10356_v48  ;;  %v10367_v49 = vsub.f32 %v4572_v56, %v10358_v37  ;;  %v4527_v2 = vmax.f32 %v4479_v60, %v4511_v25  ;;  %v4478_v10 = vmax.f32 %v10012_v30, %v4462_v1 }
 0x61f   : > { %v11052_v32 = vand.u32 4294901760, %v10367_v49  ;;  %v4541_v43 = vpop.permute.xlu0 %4540  ;;  %v4491_v24 = vpop.permute.xlu1 %4490  ;;  %v4710_v22 = vand.u32 4294901760, %v10364_v4 }
 0x620   : > { %v4559_v27 = vsel %vm304_vm0, %v4541_v43, %v6957_v19  ;;  %v4510_v16 = vsel %vm492_vm8, %v4491_v24, %v4493_v39  ;;  %v4558_v30 = vsel %vm304_vm0, %v4539_v5, %v4541_v43  ;;  %v6966_v24 = vunpack.i.l.bf16 %v10341_v58 }
 0x621   : > { %v4717_v55 = vsub.f32 %v10367_v49, %v11052_v32  ;;  %v4575_v56 = vmax.f32 %v4527_v2, %v4559_v27  ;;  %v4526_v35 = vmax.f32 %v4478_v10, %v4510_v16  ;;  %v4711_v6 = vsub.f32 %v10364_v4, %v4710_v22  ;;  %v11717_v32 = vld [vmem:[#allocation89_spill] sm:$0xff] }
 0x622   : > { %v6961_v2 = vunpack.i.l.bf16 %v10343_v45 }
 0x623   : > { %v4718_v47 = vand.u32 4294901760, %v4717_v55  ;;  %v10381_v61 = vand.u32 4294901760, %v4575_v56  ;;  %v4574_v13 = vmax.f32 %v4526_v35, %v4558_v30  ;;  %v4545_v18 = vpop.permute.xlu0 %4544  ;;  %v4449_v44 = vpop.permute.xlu1 %4448  ;;  %v4712_v52 = vand.u32 4294901760, %v4711_v6 }
 0x625   : > { %v10384_v39 = vsub.f32 %v4575_v56, %v10381_v61  ;;  %v10386_v25 = vand.u32 4294901760, %v4574_v13  ;;  %4713 = vmatprep.mubr.f32.mxu0 %v4712_v52 }
 0x626   : > { %4719 = vmatmul.mubr.f32.vlgmr.msra.gmra.mrb[24].mxu0 %v4718_v47 }
 0x627   : > { %v10389_v1 = vsub.f32 %v4574_v13, %v10386_v25  ;;  %v4451_v60 = vpop.permute.xlu0 %4450  ;;  %v4497_v19 = vpop.permute.xlu1 %4496  ;;  %v11051_v5 = vand.u32 4294901760, %v10384_v39  ;;  %6565 = vmatpush3.bf16.msra.mxu0 %v10169_v7 }
 0x628   : > { %6567 = vmatprep.subr.bf16.mxu0 %v10173_v28  ;;  %v4464_v27 = vsel %vm394_vm2, %v4449_v44, %v4451_v60  ;;  %v4465_v16 = vsel %vm394_vm2, %v4451_v60, %v6961_v2 }
 0x629   : > { %v4726_v10 = vsub.f32 %v10384_v39, %v11051_v5  ;;  %v11050_v43 = vand.u32 4294901760, %v10389_v1  ;;  %v4480_v6 = vmax.f32 %v10113_v53, %v4464_v27  ;;  %v4481_v30 = vmax.f32 %v10122_v38, %v4465_v16  ;;  %v11716_v5 = vld [vmem:[#allocation49_spill] sm:$0xff] }
 0x62a   : > { %v6962_v27 = vunpack.i.h.bf16 %v10343_v45 }
 0x62b   : > { %v4499_v55 = vpop.permute.xlu1 %4498  ;;  %v4727_v56 = vand.u32 4294901760, %v4726_v10  ;;  %v4732_v7 = vsub.f32 %v10389_v1, %v11050_v43  ;;  %6569 = vmatpush3.bf16.msra.mxu0 %v10175_v23  ;;  %v4503_v47 = vpop.permute.xlu0 %4502  ;;  %v11715_v43 = vld [vmem:[#allocation24_spill] sm:$0xff] }
 0x62c   : > { %v4512_v28 = vsel %vm492_vm8, %v4497_v19, %v4499_v55  ;;  %v4513_v35 = vsel %vm492_vm8, %v4499_v55, %v6966_v24  ;;  %6571 = vmatprep.subr.bf16.mxu0 %v10199_v9 }
 0x62d   : > { %4728 = vmatprep.mubr.f32.mxu0 %v4727_v56  ;;  %v4733_v13 = vand.u32 4294901760, %v4732_v7  ;;  %v4528_v44 = vmax.f32 %v4480_v6, %v4512_v28  ;;  %v4529_v52 = vmax.f32 %v4481_v30, %v4513_v35  ;;  %v11668_v7 = vld [vmem:[#allocation80_spill] sm:$0xff]  ;;  %v11669_v6 = vld [vmem:[#allocation79_spill] sm:$0xff] }
 0x62f   : > { %4734 = vmatmul.mubr.f32.gmra.mrb[26].mxu0 %v4733_v13  ;;  %v4547_v60 = vpop.permute.xlu1 %4546  ;;  %v4457_v53 = vpop.permute.xlu0 %4456 }
 0x630   : > { %v4560_v2 = vsel %vm304_vm0, %v4545_v18, %v4547_v60  ;;  %v4561_v23 = vsel %vm304_vm0, %v4547_v60, %v10345_v8  ;;  %6573 = vmatpush3.bf16.msra.mxu0 %v10204_v21  ;;  %v4467_v21 = vsel %vm394_vm2, %v4457_v53, %v6962_v27 }
 0x631   : > { %v4576_v19 = vmax.f32 %v4528_v44, %v4560_v2  ;;  %v4577_v9 = vmax.f32 %v4529_v52, %v4561_v23  ;;  %6575 = vmatprep.subr.bf16.mxu0 %v10225_v33  ;;  %v6967_v33 = vunpack.i.h.bf16 %v10341_v58  ;;  %v4483_v28 = vmax.f32 %v11668_v7, %v4467_v21 }
 0x633   : > { %v10416_v38 = vand.u32 4294901760, %v4577_v9  ;;  %v10418_v10 = vand.u32 4294901760, %v4576_v19  ;;  %v4455_v24 = vpop.permute.xlu1 %4454  ;;  %v4555_v35 = vpop.permute.xlu0 %4554 }
 0x634   : > { %6577 = vmatpush3.bf16.msra.mxu0 %v10232_v29  ;;  %v11667_v29 = vld [vmem:[#allocation57_spill] sm:$0xff]  ;;  %v4466_v30 = vsel %vm394_vm2, %v4455_v24, %v4457_v53 }
 0x635   : > { %v10423_v18 = vsub.f32 %v4577_v9, %v10416_v38  ;;  %v10426_v8 = vsub.f32 %v4576_v19, %v10418_v10  ;;  %6579 = vmatprep.subr.bf16.mxu0 %v10257_v57  ;;  %v11670_v19 = vld [vmem:[#allocation65_spill] sm:$0xff]  ;;  %v11671_v9 = vld [vmem:[#allocation54_spill] sm:$0xff] }
 0x636   : > { %v4482_v27 = vmax.f32 %v11671_v9, %v4466_v30  ;;  %v11676_v30 = vpack.c.bf16 %v9893_v54, %v9891_v34 }
 0x637   : > { %v4505_v16 = vpop.permute.xlu1 %4504  ;;  %v11049_v55 = vand.u32 4294901760, %v10423_v18  ;;  %v11048_v56 = vand.u32 4294901760, %v10426_v8 }
 0x638   : > { %v4515_v45 = vsel %vm492_vm8, %v4505_v16, %v6967_v33  ;;  %6581 = vmatpush3.bf16.msra.mxu0 %v11667_v29  ;;  %v4514_v2 = vsel %vm492_vm8, %v4503_v47, %v4505_v16 }
 0x639   : > { %v4741_v57 = vsub.f32 %v10423_v18, %v11049_v55  ;;  %v4747_v58 = vsub.f32 %v10426_v8, %v11048_v56  ;;  %6583 = vmatprep.subr.bf16.mxu0 %v11669_v6  ;;  %v4531_v13 = vmax.f32 %v4483_v28, %v4515_v45  ;;  %v4530_v21 = vmax.f32 %v4482_v27, %v4514_v2  ;;  %v11685_v27 = vld [vmem:[#allocation17_spill] sm:$0xff]  ;;  %v11713_v56 = vld [vmem:[#allocation11_spill] sm:$0xff]  ;;  %v11714_v55 = vld [vmem:[#allocation48_spill] sm:$0xff] }
 0x63a   : > { %v11675_v6 = vpack.c.bf16 %v9881_v0, %v9879_v14  ;;  %v11681_v2 = vpack.c.bf16 %v9984_v11, %v9982_v26 }
 0x63b   : > { %v4553_v44 = vpop.permute.xlu1 %4552  ;;  %v4742_v52 = vand.u32 4294901760, %v4741_v57  ;;  %v4748_v60 = vand.u32 4294901760, %v4747_v58  ;;  %v11674_v58 = vpack.c.bf16 %v9874_v46, %v9872_v42 }
 0x63c   : > { %v4563_v23 = vsel %vm304_vm0, %v4553_v44, %v4555_v35  ;;  %6585 = vmatpush3.bf16.msra.mxu0 %v11670_v19  ;;  %v11683_v19 = vld [vmem:[#allocation10_spill] sm:$0xff] }
 0x63d   : > { %v4579_v33 = vmax.f32 %v4531_v13, %v4563_v23  ;;  %4743 = vmatprep.mubr.f32.mxu0 %v4742_v52  ;;  %6587 = vmatprep.subr.bf16.mxu0 %v10298_v41  ;;  %v11677_v13 = vpack.c.bf16 %v9928_v12, %v9926_v59  ;;  %v11679_v52 = vpack.c.bf16 %v9954_v17, %v9952_v40  ;;  %v11682_v23 = vld [vmem:[#allocation12_spill] sm:$0xff] }
 0x63e   : > { %4749 = vmatmul.mubr.f32.gmra.mrb[28].mxu0 %v4748_v60  ;;  %v11680_v60 = vpack.c.bf16 %v9960_v3, %v9956_v62  ;;  %v11684_v9 = vpack.c.bf16 %v11682_v23, %v11683_v19 }
 0x63f   : > { %v10449_v29 = vand.u32 4294901760, %v4579_v33  ;;  %v4551_v53 = vpop.permute.xlu1 %4550 }
 0x640   : > { %v4562_v24 = vsel %vm304_vm0, %v4551_v53, %v4553_v44  ;;  %6589 = vmatpush3.bf16.msra.mxu0 %v10307_v31  ;;  %v11673_v31 = vpack.c.bf16 %v9862_v36, %v9860_v20  ;;  %v11678_v44 = vpack.c.bf16 %v9934_v51, %v9932_v63  ;;  %v11688_v53 = vld [vmem:[#allocation68_spill] sm:$0xff] }
 0x641   : > { %v10454_v47 = vsub.f32 %v4579_v33, %v10449_v29  ;;  %v4578_v16 = vmax.f32 %v4530_v21, %v4562_v24  ;;  %6591 = vmatprep.subr.bf16.mxu0 %v10311_v50  ;;  %v11686_v33 = vld [vmem:[#allocation23_spill] sm:$0xff]  ;;  %v11689_v24 = vld [vmem:[#allocation22_spill] sm:$0xff] }
 0x642   : > { %v11687_v21 = vpack.c.bf16 %v11685_v27, %v11686_v33 }
 0x643   : > { %v10457_v45 = vand.u32 4294901760, %v4578_v16  ;;  %v11047_v7 = vand.u32 4294901760, %v10454_v47 }
 0x644   : > { %6593 = vmatpush3.bf16.msra.mxu0 %v10317_v15 }
 0x645   : > { %11672 = vst [vmem:[#allocation67_spill] sm:$0xff] %v10457_v45  ;;  %v10462_v41 = vsub.f32 %v4578_v16, %v10457_v45  ;;  %v4756_v28 = vsub.f32 %v10454_v47, %v11047_v7  ;;  %6595 = vmatprep.subr.bf16.mxu0 %v11673_v31  ;;  %v11690_v16 = vpack.c.bf16 %v11688_v53, %v11689_v24  ;;  %v11692_v31 = vld [vmem:[#allocation20_spill] sm:$0xff] }
 0x646   : > { %v11712_v7 = vld [vmem:[#allocation36_spill] sm:$0xff] }
 0x647   : > { %v4757_v35 = vand.u32 4294901760, %v4756_v28  ;;  %v11046_v50 = vand.u32 4294901760, %v10462_v41  ;;  %v11691_v28 = vld [vmem:[#allocation56_spill] sm:$0xff] }
 0x649   : > { %4758 = vmatprep.mubr.f32.mxu0 %v4757_v35  ;;  %v4762_v57 = vsub.f32 %v10462_v41, %v11046_v50  ;;  %v11693_v35 = vpack.c.bf16 %v11691_v28, %v11692_v31  ;;  %v11711_v50 = vld [vmem:[#allocation53_spill] sm:$0xff] }
 0x64b   : > { %v4763_v15 = vand.u32 4294901760, %v4762_v57  ;;  %v11694_v57 = vld [vmem:[#allocation85_spill] sm:$0xff] }
 0x64d   : > { %4764 = vmatmul.mubr.f32.gmra.mrb[30].mxu0 %v4763_v15  ;;  %v11695_v15 = vld [vmem:[#allocation86_spill] sm:$0xff] }
 0x64e   : > { %4994 = vmatprep.mubr.f32.mxu0 %v10356_v48 }
 0x651   : > { %4996 = vmatmul.mubr.f32.vlgmr.msra.gmra.mrb[32].mxu0 %v10358_v37 }
 0x652   : > { %6597 = vmatpush3.bf16.msra.mxu0 %v11674_v58  ;;  %5001 = vmatprep.mubr.f32.mxu0 %v10381_v61  ;;  %v11696_v58 = vpack.c.bf16 %v11694_v57, %v11695_v15 }
 0x653   : > { %6599 = vmatprep.subr.bf16.mxu0 %v11675_v6  ;;  %v11697_v6 = vld [vmem:[#allocation107_spill] sm:$0xff] }
 0x655   : > { %5003 = vmatmul.mubr.f32.gmra.mrb[34].mxu0 %v10386_v25 }
 0x656   : > { %6601 = vmatpush3.bf16.msra.mxu0 %v11676_v30  ;;  %5008 = vmatprep.mubr.f32.mxu0 %v10416_v38  ;;  %v11698_v30 = vld [vmem:[#allocation90_spill] sm:$0xff] }
 0x657   : > { %6603 = vmatprep.subr.bf16.mxu0 %v11677_v13  ;;  %v11699_v13 = vpack.c.bf16 %v11697_v6, %v11698_v30 }
 0x659   : > { %5010 = vmatmul.mubr.f32.gmra.mrb[36].mxu0 %v10418_v10 }
 0x65a   : > { %6605 = vmatpush3.bf16.msra.mxu0 %v11678_v44  ;;  %5015 = vmatprep.mubr.f32.mxu0 %v10449_v29  ;;  %v11700_v44 = vld [vmem:[#allocation50_spill] sm:$0xff] }
 0x65b   : > { %6607 = vmatprep.subr.bf16.mxu0 %v11679_v52  ;;  %v11701_v52 = vld [vmem:[#allocation45_spill] sm:$0xff] }
 0x65d   : > { %5017 = vmatmul.mubr.f32.gmra.mrb[38].mxu0 %v10457_v45  ;;  %v11718_v45 = vand.u32 4294901760, %v9860_v20  ;;  %v11726_v20 = vand.u32 4294901760, %v10384_v39 }
 0x65e   : > { %6609 = vmatpush3.bf16.msra.mxu0 %v11680_v60  ;;  %5152 = vmatprep.mubr.f32.mxu0 %v10364_v4  ;;  %v11702_v60 = vpack.c.bf16 %v11700_v44, %v11701_v52 }
 0x65f   : > { %6611 = vmatprep.subr.bf16.mxu0 %v11681_v2  ;;  %v11703_v2 = vld [vmem:[#allocation73_spill] sm:$0xff] }
 0x662   : > { %6613 = vmatpush3.bf16.msra.mxu0 %v11684_v9  ;;  %v11704_v9 = vld [vmem:[#allocation70_spill] sm:$0xff] }
 0x663   : > { %6615 = vmatprep.subr.bf16.mxu0 %v11687_v21  ;;  %v11705_v21 = vld [vmem:[#allocation18_spill] sm:$0xff] }
 0x666   : > { %6617 = vmatpush3.bf16.msra.mxu0 %v11690_v16  ;;  %v11706_v16 = vld [vmem:[#allocation46_spill] sm:$0xff] }
 0x667   : > { %6619 = vmatprep.subr.bf16.mxu0 %v11693_v35  ;;  %v11707_v35 = vld [vmem:[#allocation32_spill] sm:$0xff] }
 0x66a   : > { %6621 = vmatpush3.bf16.msra.mxu0 %v11696_v58  ;;  %v11708_v58 = vld [vmem:[#allocation78_spill] sm:$0xff] }
 0x66b   : > { %6623 = vmatprep.subr.bf16.mxu0 %v11699_v13  ;;  %v11709_v13 = vld [vmem:[#allocation40_spill] sm:$0xff] }
 0x66e   : > { %6625 = vmatpush3.bf16.msra.mxu0 %v11702_v60  ;;  %v11710_v60 = vld [vmem:[#allocation66_spill] sm:$0xff] }
 0x66f   : > { %6627 = vmatprep.subr.bf16.mxu0 %v11703_v2 }
 0x671   : > { %5155 = vmatmul.mubr.f32.vlgmr.msra.gmra.mrb[40].mxu0 %v10367_v49 }
 0x672   : > { %5161 = vmatprep.mubr.f32.mxu0 %v10384_v39  ;;  %6629 = vmatpush3.bf16.msra.mxu0 %v11704_v9 }
 0x673   : > { %6631 = vmatprep.subr.bf16.mxu0 %v11705_v21 }
 0x675   : > { %5164 = vmatmul.mubr.f32.gmra.mrb[42].mxu0 %v10389_v1 }
 0x676   : > { %5170 = vmatprep.mubr.f32.mxu0 %v10423_v18  ;;  %6633 = vmatpush3.bf16.msra.mxu0 %v11706_v16 }
 0x677   : > { %6635 = vmatprep.subr.bf16.mxu0 %v11707_v35 }
 0x679   : > { %5173 = vmatmul.mubr.f32.gmra.mrb[44].mxu0 %v10426_v8 }
 0x67a   : > { %5179 = vmatprep.mubr.f32.mxu0 %v10454_v47  ;;  %6637 = vmatpush3.bf16.msra.mxu0 %v11708_v58 }
 0x67b   : > { %6639 = vmatprep.subr.bf16.mxu0 %v11709_v13 }
 0x67d   : > { %5182 = vmatmul.mubr.f32.gmra.mrb[46].mxu0 %v10462_v41 }
 0x67e   : > { %6641 = vmatpush3.bf16.msra.mxu0 %v11710_v60  ;;  %5286 = vmatprep.mubr.f32.mxu0 %v4710_v22  ;;  %v11719_v60 = vand.u32 4294901760, %v9862_v36  ;;  %v11720_v22 = vld [vmem:[#allocation42_spill] sm:$0xff]  ;;  %v11727_v36 = vand.u32 4294901760, %v9891_v34  ;;  %v11734_v34 = vand.u32 4294901760, %v9934_v51  ;;  %v11741_v51 = vand.u32 4294901760, %v9982_v26 }
 0x67f   : > { %6643 = vmatprep.subr.bf16.mxu0 %v11711_v50  ;;  %v11721_v50 = vand.u32 4294901760, %v9872_v42  ;;  %v11728_v42 = vand.u32 4294901760, %v9893_v54  ;;  %v11735_v54 = vand.u32 4294901760, %v9952_v40  ;;  %v11742_v40 = vand.u32 4294901760, %v9984_v11 }
 0x680   : > { %v6658_v4 = vpack.c.bf16 %v11719_v60, %v11718_v45  ;;  %v11748_v11 = vand.u32 4294901760, %v11689_v24  ;;  %v11750_v60 = vand.u32 4294901760, %v11692_v31  ;;  %v11755_v24 = vand.u32 4294901760, %v11697_v6  ;;  %v11761_v6 = vld [vmem:[#allocation36_spill] sm:$0xff] }
 0x681   : > { %v6664_v45 = vpack.c.bf16 %v11728_v42, %v11727_v36  ;;  %v11757_v31 = vand.u32 4294901760, %v11700_v44  ;;  %v11763_v44 = vld [vmem:[#allocation48_spill] sm:$0xff] }
 0x682   : > { %6645 = vmatpush3.bf16.msra.mxu0 %v11712_v7  ;;  %v11722_v7 = vand.u32 4294901760, %v9874_v46  ;;  %v11729_v46 = vand.u32 4294901760, %v9926_v59  ;;  %v11736_v59 = vand.u32 4294901760, %v9954_v17  ;;  %v11743_v17 = vand.u32 4294901760, %v10462_v41 }
 0x683   : > { %6647 = vmatprep.subr.bf16.mxu0 %v11713_v56  ;;  %v11749_v41 = vand.u32 4294901760, %v11688_v53  ;;  %v11756_v53 = vand.u32 4294901760, %v11701_v52  ;;  %v11764_v52 = vld [vmem:[#allocation24_spill] sm:$0xff] }
 0x684   : > { %v6660_v56 = vpack.c.bf16 %v11722_v7, %v11721_v50 }
 0x685   : > { %v6680_v50 = vpack.c.bf16 %v11749_v41, %v11748_v11  ;;  %v6688_v42 = vpack.c.bf16 %v11757_v31, %v11756_v53 }
 0x686   : > { %6649 = vmatpush3.bf16.msra.mxu0 %v11714_v55  ;;  %v11723_v55 = vand.u32 4294901760, %v9879_v14  ;;  %v11730_v14 = vand.u32 4294901760, %v9928_v12  ;;  %v11737_v12 = vand.u32 4294901760, %v10426_v8  ;;  %v11744_v8 = vand.u32 4294901760, %v11683_v19 }
 0x687   : > { %6651 = vmatprep.subr.bf16.mxu0 %v11715_v43  ;;  %v11724_v43 = vand.u32 4294901760, %v9881_v0  ;;  %v11731_v0 = vand.u32 4294901760, %v10389_v1  ;;  %v11738_v1 = vand.u32 4294901760, %v10454_v47  ;;  %v11747_v47 = vand.u32 4294901760, %v11685_v27 }
 0x688   : > { %v6666_v7 = vpack.c.bf16 %v11730_v14, %v11729_v46  ;;  %v11751_v19 = vand.u32 4294901760, %v11691_v28  ;;  %v11754_v27 = vand.u32 4294901760, %v11698_v30  ;;  %v11758_v28 = vld [vmem:[#allocation67_spill] sm:$0xff] }
 0x689   : > { %v11762_v30 = vld [vmem:[#allocation11_spill] sm:$0xff] }
 0x68a   : > { %6653 = vmatpush3.bf16.msra.mxu0 %v11716_v5  ;;  %v6662_v5 = vpack.c.bf16 %v11724_v43, %v11723_v55  ;;  %v11739_v43 = vand.u32 4294901760, %v9956_v62  ;;  %v6674_v55 = vpack.c.bf16 %v11742_v40, %v11741_v51  ;;  %v6686_v36 = vpack.c.bf16 %v11755_v24, %v11754_v27 }
 0x68b   : > { %6655 = vmatprep.subr.bf16.mxu0 %v11717_v32  ;;  %v11725_v32 = vand.u32 4294901760, %v10367_v49  ;;  %v11732_v49 = vand.u32 4294901760, %v10423_v18 }
 0x68e   : > { %6657 = vmatpush3.bf16.msra.mxu0 %v11720_v22 }
 0x68f   : > { %6659 = vmatprep.subr.bf16.mxu0 %v6658_v4  ;;  %v6682_v4 = vpack.c.bf16 %v11751_v19, %v11750_v60 }
 0x691   : > { %5290 = vmatmul.mubr.f32.vlgmr.msra.gmra.mrb[48].mxu0 %v11725_v32  ;;  %v11733_v32 = vand.u32 4294901760, %v9932_v63  ;;  %v11740_v63 = vand.u32 4294901760, %v9960_v3  ;;  %v11746_v3 = vand.u32 4294901760, %v11686_v33  ;;  %v11753_v33 = vand.u32 4294901760, %v11694_v57  ;;  %v11759_v57 = vld [vmem:[#allocation66_spill] sm:$0xff] }
 0x692   : > { %5297 = vmatprep.mubr.f32.mxu0 %v11726_v20  ;;  %6661 = vmatpush3.bf16.msra.mxu0 %v6660_v56  ;;  %v11745_v56 = vand.u32 4294901760, %v11682_v23  ;;  %v11752_v23 = vand.u32 4294901760, %v11695_v15  ;;  %v11760_v15 = vld [vmem:[#allocation53_spill] sm:$0xff] }
 0x693   : > { %6663 = vmatprep.subr.bf16.mxu0 %v6662_v5  ;;  %v6668_v39 = vpack.c.bf16 %v11734_v34, %v11733_v32  ;;  %v6670_v5 = vpack.c.bf16 %v11736_v59, %v11735_v54  ;;  %v6672_v18 = vpack.c.bf16 %v11740_v63, %v11739_v43  ;;  %v6678_v26 = vpack.c.bf16 %v11747_v47, %v11746_v3 }
 0x694   : > { %v6676_v62 = vpack.c.bf16 %v11745_v56, %v11744_v8  ;;  %v6684_v20 = vpack.c.bf16 %v11753_v33, %v11752_v23 }
 0x695   : > { %5301 = vmatmul.mubr.f32.gmra.mrb[50].mxu0 %v11731_v0 }
 0x696   : > { %5308 = vmatprep.mubr.f32.mxu0 %v11732_v49  ;;  %6665 = vmatpush3.bf16.msra.mxu0 %v6664_v45 }
 0x697   : > { %6667 = vmatprep.subr.bf16.mxu0 %v6666_v7 }
 0x699   : > { %5312 = vmatmul.mubr.f32.gmra.mrb[52].mxu0 %v11737_v12 }
 0x69a   : > { %5319 = vmatprep.mubr.f32.mxu0 %v11738_v1  ;;  %6669 = vmatpush3.bf16.msra.mxu0 %v6668_v39 }
 0x69b   : > { %6671 = vmatprep.subr.bf16.mxu0 %v6670_v5 }
 0x69d   : > { %5323 = vmatmul.mubr.f32.gmra.mrb[54].mxu0 %v11743_v17 }
 0x69e   : > { %6673 = vmatpush3.bf16.msra.mxu0 %v6672_v18  ;;  %5489 = vmatprep.mubr.f32.mxu0 %v10356_v48 }
 0x69f   : > { %6675 = vmatprep.subr.bf16.mxu0 %v6674_v55 }
 0x6a2   : > { %6677 = vmatpush3.bf16.msra.mxu0 %v6676_v62 }
 0x6a3   : > { %6679 = vmatprep.subr.bf16.mxu0 %v6678_v26 }
 0x6a6   : > { %6681 = vmatpush3.bf16.msra.mxu0 %v6680_v50 }
 0x6a7   : > { %6683 = vmatprep.subr.bf16.mxu0 %v6682_v4 }
 0x6aa   : > { %6685 = vmatpush3.bf16.msra.mxu0 %v6684_v20 }
 0x6ab   : > { %6687 = vmatprep.subr.bf16.mxu0 %v6686_v36 }
 0x6ae   : > { %6689 = vmatpush3.bf16.msra.mxu0 %v6688_v42 }
 0x6af   : > { %6691 = vmatprep.subr.bf16.mxu0 %v11703_v2  ;;  %v11765_v2 = vld [vmem:[#allocation49_spill] sm:$0xff] }
 0x6b1   : > { %5491 = vmatmul.mubr.f32.vlgmr.msra.gmra.mrb[56].mxu0 %v10358_v37 }
 0x6b2   : > { %5496 = vmatprep.mubr.f32.mxu0 %v10381_v61  ;;  %6693 = vmatpush3.bf16.msra.mxu0 %v11704_v9  ;;  %v11766_v9 = vld [vmem:[#allocation89_spill] sm:$0xff] }
 0x6b3   : > { %6695 = vmatprep.subr.bf16.mxu0 %v11705_v21 }
 0x6b5   : > { %5498 = vmatmul.mubr.f32.gmra.mrb[58].mxu0 %v10386_v25 }
 0x6b6   : > { %5503 = vmatprep.mubr.f32.mxu0 %v10416_v38  ;;  %6697 = vmatpush3.bf16.msra.mxu0 %v11706_v16 }
 0x6b7   : > { %6699 = vmatprep.subr.bf16.mxu0 %v11707_v35 }
 0x6b9   : > { %5505 = vmatmul.mubr.f32.gmra.mrb[60].mxu0 %v10418_v10 }
 0x6ba   : > { %5510 = vmatprep.mubr.f32.mxu0 %v10449_v29  ;;  %6701 = vmatpush3.bf16.msra.mxu0 %v11708_v58 }
 0x6bb   : > { %6703 = vmatprep.subr.bf16.mxu0 %v11709_v13 }
 0x6bd   : > { %5512 = vmatmul.mubr.f32.gmra.mrb[62].mxu0 %v11758_v28 }
 0x6be   : > { %6705 = vmatpush3.bf16.msra.mxu0 %v11759_v57  ;;  %5614 = vmatprep.mubr.f32.mxu0 %v10356_v48 }
 0x6bf   : > { %6707 = vmatprep.subr.bf16.mxu0 %v11760_v15 }
 0x6c2   : > { %6709 = vmatpush3.bf16.msra.mxu0 %v11761_v6 }
 0x6c3   : > { %6711 = vmatprep.subr.bf16.mxu0 %v11762_v30 }
 0x6c6   : > { %6713 = vmatpush3.bf16.msra.mxu0 %v11763_v44 }
 0x6c7   : > { %6715 = vmatprep.subr.bf16.mxu0 %v11764_v52 }
 0x6ca   : > { %6717 = vmatpush3.bf16.msra.mxu0 %v11765_v2 }
 0x6cb   : > { %6719 = vmatprep.subr.bf16.mxu0 %v11766_v9 }
 0x6ce   : > { %6721 = vmatpush3.bf16.msra.mxu0 %v11720_v22 }
 0x6d1   : > { %5616 = vmatmul.mubr.f32.vlgmr.msra.gmra.mrb[64].mxu0 %v10358_v37 }
 0x6d2   : > { %5621 = vmatprep.mubr.f32.mxu0 %v10381_v61 }
 0x6d5   : > { %5623 = vmatmul.mubr.f32.gmra.mrb[66].mxu0 %v10386_v25 }
 0x6d6   : > { %5628 = vmatprep.mubr.f32.mxu0 %v10416_v38 }
 0x6d9   : > { %5630 = vmatmul.mubr.f32.gmra.mrb[68].mxu0 %v10418_v10 }
 0x6da   : > { %5635 = vmatprep.mubr.f32.mxu0 %v10449_v29 }
 0x6dd   : > { %5637 = vmatmul.mubr.f32.gmra.mrb[70].mxu0 %v11758_v28 }
 0x6f9   : > { %v5770_v48 = vpop.f32.mrb[24].mxu0 }
 0x6fa   : > { %v5771_v21 = vpop.f32.mrb[25].mxu0 }
 0x6fb   : > { %v5772_v16 = vadd.f32 %v5771_v21, %v5770_v48 }
 0x702   : > { %v5773_v35 = vpop.f32.mrb[26].mxu0 }
 0x703   : > { %v5774_v58 = vpop.f32.mrb[27].mxu0 }
 0x704   : > { %v5775_v13 = vadd.f32 %v5774_v58, %v5773_v35 }
 0x711   : > { %v5776_v22 = vpop.f32.mrb[28].mxu0 }
 0x712   : > { %v5777_v37 = vpop.f32.mrb[29].mxu0 }
 0x713   : > { %v5778_v45 = vadd.f32 %v5777_v37, %v5776_v22 }
 0x720   : > { %v5779_v61 = vpop.f32.mrb[30].mxu0 }
 0x721   : > { %v5780_v46 = vpop.f32.mrb[31].mxu0 }
 0x722   : > { %v5781_v25 = vadd.f32 %v5780_v46, %v5779_v61 }
 0x724   : > { %v5814_v14 = vpop.f32.mrb[32].mxu0 }
 0x725   : > { %v5815_v38 = vpop.f32.mrb[33].mxu0 }
 0x726   : > { %v5816_v7 = vadd.f32 %v5815_v38, %v5814_v14 }
 0x728   : > { %v4998_v10 = vadd.f32 %v5816_v7, %v5772_v16  ;;  %v5817_v0 = vpop.f32.mrb[34].mxu0 }
 0x729   : > { %v5818_v29 = vpop.f32.mrb[35].mxu0 }
 0x72a   : > { %v5819_v49 = vadd.f32 %v5818_v29, %v5817_v0 }
 0x72c   : > { %v5005_v32 = vadd.f32 %v5819_v49, %v5775_v13  ;;  %v5820_v34 = vpop.f32.mrb[36].mxu0 }
 0x72d   : > { %v5821_v39 = vpop.f32.mrb[37].mxu0 }
 0x72e   : > { %v5822_v54 = vadd.f32 %v5821_v39, %v5820_v34 }
 0x730   : > { %v5012_v59 = vadd.f32 %v5822_v54, %v5778_v45  ;;  %v5823_v5 = vpop.f32.mrb[38].mxu0 }
 0x731   : > { %v5824_v12 = vpop.f32.mrb[39].mxu0 }
 0x732   : > { %v5825_v1 = vadd.f32 %v5824_v12, %v5823_v5 }
 0x734   : > { %v5019_v43 = vadd.f32 %v5825_v1, %v5781_v25 }
 0x744   : > { %v5858_v63 = vpop.f32.mrb[40].mxu0 }
 0x745   : > { %v5859_v18 = vpop.f32.mrb[41].mxu0 }
 0x746   : > { %v5860_v51 = vadd.f32 %v5859_v18, %v5858_v63 }
 0x748   : > { %v5157_v40 = vadd.f32 %v5860_v51, %v4998_v10  ;;  %v5861_v55 = vpop.f32.mrb[42].mxu0 }
 0x749   : > { %v5862_v17 = vpop.f32.mrb[43].mxu0 }
 0x74a   : > { %v5863_v8 = vadd.f32 %v5862_v17, %v5861_v55 }
 0x74c   : > { %v5166_v56 = vadd.f32 %v5863_v8, %v5005_v32  ;;  %v5864_v62 = vpop.f32.mrb[44].mxu0 }
 0x74d   : > { %v5865_v3 = vpop.f32.mrb[45].mxu0 }
 0x74e   : > { %v5866_v47 = vadd.f32 %v5865_v3, %v5864_v62 }
 0x750   : > { %v5175_v26 = vadd.f32 %v5866_v47, %v5012_v59  ;;  %v5867_v11 = vpop.f32.mrb[46].mxu0 }
 0x751   : > { %v5868_v41 = vpop.f32.mrb[47].mxu0 }
 0x752   : > { %v5869_v50 = vadd.f32 %v5868_v41, %v5867_v11 }
 0x754   : > { %v5184_v60 = vadd.f32 %v5869_v50, %v5019_v43 }
 0x764   : > { %v5902_v19 = vpop.f32.mrb[48].mxu0 }
 0x765   : > { %v5903_v4 = vpop.f32.mrb[49].mxu0 }
 0x766   : > { %v5904_v23 = vadd.f32 %v5903_v4, %v5902_v19 }
 0x768   : > { %v5292_v33 = vadd.f32 %v5904_v23, %v5157_v40  ;;  %v5905_v20 = vpop.f32.mrb[50].mxu0 }
 0x769   : > { %v5906_v27 = vpop.f32.mrb[51].mxu0 }
 0x76a   : > { %v5907_v24 = vadd.f32 %v5906_v27, %v5905_v20 }
 0x76c   : > { %v5303_v36 = vadd.f32 %v5907_v24, %v5166_v56  ;;  %v5908_v53 = vpop.f32.mrb[52].mxu0 }
 0x76d   : > { %v5909_v31 = vpop.f32.mrb[53].mxu0 }
 0x76e   : > { %v5910_v42 = vadd.f32 %v5909_v31, %v5908_v53 }
 0x770   : > { %v5314_v28 = vadd.f32 %v5910_v42, %v5175_v26  ;;  %v5911_v57 = vpop.f32.mrb[54].mxu0 }
 0x771   : > { %v5912_v15 = vpop.f32.mrb[55].mxu0 }
 0x772   : > { %v5913_v6 = vadd.f32 %v5912_v15, %v5911_v57 }
 0x774   : > { %v5325_v30 = vadd.f32 %v5913_v6, %v5184_v60 }
 0x784   : > { %v5946_v44 = vpop.f32.mrb[56].mxu0 }
 0x785   : > { %v5947_v52 = vpop.f32.mrb[57].mxu0 }
 0x786   : > { %v5948_v2 = vadd.f32 %v5947_v52, %v5946_v44 }
 0x788   : > { %v5493_v9 = vadd.f32 %v5948_v2, %v5292_v33  ;;  %v5949_v48 = vpop.f32.mrb[58].mxu0 }
 0x789   : > { %v5950_v21 = vpop.f32.mrb[59].mxu0 }
 0x78a   : > { %v5951_v16 = vadd.f32 %v5950_v21, %v5949_v48 }
 0x78c   : > { %v5500_v35 = vadd.f32 %v5951_v16, %v5303_v36  ;;  %v5952_v58 = vpop.f32.mrb[60].mxu0 }
 0x78d   : > { %v5953_v13 = vpop.f32.mrb[61].mxu0 }
 0x78e   : > { %v5954_v22 = vadd.f32 %v5953_v13, %v5952_v58 }
 0x790   : > { %v5507_v37 = vadd.f32 %v5954_v22, %v5314_v28  ;;  %v5955_v45 = vpop.f32.mrb[62].mxu0 }
 0x791   : > { %v5956_v61 = vpop.f32.mrb[63].mxu0 }
 0x792   : > { %v5957_v46 = vadd.f32 %v5956_v61, %v5955_v45 }
 0x794   : > { %v5514_v25 = vadd.f32 %v5957_v46, %v5325_v30 }
 0x7a4   : > { %v5990_v14 = vpop.f32.mrb[64].mxu0 }
 0x7a5   : > { %v5991_v38 = vpop.f32.mrb[65].mxu0 }
 0x7a6   : > { %v5992_v7 = vadd.f32 %v5991_v38, %v5990_v14 }
 0x7a8   : > { %v5618_v10 = vadd.f32 %v5992_v7, %v5493_v9  ;;  %v5993_v0 = vpop.f32.mrb[66].mxu0 }
 0x7a9   : > { %v5994_v29 = vpop.f32.mrb[67].mxu0 }
 0x7aa   : > { %5643 = vst.msk [vmem:[%s271_s15] sm:$0xff] %vm5642_vm10, %v5618_v10  ;;  %v5995_v49 = vadd.f32 %v5994_v29, %v5993_v0 }
 0x7ac   : > { %v5625_v32 = vadd.f32 %v5995_v49, %v5500_v35  ;;  %v5996_v34 = vpop.f32.mrb[68].mxu0 }
 0x7ad   : > { %v5997_v39 = vpop.f32.mrb[69].mxu0 }
 0x7ae   : > { %5644 = vst.msk [vmem:[%s271_s15 + $0x8] sm:$0xff] %vm5642_vm10, %v5625_v32  ;;  %v5998_v54 = vadd.f32 %v5997_v39, %v5996_v34 }
 0x7b0   : > { %v5632_v59 = vadd.f32 %v5998_v54, %v5507_v37  ;;  %v5999_v5 = vpop.f32.mrb[70].mxu0 }
 0x7b1   : > { %v6000_v12 = vpop.f32.mrb[71].mxu0 }
 0x7b2   : > { %5645 = vst.msk [vmem:[%s271_s15 + $0x10] sm:$0xff] %vm5642_vm10, %v5632_v59  ;;  %v6001_v1 = vadd.f32 %v6000_v12, %v5999_v5 }
 0x7b4   : > { %v5639_v43 = vadd.f32 %v6001_v1, %v5514_v25 }
 0x7b6   : > { %5646 = vst.msk [vmem:[%s271_s15 + $0x18] sm:$0xff] %vm5642_vm10, %v5639_v43 }
 0x7b7   : > { %6981 = shalt.err (!%p6978_p3)
}
 0x7b8   : > { %s6982_s9 = scalar_lea.hbm %s10671_s21, 512  ;;  %s6986_s19 = scalar_lea.hbm %s10724_s7, 1024 }
 0x7b9   : > { %p6983_p4 = scmp.ne.s32.totalorder %s10671_s21, %s6982_s9  ;;  %p6987_p9 = scmp.lt.u32.totalorder %s10671_s21, %s10724_s7 }
 0x7ba   : > { %p6988_p10 = scmp.lt.u32.totalorder %s6986_s19, %s6982_s9  ;;  %p6990_p12 = scmp.lt.u32.totalorder %s6982_s9, %s10671_s21 }
 0x7bb   : > { %p6984_p7 = pnand %p6983_p4, %p7123_p5 }
 0x7bc   : > { %p6989_p11 = por %p6988_p10, %p6987_p9 }
 0x7bd   : > { %p6985_p8 = pneg %p6984_p7 }
 0x7be   : > { %p6991_p13 = por %p6990_p12, %p6989_p11 }
 0x7c0   : > { %p6992_p0 = pnand %p6991_p13, %p6985_p8 }
 0x7c2   : > { %6995 = shalt.err (!%p6992_p0)
}
 0x7c3   : > { %s7043_s29 = smov 128   ;;  %s7044_s17 = smov 8  }
 0x7c4   : > { %6870 = dma.vmem_to_hbm [thread:$0]  (%p7123_p5), %s10673_s20, 512, %s10671_s21, %s10676_s23, %s7043_s29, %s7043_s29, %s7044_s17  }
 0x7c5 PF: > { %p6876_p1 = scmp.ge.s32.totalorder %s7030_s27, 2  ;;  %s5676_s28 = sand.u32 1, %s7018_s24  }
 0x7c6   : > { %s5677_s13 = scalar_lea.sflag [#allocation8], %s5676_s28 }
 0x7c7   : > { %p6873_p2 = pnand %p6876_p1, %p7127_p6 }
 0x7c9   : > { %7013 = dma.done.wait (!%p6873_p2), %s5677_s13, 512  }
 0x7ca   : > { %7015 = vsyncadd (!%p6873_p2), %s5677_s13, 4294966784  ;;  %p17_p3 = scmp.ge.s32.totalorder %s7110_s30, 4   ;;  %s11767_s24 = smov %s7022_s25 }
 0x7cb   : > { %s11768_s25 = smov %s7026_s26  ;;  %s11769_s26 = smov %s7121_s10 }
 0x7cc   : > { %s11770_s27 = smov %s7110_s30  ;;  %19 = sbr.rel (!%p17_p3) target bundleno = 3 (0x3), region = 84 }
 0x7d3   :  { %5682 = vsyncpa [#allocation8], 1 }
 0x7d4   :  { %5684 = vsyncpa [#allocation8 + $0x1], 1 }

</bundles_post_ra>
